<compile_context>
chip_gen: v6e
topology: v6e:2x2x1
jax: 0.10.0
libtpu: 0.0.40
codegen_flags: <defaults>
</compile_context>

<pallas_src>
import jax
import jax.numpy as jnp
from jax.experimental import pallas as pl
from jax.experimental.pallas import tpu as pltpu

EPS = 1e-3


def _fused_kernel(w_ref, x_ref, s_ref, g_ref, b_ref, o_ref):
    # w_ref: [Tc, Cin]   1x1 conv weight tile (natural PyTorch layout)
    # x_ref: [Cin, P]    channels x flattened spatial (resident across grid)
    # s_ref: [1, Cin]    per-channel multiplier (x774), lane-dense
    # g_ref: [Tc, 1]     BN gamma tile
    # b_ref: [Tc, 1]     BN beta tile
    # o_ref: [Tc, P]
    w = w_ref[...] * s_ref[...]                                   # fold scale into W (VPU)
    y = jnp.dot(w, x_ref[...], preferred_element_type=jnp.float32)  # MXU: [Tc, P]

    # BatchNorm (training mode): per-channel stats over P = N*H*W, biased var.
    # Single pass: var = E[y^2] - mean^2, affine fused into (a, c).
    inv_p = 1.0 / y.shape[1]
    mean = jnp.sum(y, axis=1, keepdims=True) * inv_p              # [Tc, 1]
    msq = jnp.sum(y * y, axis=1, keepdims=True) * inv_p           # [Tc, 1]
    var = msq - mean * mean
    a = jax.lax.rsqrt(var + EPS) * g_ref[...]                     # [Tc, 1]
    c = b_ref[...] - mean * a                                     # [Tc, 1]
    o_ref[...] = (y * a + c).astype(o_ref.dtype)


def fused_mul_conv_bn(x769, x774, conv_w, gamma, beta):
    """x769: [N, Cin, H, W], x774: [N, Cin, 1, 1], conv_w: [Cout, Cin, 1, 1]."""
    n, cin, h, w = x769.shape
    cout = conv_w.shape[0]
    p = n * h * w

    if n == 1:
        # Free reshapes: no transposes anywhere on the hot path.
        x_cm = x769.reshape(cin, p)                  # [Cin, P]
        s_cm = x774.reshape(1, cin)                  # [1, Cin]  (lane-dense)
    else:
        # General-N fallback (module spec has N=1): apply the per-(n, c) scale
        # up front, then go channels-first; pass a unit scale to the kernel.
        x_cm = jnp.transpose(x774 * x769, (1, 0, 2, 3)).reshape(cin, p)
        s_cm = jnp.ones((1, cin), dtype=x_cm.dtype)

    w_mat = conv_w.reshape(cout, cin)                # [Cout, Cin], no .T needed
    g = gamma.reshape(cout, 1)
    b = beta.reshape(cout, 1)

    # Split Cout across the grid: 192-row tiles (sublane aligned) when possible,
    # so v7x's two TensorCores each stream half the weight; exact for BN since
    # stats are per output channel.
    if cout % 192 == 0:
        tc = 192
    else:
        tc = cout
    n_blk = cout // tc

    out_cm = pl.pallas_call(
        _fused_kernel,
        out_shape=jax.ShapeDtypeStruct((cout, p), jnp.float32),
        grid=(n_blk,),
        in_specs=[
            pl.BlockSpec((tc, cin), lambda i: (i, 0)),    # W tile streams
            pl.BlockSpec((cin, p), lambda i: (0, 0)),     # X resident
            pl.BlockSpec((1, cin), lambda i: (0, 0)),     # scale resident
            pl.BlockSpec((tc, 1), lambda i: (i, 0)),      # gamma tile
            pl.BlockSpec((tc, 1), lambda i: (i, 0)),      # beta tile
        ],
        out_specs=pl.BlockSpec((tc, p), lambda i: (i, 0)),
        compiler_params=pltpu.CompilerParams(
            dimension_semantics=("parallel",)),
    )(w_mat, x_cm, s_cm, g, b)

    if n == 1:
        return out_cm.reshape(1, cout, h, w)         # free reshape back to NCHW
    return jnp.transpose(out_cm.reshape(cout, n, h, w), (1, 0, 2, 3))


def _reference(x769, x774, conv_w, gamma, beta):
    x = x774 * x769
    n, cin, h, w = x.shape
    cout = conv_w.shape[0]
    y = jnp.einsum("nchw,oc->nohw", x, conv_w.reshape(cout, cin))
    mean = jnp.mean(y, axis=(0, 2, 3), keepdims=True)
    var = jnp.mean((y - mean) ** 2, axis=(0, 2, 3), keepdims=True)
    yhat = (y - mean) * jax.lax.rsqrt(var + EPS)
    return yhat * gamma.reshape(1, cout, 1, 1) + beta.reshape(1, cout, 1, 1)


if __name__ == "__main__":
    key = jax.random.PRNGKey(0)
    k1, k2, k3 = jax.random.split(key, 3)

    N, CIN, H, W = 1, 2304, 7, 7
    COUT = 384

    x769 = jax.random.normal(k1, (N, CIN, H, W), dtype=jnp.float32)
    x774 = jax.random.normal(k2, (N, CIN, 1, 1), dtype=jnp.float32)
    # Conv2d weight (deterministic); BatchNorm affine params at PyTorch defaults.
    conv_w = jax.random.normal(k3, (COUT, CIN, 1, 1), dtype=jnp.float32) * 0.02
    gamma = jnp.ones((COUT,), dtype=jnp.float32)
    beta = jnp.zeros((COUT,), dtype=jnp.float32)

    out = jax.block_until_ready(fused_mul_conv_bn(x769, x774, conv_w, gamma, beta))

    ref = jax.block_until_ready(_reference(x769, x774, conv_w, gamma, beta))
    assert out.shape == (N, COUT, H, W)
    assert jnp.allclose(out, ref, atol=2e-3, rtol=2e-3)

    print("KERNEL_OK")
</pallas_src>

<mosaic_0001>
module attributes {stable_mosaic.version = 11 : i64} {
  func.func @_fused_kernel(%arg0: i32, %arg1: memref<192x2304xf32, #tpu.memory_space<vmem>>, %arg2: memref<2304x49xf32, #tpu.memory_space<vmem>>, %arg3: memref<1x2304xf32, #tpu.memory_space<vmem>>, %arg4: memref<192x1xf32, #tpu.memory_space<vmem>>, %arg5: memref<192x1xf32, #tpu.memory_space<vmem>>, %arg6: memref<192x49xf32, #tpu.memory_space<vmem>>) attributes {dimension_semantics = [#tpu.dimension_semantics<parallel>], iteration_bounds = array<i64: 2>, scalar_prefetch = 0 : i64, scratch_operands = 0 : i64, tpu.core_type = #tpu.core_type<tc>, window_params = [{transform_indices = @transform_0, window_bounds = array<i64: 192, 2304>}, {pipeline_mode = #tpu.pipeline_mode<synchronous>, transform_indices = @transform_1, window_bounds = array<i64: 2304, 49>}, {pipeline_mode = #tpu.pipeline_mode<synchronous>, transform_indices = @transform_2, window_bounds = array<i64: 1, 2304>}, {transform_indices = @transform_3, window_bounds = array<i64: 192, 1>}, {transform_indices = @transform_4, window_bounds = array<i64: 192, 1>}, {transform_indices = @transform_5, window_bounds = array<i64: 192, 49>}]} {
    %c0 = arith.constant 0 : index
    %c0_0 = arith.constant 0 : index
    %0 = vector.load %arg1[%c0, %c0_0] : memref<192x2304xf32, #tpu.memory_space<vmem>>, vector<192x2304xf32>
    %c0_1 = arith.constant 0 : index
    %c0_2 = arith.constant 0 : index
    %1 = vector.load %arg3[%c0_1, %c0_2] : memref<1x2304xf32, #tpu.memory_space<vmem>>, vector<1x2304xf32>
    %2 = vector.broadcast %1 : vector<1x2304xf32> to vector<192x2304xf32>
    %3 = arith.mulf %0, %2 : vector<192x2304xf32>
    %c0_3 = arith.constant 0 : index
    %c0_4 = arith.constant 0 : index
    %4 = vector.load %arg2[%c0_3, %c0_4] : memref<2304x49xf32, #tpu.memory_space<vmem>>, vector<2304x49xf32>
    %cst = arith.constant dense<0.000000e+00> : vector<192x49xf32>
    %5 = tpu.matmul %3, %4, %cst {dimension_numbers = #tpu.dot_dimension_numbers<[1], [0], [0], [1], [0, 0, 1, 1], [], []>} : vector<192x2304xf32>, vector<2304x49xf32>, vector<192x49xf32> -> vector<192x49xf32>
    %cst_5 = arith.constant dense<0.000000e+00> : vector<192xf32>
    %6 = vector.multi_reduction <add>, %5, %cst_5 [1] : vector<192x49xf32> to vector<192xf32>
    %7 = vector.shape_cast %6 : vector<192xf32> to vector<192x1xf32>
    %cst_6 = arith.constant 0.0204081628 : f32
    %8 = vector.broadcast %cst_6 : f32 to vector<192x1xf32>
    %9 = arith.mulf %7, %8 : vector<192x1xf32>
    %10 = arith.mulf %5, %5 : vector<192x49xf32>
    %cst_7 = arith.constant dense<0.000000e+00> : vector<192xf32>
    %11 = vector.multi_reduction <add>, %10, %cst_7 [1] : vector<192x49xf32> to vector<192xf32>
    %12 = vector.shape_cast %11 : vector<192xf32> to vector<192x1xf32>
    %cst_8 = arith.constant 0.0204081628 : f32
    %13 = vector.broadcast %cst_8 : f32 to vector<192x1xf32>
    %14 = arith.mulf %12, %13 : vector<192x1xf32>
    %15 = arith.mulf %9, %9 : vector<192x1xf32>
    %16 = arith.subf %14, %15 : vector<192x1xf32>
    %cst_9 = arith.constant 1.000000e-03 : f32
    %17 = vector.broadcast %cst_9 : f32 to vector<192x1xf32>
    %18 = arith.addf %16, %17 : vector<192x1xf32>
    %19 = math.rsqrt %18 : vector<192x1xf32>
    %c0_10 = arith.constant 0 : index
    %c0_11 = arith.constant 0 : index
    %20 = vector.load %arg4[%c0_10, %c0_11] : memref<192x1xf32, #tpu.memory_space<vmem>>, vector<192x1xf32>
    %21 = arith.mulf %19, %20 : vector<192x1xf32>
    %c0_12 = arith.constant 0 : index
    %c0_13 = arith.constant 0 : index
    %22 = vector.load %arg5[%c0_12, %c0_13] : memref<192x1xf32, #tpu.memory_space<vmem>>, vector<192x1xf32>
    %23 = arith.mulf %9, %21 : vector<192x1xf32>
    %24 = arith.subf %22, %23 : vector<192x1xf32>
    %25 = vector.broadcast %21 : vector<192x1xf32> to vector<192x49xf32>
    %26 = arith.mulf %5, %25 : vector<192x49xf32>
    %27 = vector.broadcast %24 : vector<192x1xf32> to vector<192x49xf32>
    %28 = arith.addf %26, %27 : vector<192x49xf32>
    %c0_14 = arith.constant 0 : index
    %c0_15 = arith.constant 0 : index
    %29 = vector.load %arg6[%c0_14, %c0_15] : memref<192x49xf32, #tpu.memory_space<vmem>>, vector<192x49xf32>
    tpu.vector_store %arg6[%c0_14, %c0_15], %28 {strides = array<i32>} : memref<192x49xf32, #tpu.memory_space<vmem>>, vector<192x49xf32>,
    return
  }
  func.func @transform_0(%arg0: i32) -> (i32, i32) {
    %c0_i32 = arith.constant 0 : i32
    %c0_i32_0 = arith.constant 0 : i32
    return %arg0, %c0_i32 : i32, i32
  }
  func.func @transform_1(%arg0: i32) -> (i32, i32) {
    %c0_i32 = arith.constant 0 : i32
    %c0_i32_0 = arith.constant 0 : i32
    %c0_i32_1 = arith.constant 0 : i32
    return %c0_i32, %c0_i32_0 : i32, i32
  }
  func.func @transform_2(%arg0: i32) -> (i32, i32) {
    %c0_i32 = arith.constant 0 : i32
    %c0_i32_0 = arith.constant 0 : i32
    %c0_i32_1 = arith.constant 0 : i32
    return %c0_i32, %c0_i32_0 : i32, i32
  }
  func.func @transform_3(%arg0: i32) -> (i32, i32) {
    %c0_i32 = arith.constant 0 : i32
    %c0_i32_0 = arith.constant 0 : i32
    return %arg0, %c0_i32 : i32, i32
  }
  func.func @transform_4(%arg0: i32) -> (i32, i32) {
    %c0_i32 = arith.constant 0 : i32
    %c0_i32_0 = arith.constant 0 : i32
    return %arg0, %c0_i32 : i32, i32
  }
  func.func @transform_5(%arg0: i32) -> (i32, i32) {
    %c0_i32 = arith.constant 0 : i32
    %c0_i32_0 = arith.constant 0 : i32
    return %arg0, %c0_i32 : i32, i32
  }
}

</mosaic_0001>

<bundles_post_ra>
// kernel: tpu_custom_call.1
= control target key start
LH: loop header
LB: loop body
LE: loop exit
PB: predicated region body
PF: predicated region fallthrough
CT: control target
= control target key end

     0   :  { %10 = vsyncpa [#allocation3], 0  ;;  %s7399_s0 = inlined_call_operand.hbm [shape: f32[384,2304], index: 0, kind: input, shape index: {}]   ;;  %s7400_s1 = inlined_call_operand.vmem [shape: f32[2304,49], index: 1, kind: input, shape index: {}]   ;;  %s7401_s2 = inlined_call_operand.hbm [shape: f32[1,2304], index: 2, kind: input, shape index: {}]   ;;  %s7402_s3 = inlined_call_operand.vmem [shape: f32[384,1], index: 3, kind: input, shape index: {}]   ;;  %s7403_s4 = inlined_call_operand.vmem [shape: f32[384,1], index: 4, kind: input, shape index: {}]   ;;  %s7404_s5 = inlined_call_operand.vmem [shape: f32[384,49], index: 5, kind: output, shape index: {}]  }
   0x1   :  { %12 = vsyncpa [#allocation3 + $0x1], 0 }
   0x2   :  { %13 = vsyncpa [#allocation5], 0  ;;  %s4381_s18 = smov 0   ;;  %s4383_s19 = smov 0  }
   0x3   :  { %s4385_s20 = smov 0   ;;  %s4387_s21 = smov 0  }
   0x4 LB: > { %s4064_s22 = sadd.s32 4294967295, %s4343_s21   ;;  %s4401_s23 = sadd.s32 1, %s4343_s21   ;;  %s4343_s21 = sphi %s4387_s21, %s7421_s21   ;;  %s4339_s20 = sphi %s4385_s20, %s7420_s20   ;;  %s4335_s19 = sphi %s4383_s19, %s7419_s19   ;;  %s4331_s18 = sphi %s4381_s18, %s7418_s18  }
   0x5   : > { %s23_s24 = ssub.s32 %s4343_s21, %s4401_s23  ;;  %s26_s25 = sadd.s32 1, %s4339_s20 }
   0x6   : > { %p24_p0 = scmp.eq.s32.totalorder %s23_s24, 0  ;;  %p33_p1 = scmp.ne.s32.totalorder %s4339_s20, %s4335_s19 }
   0x7   : > { %p34_p2 = scmp.eq.s32.totalorder %s4343_s21, 0  ;;  %p39_p3 = scmp.ne.s32.totalorder %s4335_s19, %s4331_s18 }
   0x8   : > { %s4411_s26 = scalar_select %p24_p0, %s4339_s20, %s26_s25  }
   0x9   : > { %p4413_p4 = por %p34_p2, %p33_p1  ;;  %p4419_p5 = scmp.eq.s32.totalorder %s4064_s22, 0 }
   0xa   : > { %p4066_p6 = scmp.ge.s32.totalorder %s4343_s21, 1  ;;  %p170_p7 = scmp.lt.s32.totalorder %s4343_s21, 3 }
   0xb   : > { %s7410_s28 = scalar_select %p4419_p5, 1, 0 }
   0xc   : > { %p4427_p8 = por %p4419_p5, %p39_p3  ;;  %p4431_p9 = pnand %p4066_p6, %p170_p7 }
   0xd   : > { %s4345_s6 = smov [#allocation4]   ;;  %p4159_p11 = scmp.lt.s32.totalorder %s4343_s21, 2 }
   0xe   : > { %s7411_s29 = scalar_select %p4427_p8, 1, 0 }
   0xf   : > { %s7412_s30 = scalar_select %p4431_p9, 1, 0 }
  0x10   : > { %s186_s7 = sshll.u32 %s4345_s6, 4  ;;  %p4150_p10 = pneg %p4431_p9  ;;  %s187_s7 = int_to_ptr.vmem [resolvable:$true] %s186_s7 }
  0x11   : > { %s197_s9 = sand.u32 1, %s4339_s20   ;;  %p4447_p13 = pnand %p4159_p11, %p4413_p4 }
  0x12   : > { %p4440_p12 = pnand %p4150_p10, %p4419_p5  ;;  %s4141_s11 = smul.u32 3456, %s197_s9 }
  0x13   : > { %s4262_s12 = scalar_lea.vmem %s187_s7, 288  ;;  %p4270_p6 = scmp.lt.s32.totalorder %s187_s7, %s187_s7 }
  0x14   : > { %p4253_p0 = pneg %p4440_p12  ;;  %p4263_p1 = scmp.ne.s32.totalorder %s187_s7, %s4262_s12 }
  0x15   : > { %p4271_p7 = scmp.lt.s32.totalorder %s4262_s12, %s4262_s12 }
  0x16   : > { %p4265_p2 = pnand %p4263_p1, %p4253_p0 }
  0x17   : > { %p4272_p10 = por %p4271_p7, %p4270_p6 }
  0x18   : > { %p4266_p3 = pneg %p4265_p2 }
  0x1a   : > { %p4273_p5 = pnand %p4272_p10, %p4266_p3 }
  0x1c   : > { %4276 = shalt.err (!%p4273_p5)
}
  0x1d   : > { %4153 = dma.hbm_to_vmem [thread:$0]  (!%p4440_p12), %s7401_s2, 288, %s187_s7, [#allocation5]  }
  0x1e   : > { %s4160_s15 = smul.u32 55296, %s4343_s21  ;;  %s201_s16 = scalar_lea.vmem [#allocation2], %s4141_s11 }
  0x1f   : > { %s209_s17 = sshll.u32 %s201_s16, 4  ;;  %s4466_s27 = scalar_lea.sflag [#allocation3], %s197_s9  ;;  %s4459_s17 = int_to_ptr.vmem [resolvable:$true] %s209_s17 }
  0x20   : > { %s4464_s25 = scalar_lea.hbm %s7399_s0, %s4160_s15  ;;  %p4279_p5 = pneg %p4447_p13 }
  0x21   : > { %s4277_s6 = scalar_lea.hbm %s4464_s25, 55296  ;;  %s4282_s11 = scalar_lea.hbm %s7399_s0, 110592 }
  0x22   : > { %p4278_p4 = scmp.ne.s32.totalorder %s4464_s25, %s4277_s6  ;;  %p4283_p0 = scmp.lt.s32.totalorder %s4464_s25, %s7399_s0 }
  0x23   : > { %p4284_p1 = scmp.lt.s32.totalorder %s4282_s11, %s4277_s6 }
  0x24   : > { %p4280_p11 = pnand %p4279_p5, %p4278_p4 }
  0x25   : > { %p4285_p2 = por %p4284_p1, %p4283_p0 }
  0x26   : > { %p4281_p12 = pneg %p4280_p11 }
  0x28   : > { %p4286_p3 = pnand %p4285_p2, %p4281_p12 }
  0x2a   : > { %4289 = shalt.err (!%p4286_p3)
}
  0x2b   : > { %s4290_s9 = scalar_lea.vmem %s4459_s17, 55296  ;;  %s4346_s14 = smov [#allocation2]  }
  0x2c   : > { %p4291_p6 = scmp.ne.s32.totalorder %s4459_s17, %s4290_s9  ;;  %s4295_s15 = sshll.u32 %s4346_s14, 4  ;;  %s4296_s15 = int_to_ptr.vmem [resolvable:$false] %s4295_s15 }
  0x2d   : > { %s4297_s16 = scalar_lea.vmem %s4296_s15, 110592  ;;  %p4298_p4 = scmp.lt.s32.totalorder %s4459_s17, %s4296_s15 }
  0x2e   : > { %p4293_p7 = pnand %p4291_p6, %p4279_p5  ;;  %p4299_p11 = scmp.lt.s32.totalorder %s4297_s16, %s4290_s9 }
  0x30   : > { %p4294_p10 = pneg %p4293_p7  ;;  %p4300_p8 = por %p4299_p11, %p4298_p4 }
  0x32   : > { %p4301_p9 = pnand %p4300_p8, %p4294_p10 }
  0x34   : > { %4304 = shalt.err (!%p4301_p9)
}
  0x35   : > { %s4347_s18 = smov 2304   ;;  %s4348_s24 = smov 144  }
  0x36   : > { %4157 = dma.hbm_to_vmem [thread:$0]  (!%p4447_p13), %s4464_s25, 55296, %s4459_s17, %s4466_s27, %s4347_s18, %s4347_s18, %s4348_s24  }
  0x37   : > { %p7415_p5 = scmp.ne.s32.totalorder %s7412_s30, 0 }
  0x38   : > { %s241_s6 = sand.u32 (!%p7415_p5), 1, %s4335_s19   ;;  %p7416_p8 = scmp.ne.s32.totalorder (!%p7415_p5), %s7411_s29, 0 }
  0x39   : > { %239 = sbr.rel (%p7415_p5) target bundleno = 1181 (0x49d), region = 40  ;;  %s242_s8 = scalar_lea.sflag (!%p7415_p5), [#allocation3], %s241_s6 }
  0x3a   : > { %s4143_s7 = smul.u32 (!%p7415_p5), 3456, %s241_s6 }
  0x3c   : > { %s4490_s11 = scalar_lea.vmem (!%p7415_p5), [#allocation2], %s4143_s7 }
  0x3e   : > { %4322 = dma.done.wait (%p7416_p8), %s242_s8, 55296  }
  0x3f   : > { %4324 = vsyncadd (%p7416_p8), %s242_s8, 4294912000  ;;  %p7417_p9 = scmp.ne.s32.totalorder %s7410_s28, 0 }
  0x41   : > { %4326 = dma.done.wait (%p7417_p9), [#allocation5], 288  }
  0x42   : > { %4328 = vsyncadd (%p7417_p9), [#allocation5], 4294967008  ;;  %v4349_v0 = vmov 0.0   ;;  %v1280_v1 = vld [vmem:[%s7400_s1 + $0x78] sm:$0xff]  ;;  %v1279_v3 = vld [vmem:[%s7400_s1 + $0x70] sm:$0xff]  ;;  %v743_v41 = vlaneseq  ;;  %vm3218_vm0 = vcmask 400384  }
  0x43   : > { %1553 = vmatprep.subr.mxu0 %v4349_v0  ;;  %1738 = vmatprep.subr.mxu1 %v4349_v0  ;;  %v1312_v2 = vld [vmem:[%s7400_s1 + $0x178] sm:$0xff]  ;;  %v1311_v4 = vld [vmem:[%s7400_s1 + $0x170] sm:$0xff]  ;;  %v1278_v5 = vld [vmem:[%s7400_s1 + $0x68] sm:$0xff] }
  0x44   : > { %1554 = vmatpush1.msra.mxu0 %v1280_v1  ;;  %1739 = vmatpush1.msra.mxu1 %v1312_v2  ;;  %v1310_v6 = vld [vmem:[%s7400_s1 + $0x168] sm:$0xff]  ;;  %v1277_v7 = vld [vmem:[%s7400_s1 + $0x60] sm:$0xff]  ;;  %v1276_v9 = vld [vmem:[%s7400_s1 + $0x58] sm:$0xff]  ;;  %v4674_v46 = vshrl.u32 %v743_v41, 7 }
  0x45   : > { %1555 = vmatprep.subr.mxu0 %v4349_v0  ;;  %1740 = vmatprep.subr.mxu1 %v4349_v0  ;;  %v1309_v8 = vld [vmem:[%s7400_s1 + $0x160] sm:$0xff]  ;;  %v1308_v10 = vld [vmem:[%s7400_s1 + $0x158] sm:$0xff]  ;;  %v1275_v11 = vld [vmem:[%s7400_s1 + $0x50] sm:$0xff] }
  0x46   : > { %1556 = vmatpush1.msra.mxu0 %v1279_v3  ;;  %1741 = vmatpush1.msra.mxu1 %v1311_v4  ;;  %v1307_v12 = vld [vmem:[%s7400_s1 + $0x150] sm:$0xff]  ;;  %v1274_v13 = vld [vmem:[%s7400_s1 + $0x48] sm:$0xff]  ;;  %v1273_v15 = vld [vmem:[%s7400_s1 + $0x40] sm:$0xff]  ;;  %v761_v49 = vsub.s32 4, %v4674_v46  ;;  %v769_v50 = vsub.s32 6, %v4674_v46  ;;  %v4727_v62 = vsub.s32 1, %v4674_v46 }
  0x47   : > { %1557 = vmatprep.subr.mxu0 %v4349_v0  ;;  %1742 = vmatprep.subr.mxu1 %v4349_v0  ;;  %v1306_v14 = vld [vmem:[%s7400_s1 + $0x148] sm:$0xff]  ;;  %v1305_v16 = vld [vmem:[%s7400_s1 + $0x140] sm:$0xff]  ;;  %v1272_v17 = vld [vmem:[%s7400_s1 + $0x38] sm:$0xff]  ;;  %v757_v2 = vsub.s32 3, %v4674_v46  ;;  %v4739_v3 = vsub.s32 0, %v4674_v46  ;;  %v753_v4 = vsub.s32 2, %v4674_v46 }
  0x48   : > { %1558 = vmatpush1.msra.mxu0 %v1278_v5  ;;  %1743 = vmatpush1.msra.mxu1 %v1310_v6  ;;  %v1304_v18 = vld [vmem:[%s7400_s1 + $0x138] sm:$0xff]  ;;  %v1271_v19 = vld [vmem:[%s7400_s1 + $0x30] sm:$0xff]  ;;  %v1270_v21 = vld [vmem:[%s7400_s1 + $0x28] sm:$0xff] }
  0x49   : > { %1559 = vmatprep.subr.mxu0 %v4349_v0  ;;  %1744 = vmatprep.subr.mxu1 %v4349_v0  ;;  %v1303_v20 = vld [vmem:[%s7400_s1 + $0x130] sm:$0xff]  ;;  %v1302_v22 = vld [vmem:[%s7400_s1 + $0x128] sm:$0xff]  ;;  %v1269_v23 = vld [vmem:[%s7400_s1 + $0x20] sm:$0xff] }
  0x4a   : > { %1560 = vmatpush1.msra.mxu0 %v1277_v7  ;;  %1745 = vmatpush1.msra.mxu1 %v1309_v8  ;;  %v1301_v24 = vld [vmem:[%s7400_s1 + $0x120] sm:$0xff]  ;;  %v1268_v25 = vld [vmem:[%s7400_s1 + $0x18] sm:$0xff]  ;;  %v1267_v27 = vld [vmem:[%s7400_s1 + $0x10] sm:$0xff] }
  0x4b   : > { %1561 = vmatprep.subr.mxu0 %v4349_v0  ;;  %1746 = vmatprep.subr.mxu1 %v4349_v0  ;;  %v1300_v26 = vld [vmem:[%s7400_s1 + $0x118] sm:$0xff]  ;;  %v1299_v28 = vld [vmem:[%s7400_s1 + $0x110] sm:$0xff]  ;;  %v1266_v29 = vld [vmem:[%s7400_s1 + $0x8] sm:$0xff] }
  0x4c   : > { %1562 = vmatpush1.msra.mxu0 %v1276_v9  ;;  %1747 = vmatpush1.msra.mxu1 %v1308_v10  ;;  %v1298_v30 = vld [vmem:[%s7400_s1 + $0x108] sm:$0xff]  ;;  %v1265_v31 = vld [vmem:[%s7400_s1] sm:$0xff]  ;;  %v1296_v33 = vld [vmem:[%s7400_s1 + $0xf8] sm:$0xff] }
  0x4d   : > { %1563 = vmatprep.subr.mxu0 %v4349_v0  ;;  %1748 = vmatprep.subr.mxu1 %v4349_v0  ;;  %v1297_v32 = vld [vmem:[%s7400_s1 + $0x100] sm:$0xff]  ;;  %v1328_v34 = vld [vmem:[%s7400_s1 + $0x1f8] sm:$0xff]  ;;  %v1295_v35 = vld [vmem:[%s7400_s1 + $0xf0] sm:$0xff] }
  0x4e   : > { %1564 = vmatpush1.msra.mxu0 %v1275_v11  ;;  %1749 = vmatpush1.msra.mxu1 %v1307_v12  ;;  %v1327_v36 = vld [vmem:[%s7400_s1 + $0x1f0] sm:$0xff]  ;;  %v1294_v37 = vld [vmem:[%s7400_s1 + $0xe8] sm:$0xff]  ;;  %v1293_v39 = vld [vmem:[%s7400_s1 + $0xe0] sm:$0xff] }
  0x4f   : > { %1565 = vmatprep.subr.mxu0 %v4349_v0  ;;  %1750 = vmatprep.subr.mxu1 %v4349_v0  ;;  %v1326_v38 = vld [vmem:[%s7400_s1 + $0x1e8] sm:$0xff]  ;;  %v1325_v40 = vld [vmem:[%s7400_s1 + $0x1e0] sm:$0xff]  ;;  %v1292_v42 = vld [vmem:[%s7400_s1 + $0xd8] sm:$0xff] }
  0x50   : > { %1566 = vmatpush1.msra.mxu0 %v1274_v13  ;;  %1751 = vmatpush1.msra.mxu1 %v1306_v14  ;;  %v1324_v43 = vld [vmem:[%s7400_s1 + $0x1d8] sm:$0xff]  ;;  %v1291_v44 = vld [vmem:[%s7400_s1 + $0xd0] sm:$0xff]  ;;  %v1290_v47 = vld [vmem:[%s7400_s1 + $0xc8] sm:$0xff] }
  0x51   : > { %1567 = vmatprep.subr.mxu0 %v4349_v0  ;;  %1752 = vmatprep.subr.mxu1 %v4349_v0  ;;  %v1323_v45 = vld [vmem:[%s7400_s1 + $0x1d0] sm:$0xff]  ;;  %v1322_v48 = vld [vmem:[%s7400_s1 + $0x1c8] sm:$0xff]  ;;  %v1289_v51 = vld [vmem:[%s7400_s1 + $0xc0] sm:$0xff] }
  0x52   : > { %1568 = vmatpush1.msra.mxu0 %v1273_v15  ;;  %1753 = vmatpush1.msra.mxu1 %v1305_v16  ;;  %v1321_v52 = vld [vmem:[%s7400_s1 + $0x1c0] sm:$0xff]  ;;  %v1288_v54 = vld [vmem:[%s7400_s1 + $0xb8] sm:$0xff]  ;;  %v1287_v58 = vld [vmem:[%s7400_s1 + $0xb0] sm:$0xff] }
  0x53   : > { %1569 = vmatprep.subr.mxu0 %v4349_v0  ;;  %1754 = vmatprep.subr.mxu1 %v4349_v0  ;;  %v737_v53 = vld [vmem:[#allocation4] sm:$0xff]  ;;  %v1320_v55 = vld [vmem:[%s7400_s1 + $0x1b8] sm:$0xff]  ;;  %v1319_v59 = vld [vmem:[%s7400_s1 + $0x1b0] sm:$0xff] }
  0x54   : > { %1570 = vmatpush1.msra.mxu0 %v1272_v17  ;;  %1755 = vmatpush1.msra.mxu1 %v1304_v18  ;;  %v4704_v56 = vrot.slane %v737_v53, %v761_v49  ;;  %v4708_v57 = vrot.slane %v737_v53, %v769_v50  ;;  %v1286_v60 = vld [vmem:[%s7400_s1 + $0xa8] sm:$0xff]  ;;  %v1285_v63 = vld [vmem:[%s7400_s1 + $0xa0] sm:$0xff]  ;;  %v1284_v5 = vld [vmem:[%s7400_s1 + $0x98] sm:$0xff]  ;;  %v4751_v7 = vrot.slane %v737_v53, %v4727_v62 }
  0x55   : > { %1571 = vmatprep.subr.mxu0 %v4349_v0  ;;  %1756 = vmatprep.subr.mxu1 %v4349_v0  ;;  %v1318_v61 = vld [vmem:[%s7400_s1 + $0x1a8] sm:$0xff]  ;;  %v1317_v1 = vld [vmem:[%s7400_s1 + $0x1a0] sm:$0xff]  ;;  %v1316_v6 = vld [vmem:[%s7400_s1 + $0x198] sm:$0xff]  ;;  %v4764_v11 = vrot.slane %v737_v53, %v757_v2  ;;  %v4771_v14 = vrot.slane %v737_v53, %v4739_v3  ;;  %v4775_v15 = vrot.slane %v737_v53, %v753_v4 }
  0x56   : > { %1572 = vmatpush1.msra.mxu0 %v1271_v19  ;;  %1757 = vmatpush1.msra.mxu1 %v1303_v20  ;;  %v1283_v8 = vld [vmem:[%s7400_s1 + $0x90] sm:$0xff]  ;;  %v306_v10 = vld [vmem:[%s4490_s11 + $0x8] sm:$0xff]  ;;  %v308_v13 = vld [vmem:[%s4490_s11 + $0x18] sm:$0xff] }
  0x57   : > { %1573 = vmatprep.subr.mxu0 %v4349_v0  ;;  %1758 = vmatprep.subr.mxu1 %v4349_v0  ;;  %v1315_v9 = vld [vmem:[%s7400_s1 + $0x190] sm:$0xff]  ;;  %v1282_v12 = vld [vmem:[%s7400_s1 + $0x88] sm:$0xff]  ;;  %v305_v17 = vld [vmem:[%s4490_s11] sm:$0xff]  ;;  %v834_v19 = vmul.f32 %v4751_v7, %v306_v10 }
  0x58   : > { %1574 = vmatpush1.msra.mxu0 %v1270_v21  ;;  %1759 = vmatpush1.msra.mxu1 %v1302_v22  ;;  %v1314_v16 = vld [vmem:[%s7400_s1 + $0x188] sm:$0xff]  ;;  %v307_v18 = vld [vmem:[%s4490_s11 + $0x10] sm:$0xff]  ;;  %v324_v20 = vld [vmem:[%s4490_s11 + $0x98] sm:$0xff]  ;;  %v836_v22 = vmul.f32 %v4764_v11, %v308_v13 }
  0x59   : > { %1575 = vmatprep.subr.mxu0 %v4349_v0  ;;  %1760 = vmatprep.subr.mxu1 %v4349_v0  ;;  %v1281_v21 = vld [vmem:[%s7400_s1 + $0x80] sm:$0xff]  ;;  %v396_v13 = vld [vmem:[%s4490_s11 + $0x2d8] sm:$0xff] }
  0x5a   : > { %1576 = vmatpush1.msra.mxu0 %v1269_v23  ;;  %1761 = vmatpush1.msra.mxu1 %v1301_v24  ;;  %v326_v23 = vld [vmem:[%s4490_s11 + $0xa8] sm:$0xff]  ;;  %v1313_v24 = vld [vmem:[%s7400_s1 + $0x180] sm:$0xff] }
  0x5b   : > { %1577 = vmatprep.subr.mxu0 %v4349_v0  ;;  %1762 = vmatprep.subr.mxu1 %v4349_v0  ;;  %v1341_v53 = vld [vmem:[%s7400_s1 + $0x260] sm:$0xff] }
  0x5c   : > { %1578 = vmatpush1.msra.mxu0 %v1268_v25  ;;  %1763 = vmatpush1.msra.mxu1 %v1300_v26  ;;  %v833_v25 = vmul.f32 %v4771_v14, %v305_v17  ;;  %v835_v26 = vmul.f32 %v4775_v15, %v307_v18  ;;  %v398_v17 = vld [vmem:[%s4490_s11 + $0x2e8] sm:$0xff]  ;;  %v1339_v18 = vld [vmem:[%s7400_s1 + $0x250] sm:$0xff] }
  0x5d   : > { %1579 = vmatprep.subr.mxu0 %v4349_v0  ;;  %1764 = vmatprep.subr.mxu1 %v4349_v0 }
  0x5e   : > { %1580 = vmatpush1.msra.mxu0 %v1267_v27  ;;  %1765 = vmatpush1.msra.mxu1 %v1299_v28  ;;  %v852_v27 = vmul.f32 %v4751_v7, %v324_v20  ;;  %v323_v28 = vld [vmem:[%s4490_s11 + $0x90] sm:$0xff]  ;;  %v924_v20 = vmul.f32 %v4751_v7, %v396_v13 }
  0x5f   : > { %1581 = vmatprep.subr.mxu0 %v4349_v0  ;;  %1766 = vmatprep.subr.mxu1 %v4349_v0 }
  0x60   : > { %1582 = vmatpush1.msra.mxu0 %v1266_v29  ;;  %1767 = vmatpush1.msra.mxu1 %v1298_v30  ;;  %v325_v29 = vld [vmem:[%s4490_s11 + $0xa0] sm:$0xff]  ;;  %v854_v30 = vmul.f32 %v4764_v11, %v326_v23  ;;  %v926_v23 = vmul.f32 %v4764_v11, %v398_v17  ;;  %v1366_v17 = vld [vmem:[%s7400_s1 + $0x328] sm:$0xff] }
  0x61   : > { %1583 = vmatprep.subr.mxu0 %v4349_v0  ;;  %1768 = vmatprep.subr.mxu1 %v4349_v0 }
  0x62   : > { %1584 = vmatpush1.msra.mxu0 %v1265_v31  ;;  %1769 = vmatpush1.msra.mxu1 %v1297_v32  ;;  %v1344_v31 = vld [vmem:[%s7400_s1 + $0x278] sm:$0xff]  ;;  %v342_v32 = vld [vmem:[%s4490_s11 + $0x128] sm:$0xff] }
  0x63   : > { %1585 = vmatprep.subr.mxu0 %v4349_v0  ;;  %1770 = vmatprep.subr.mxu1 %v4349_v0 }
  0x64   : > { %1586 = vmatpush2.msra.mxu0 %v1296_v33  ;;  %1771 = vmatpush2.msra.mxu1 %v1328_v34  ;;  %v851_v33 = vmul.f32 %v4771_v14, %v323_v28  ;;  %v853_v34 = vmul.f32 %v4775_v15, %v325_v29  ;;  %v416_v28 = vld [vmem:[%s4490_s11 + $0x378] sm:$0xff]  ;;  %v413_v29 = vld [vmem:[%s4490_s11 + $0x360] sm:$0xff] }
  0x65   : > { %1587 = vmatprep.subr.mxu0 %v4349_v0  ;;  %1772 = vmatprep.subr.mxu1 %v4349_v0 }
  0x66   : > { %1588 = vmatpush2.msra.mxu0 %v1295_v35  ;;  %1773 = vmatpush2.msra.mxu1 %v1327_v36  ;;  %v344_v35 = vld [vmem:[%s4490_s11 + $0x138] sm:$0xff]  ;;  %v341_v36 = vld [vmem:[%s4490_s11 + $0x120] sm:$0xff] }
  0x67   : > { %1589 = vmatprep.subr.mxu0 %v4349_v0  ;;  %1774 = vmatprep.subr.mxu1 %v4349_v0  ;;  %v872_v41 = vmul.f32 %v4764_v11, %v344_v35  ;;  %v1370_v35 = vld [vmem:[%s7400_s1 + $0x348] sm:$0xff] }
  0x68   : > { %1590 = vmatpush2.msra.mxu0 %v1294_v37  ;;  %1775 = vmatpush2.msra.mxu1 %v1326_v38  ;;  %v1343_v37 = vld [vmem:[%s7400_s1 + $0x270] sm:$0xff]  ;;  %v1376_v38 = vld [vmem:[%s7400_s1 + $0x378] sm:$0xff] }
  0x69   : > { %1591 = vmatprep.subr.mxu0 %v4349_v0  ;;  %1776 = vmatprep.subr.mxu1 %v4349_v0 }
  0x6a   : > { %1592 = vmatpush2.msra.mxu0 %v1293_v39  ;;  %1777 = vmatpush2.msra.mxu1 %v1325_v40  ;;  %v870_v39 = vmul.f32 %v4751_v7, %v342_v32  ;;  %v343_v40 = vld [vmem:[%s4490_s11 + $0x130] sm:$0xff]  ;;  %v1337_v32 = vld [vmem:[%s7400_s1 + $0x240] sm:$0xff] }
  0x6b   : > { %1593 = vmatprep.subr.mxu0 %v4349_v0  ;;  %1778 = vmatprep.subr.mxu1 %v4349_v0 }
  0x6c   : > { %1594 = vmatpush2.msra.mxu0 %v1292_v42  ;;  %1779 = vmatpush2.msra.mxu1 %v1324_v43  ;;  %v1342_v42 = vld [vmem:[%s7400_s1 + $0x268] sm:$0xff]  ;;  %v869_v43 = vmul.f32 %v4771_v14, %v341_v36  ;;  %v941_v36 = vmul.f32 %v4771_v14, %v413_v29  ;;  %v504_v29 = vld [vmem:[%s4490_s11 + $0x638] sm:$0xff] }
  0x6d   : > { %1595 = vmatprep.subr.mxu0 %v4349_v0  ;;  %1780 = vmatprep.subr.mxu1 %v4349_v0 }
  0x6e   : > { %1596 = vmatpush2.msra.mxu0 %v1291_v44  ;;  %1781 = vmatpush2.msra.mxu1 %v1323_v45  ;;  %v360_v44 = vld [vmem:[%s4490_s11 + $0x1b8] sm:$0xff]  ;;  %v871_v45 = vmul.f32 %v4775_v15, %v343_v40  ;;  %v431_v40 = vld [vmem:[%s4490_s11 + $0x3f0] sm:$0xff] }
  0x6f   : > { %1597 = vmatprep.subr.mxu0 %v4349_v0  ;;  %1782 = vmatprep.subr.mxu1 %v4349_v0 }
  0x70   : > { %1598 = vmatpush2.msra.mxu0 %v1290_v47  ;;  %1783 = vmatpush2.msra.mxu1 %v1322_v48  ;;  %v362_v47 = vld [vmem:[%s4490_s11 + $0x1c8] sm:$0xff]  ;;  %v359_v48 = vld [vmem:[%s4490_s11 + $0x1b0] sm:$0xff] }
  0x71   : > { %1599 = vmatprep.subr.mxu0 %v4349_v0  ;;  %1784 = vmatprep.subr.mxu1 %v4349_v0 }
  0x72   : > { %1600 = vmatpush2.msra.mxu0 %v1289_v51  ;;  %1785 = vmatpush2.msra.mxu1 %v1321_v52  ;;  %v361_v51 = vld [vmem:[%s4490_s11 + $0x1c0] sm:$0xff]  ;;  %v1375_v52 = vld [vmem:[%s7400_s1 + $0x370] sm:$0xff] }
  0x73   : > { %1601 = vmatprep.subr.mxu0 %v4349_v0  ;;  %1786 = vmatprep.subr.mxu1 %v4349_v0 }
  0x74   : > { %1602 = vmatpush2.msra.mxu0 %v1288_v54  ;;  %1787 = vmatpush2.msra.mxu1 %v1320_v55  ;;  %v888_v54 = vmul.f32 %v4751_v7, %v360_v44  ;;  %v890_v55 = vmul.f32 %v4764_v11, %v362_v47  ;;  %v959_v47 = vmul.f32 %v4771_v14, %v431_v40  ;;  %v522_v40 = vld [vmem:[%s4490_s11 + $0x6c8] sm:$0xff] }
  0x75   : > { %1603 = vmatprep.subr.mxu0 %v4349_v0  ;;  %1788 = vmatprep.subr.mxu1 %v4349_v0 }
  0x76   : > { %1604 = vmatpush2.msra.mxu0 %v1287_v58  ;;  %1789 = vmatpush2.msra.mxu1 %v1319_v59  ;;  %v1374_v58 = vld [vmem:[%s7400_s1 + $0x368] sm:$0xff]  ;;  %v887_v59 = vmul.f32 %v4771_v14, %v359_v48 }
  0x77   : > { %1605 = vmatprep.subr.mxu0 %v4349_v0  ;;  %1790 = vmatprep.subr.mxu1 %v4349_v0  ;;  %v450_v48 = vld [vmem:[%s4490_s11 + $0x488] sm:$0xff] }
  0x78   : > { %1606 = vmatpush2.msra.mxu0 %v1286_v60  ;;  %1791 = vmatpush2.msra.mxu1 %v1318_v61  ;;  %v889_v60 = vmul.f32 %v4775_v15, %v361_v51  ;;  %v378_v61 = vld [vmem:[%s4490_s11 + $0x248] sm:$0xff] }
  0x79   : > { %1607 = vmatprep.subr.mxu0 %v4349_v0  ;;  %1792 = vmatprep.subr.mxu1 %v4349_v0 }
  0x7a   : > { %1608 = vmatpush2.msra.mxu0 %v1285_v63  ;;  %1793 = vmatpush2.msra.mxu1 %v1317_v1  ;;  %v380_v63 = vld [vmem:[%s4490_s11 + $0x258] sm:$0xff]  ;;  %v377_v1 = vld [vmem:[%s4490_s11 + $0x240] sm:$0xff] }
  0x7b   : > { %1609 = vmatprep.subr.mxu0 %v4349_v0  ;;  %1794 = vmatprep.subr.mxu1 %v4349_v0  ;;  %v908_v10 = vmul.f32 %v4764_v11, %v380_v63 }
  0x7c   : > { %1610 = vmatpush2.msra.mxu0 %v1284_v5  ;;  %1795 = vmatpush2.msra.mxu1 %v1316_v6  ;;  %v379_v5 = vld [vmem:[%s4490_s11 + $0x250] sm:$0xff]  ;;  %v1340_v6 = vld [vmem:[%s7400_s1 + $0x258] sm:$0xff] }
  0x7d   : > { %1611 = vmatprep.subr.mxu0 %v4349_v0  ;;  %1796 = vmatprep.subr.mxu1 %v4349_v0 }
  0x7e   : > { %1612 = vmatpush2.msra.mxu0 %v1283_v8  ;;  %1797 = vmatpush2.msra.mxu1 %v1315_v9  ;;  %v1373_v8 = vld [vmem:[%s7400_s1 + $0x360] sm:$0xff]  ;;  %v906_v9 = vmul.f32 %v4751_v7, %v378_v61  ;;  %v1334_v61 = vld [vmem:[%s7400_s1 + $0x228] sm:$0xff] }
  0x7f   : > { %1613 = vmatprep.subr.mxu0 %v4349_v0  ;;  %1798 = vmatprep.subr.mxu1 %v4349_v0 }
  0x80   : > { %1614 = vmatpush2.msra.mxu0 %v1282_v12  ;;  %1799 = vmatpush2.msra.mxu1 %v1314_v16  ;;  %v905_v12 = vmul.f32 %v4771_v14, %v377_v1  ;;  %v907_v16 = vmul.f32 %v4775_v15, %v379_v5  ;;  %v468_v1 = vld [vmem:[%s4490_s11 + $0x518] sm:$0xff] }
  0x81   : > { %1615 = vmatprep.subr.mxu0 %v4349_v0  ;;  %1800 = vmatprep.subr.mxu1 %v4349_v0  ;;  %v996_v13 = vmul.f32 %v4751_v7, %v468_v1 }
  0x82   : > { %1616 = vmatpush2.msra.mxu0 %v1281_v21  ;;  %1617 = vmatprep.mubr.f32.mxu0 %v834_v19  ;;  %v395_v19 = vld [vmem:[%s4490_s11 + $0x2d0] sm:$0xff]  ;;  %v397_v21 = vld [vmem:[%s4490_s11 + $0x2e0] sm:$0xff] }
  0x83   : > { %1801 = vmatpush2.msra.mxu1 %v1313_v24  ;;  %1802 = vmatprep.mubr.f32.mxu1 %v836_v22  ;;  %v1372_v22 = vld [vmem:[%s7400_s1 + $0x358] sm:$0xff]  ;;  %v1338_v24 = vld [vmem:[%s7400_s1 + $0x248] sm:$0xff] }
  0x84   : > { %1618 = vmatmul.mubr.f32.vlgmr.msra.gmra.mxu0 %v833_v25  ;;  %1803 = vmatmul.mubr.f32.vlgmr.msra.gmra.mxu1 %v835_v26  ;;  %v923_v25 = vmul.f32 %v4771_v14, %v395_v19  ;;  %v414_v26 = vld [vmem:[%s4490_s11 + $0x368] sm:$0xff] }
  0x85   : > { %1923 = vmatprep.subr.mxu0 %v4349_v0  ;;  %1622 = vmatprep.mubr.f32.mxu0 %v852_v27  ;;  %v925_v27 = vmul.f32 %v4775_v15, %v397_v21  ;;  %v488_v21 = vld [vmem:[%s4490_s11 + $0x5b8] sm:$0xff] }
  0x86   : > { %1924 = vmatpush1.msra.mxu0 %v1344_v31  ;;  %1807 = vmatprep.mubr.f32.mxu1 %v854_v30  ;;  %v415_v30 = vld [vmem:[%s4490_s11 + $0x370] sm:$0xff] }
  0x87   : > { %1925 = vmatprep.subr.mxu0 %v4349_v0  ;;  %2108 = vmatprep.subr.mxu1 %v4349_v0  ;;  %v1371_v31 = vld [vmem:[%s7400_s1 + $0x350] sm:$0xff] }
  0x88   : > { %1623 = vmatmul.mubr.f32.gmra.mxu0 %v851_v33  ;;  %1808 = vmatmul.mubr.f32.gmra.mxu1 %v853_v34  ;;  %v942_v33 = vmul.f32 %v4751_v7, %v414_v26  ;;  %v944_v34 = vmul.f32 %v4764_v11, %v416_v28 }
  0x89   : > { %1926 = vmatpush1.msra.mxu0 %v1343_v37  ;;  %2109 = vmatpush1.msra.mxu1 %v1376_v38  ;;  %v943_v37 = vmul.f32 %v4775_v15, %v415_v30  ;;  %v432_v38 = vld [vmem:[%s4490_s11 + $0x3f8] sm:$0xff] }
  0x8a   : > { %1927 = vmatprep.subr.mxu0 %v4349_v0  ;;  %1627 = vmatprep.mubr.f32.mxu0 %v870_v39  ;;  %v434_v39 = vld [vmem:[%s4490_s11 + $0x408] sm:$0xff]  ;;  %v960_v44 = vmul.f32 %v4751_v7, %v432_v38 }
  0x8b   : > { %1812 = vmatprep.mubr.f32.mxu1 %v872_v41  ;;  %1928 = vmatpush1.msra.mxu0 %v1342_v42  ;;  %v433_v41 = vld [vmem:[%s4490_s11 + $0x400] sm:$0xff]  ;;  %v1336_v42 = vld [vmem:[%s7400_s1 + $0x238] sm:$0xff]  ;;  %v1330_v38 = vld [vmem:[%s7400_s1 + $0x208] sm:$0xff] }
  0x8c   : > { %2110 = vmatprep.subr.mxu1 %v4349_v0  ;;  %1628 = vmatmul.mubr.f32.gmra.mxu0 %v869_v43  ;;  %v1369_v43 = vld [vmem:[%s7400_s1 + $0x340] sm:$0xff]  ;;  %v961_v51 = vmul.f32 %v4775_v15, %v433_v41 }
  0x8d   : > { %1813 = vmatmul.mubr.f32.gmra.mxu1 %v871_v45  ;;  %1929 = vmatprep.subr.mxu0 %v4349_v0  ;;  %v962_v45 = vmul.f32 %v4764_v11, %v434_v39 }
  0x8e   : > { %2111 = vmatpush1.msra.mxu1 %v1375_v52  ;;  %1930 = vmatpush1.msra.mxu0 %v1341_v53  ;;  %v452_v52 = vld [vmem:[%s4490_s11 + $0x498] sm:$0xff]  ;;  %v1335_v53 = vld [vmem:[%s7400_s1 + $0x230] sm:$0xff] }
  0x8f   : > { %2112 = vmatprep.subr.mxu1 %v4349_v0  ;;  %1632 = vmatprep.mubr.f32.mxu0 %v888_v54  ;;  %v449_v54 = vld [vmem:[%s4490_s11 + $0x480] sm:$0xff] }
  0x90   : > { %1817 = vmatprep.mubr.f32.mxu1 %v890_v55  ;;  %2113 = vmatpush1.msra.mxu1 %v1374_v58  ;;  %v978_v55 = vmul.f32 %v4751_v7, %v450_v48  ;;  %v451_v58 = vld [vmem:[%s4490_s11 + $0x490] sm:$0xff]  ;;  %v977_v63 = vmul.f32 %v4771_v14, %v449_v54  ;;  %v1050_v48 = vmul.f32 %v4751_v7, %v522_v40 }
  0x91   : > { %1633 = vmatmul.mubr.f32.gmra.mxu0 %v887_v59  ;;  %1818 = vmatmul.mubr.f32.gmra.mxu1 %v889_v60  ;;  %v1368_v59 = vld [vmem:[%s7400_s1 + $0x338] sm:$0xff]  ;;  %v980_v60 = vmul.f32 %v4764_v11, %v452_v52  ;;  %v979_v5 = vmul.f32 %v4775_v15, %v451_v58  ;;  %v1362_v52 = vld [vmem:[%s7400_s1 + $0x308] sm:$0xff] }
  0x92   : > { %1931 = vmatprep.subr.mxu0 %v4349_v0  ;;  %2114 = vmatprep.subr.mxu1 %v4349_v0  ;;  %v542_v58 = vld [vmem:[%s4490_s11 + $0x768] sm:$0xff] }
  0x93   : > { %1932 = vmatpush1.msra.mxu0 %v1340_v6  ;;  %2115 = vmatpush1.msra.mxu1 %v1373_v8  ;;  %v470_v6 = vld [vmem:[%s4490_s11 + $0x528] sm:$0xff]  ;;  %v467_v8 = vld [vmem:[%s4490_s11 + $0x510] sm:$0xff] }
  0x94   : > { %1637 = vmatprep.mubr.f32.mxu0 %v906_v9  ;;  %1822 = vmatprep.mubr.f32.mxu1 %v908_v10  ;;  %v469_v9 = vld [vmem:[%s4490_s11 + $0x520] sm:$0xff]  ;;  %v1367_v10 = vld [vmem:[%s7400_s1 + $0x330] sm:$0xff] }
  0x95   : > { %1933 = vmatprep.subr.mxu0 %v4349_v0  ;;  %1638 = vmatmul.mubr.f32.gmra.mxu0 %v905_v12  ;;  %v1333_v12 = vld [vmem:[%s7400_s1 + $0x220] sm:$0xff]  ;;  %v997_v19 = vmul.f32 %v4775_v15, %v469_v9 }
  0x96   : > { %1823 = vmatmul.mubr.f32.gmra.mxu1 %v907_v16  ;;  %1934 = vmatpush1.msra.mxu0 %v1339_v18  ;;  %v998_v16 = vmul.f32 %v4764_v11, %v470_v6  ;;  %v995_v18 = vmul.f32 %v4771_v14, %v467_v8  ;;  %v558_v8 = vld [vmem:[%s4490_s11 + $0x7e8] sm:$0xff] }
  0x97   : > { %2116 = vmatprep.subr.mxu1 %v4349_v0  ;;  %1935 = vmatprep.subr.mxu0 %v4349_v0 }
  0x98   : > { %2117 = vmatpush1.msra.mxu1 %v1372_v22  ;;  %1642 = vmatprep.mubr.f32.mxu0 %v924_v20  ;;  %v486_v20 = vld [vmem:[%s4490_s11 + $0x5a8] sm:$0xff]  ;;  %v485_v22 = vld [vmem:[%s4490_s11 + $0x5a0] sm:$0xff] }
  0x99   : > { %1827 = vmatprep.mubr.f32.mxu1 %v926_v23  ;;  %1936 = vmatpush1.msra.mxu0 %v1338_v24  ;;  %v487_v23 = vld [vmem:[%s4490_s11 + $0x5b0] sm:$0xff]  ;;  %v1332_v24 = vld [vmem:[%s7400_s1 + $0x218] sm:$0xff]  ;;  %v1014_v26 = vmul.f32 %v4751_v7, %v486_v20  ;;  %v1013_v28 = vmul.f32 %v4771_v14, %v485_v22  ;;  %v1358_v20 = vld [vmem:[%s7400_s1 + $0x2e8] sm:$0xff] }
  0x9a   : > { %2118 = vmatprep.subr.mxu1 %v4349_v0  ;;  %1643 = vmatmul.mubr.f32.gmra.mxu0 %v923_v25  ;;  %v1365_v25 = vld [vmem:[%s7400_s1 + $0x320] sm:$0xff]  ;;  %v1015_v30 = vmul.f32 %v4775_v15, %v487_v23  ;;  %v576_v22 = vld [vmem:[%s4490_s11 + $0x878] sm:$0xff] }
  0x9b   : > { %1828 = vmatmul.mubr.f32.gmra.mxu1 %v925_v27  ;;  %1937 = vmatprep.subr.mxu0 %v4349_v0  ;;  %v1016_v27 = vmul.f32 %v4764_v11, %v488_v21 }
  0x9c   : > { %2119 = vmatpush1.msra.mxu1 %v1371_v31  ;;  %1938 = vmatpush1.msra.mxu0 %v1337_v32  ;;  %v506_v31 = vld [vmem:[%s4490_s11 + $0x648] sm:$0xff]  ;;  %v1331_v32 = vld [vmem:[%s7400_s1 + $0x210] sm:$0xff] }
  0x9d   : > { %2120 = vmatprep.subr.mxu1 %v4349_v0  ;;  %1647 = vmatprep.mubr.f32.mxu0 %v942_v33  ;;  %v503_v33 = vld [vmem:[%s4490_s11 + $0x630] sm:$0xff] }
  0x9e   : > { %1832 = vmatprep.mubr.f32.mxu1 %v944_v34  ;;  %2121 = vmatpush1.msra.mxu1 %v1370_v35  ;;  %v1032_v34 = vmul.f32 %v4751_v7, %v504_v29  ;;  %v505_v35 = vld [vmem:[%s4490_s11 + $0x640] sm:$0xff]  ;;  %v1031_v39 = vmul.f32 %v4771_v14, %v503_v33  ;;  %v1104_v29 = vmul.f32 %v4751_v7, %v576_v22 }
  0x9f   : > { %1648 = vmatmul.mubr.f32.gmra.mxu0 %v941_v36  ;;  %1833 = vmatmul.mubr.f32.gmra.mxu1 %v943_v37  ;;  %v1364_v36 = vld [vmem:[%s7400_s1 + $0x318] sm:$0xff]  ;;  %v1034_v37 = vmul.f32 %v4764_v11, %v506_v31  ;;  %v1033_v41 = vmul.f32 %v4775_v15, %v505_v35  ;;  %v1390_v31 = vld [vmem:[%s7400_s1 + $0x3e8] sm:$0xff] }
  0xa0   : > { %1939 = vmatprep.subr.mxu0 %v4349_v0  ;;  %2122 = vmatprep.subr.mxu1 %v4349_v0  ;;  %v596_v35 = vld [vmem:[%s4490_s11 + $0x918] sm:$0xff] }
  0xa1   : > { %1940 = vmatpush1.msra.mxu0 %v1336_v42  ;;  %2123 = vmatpush1.msra.mxu1 %v1369_v43  ;;  %v524_v42 = vld [vmem:[%s4490_s11 + $0x6d8] sm:$0xff]  ;;  %v521_v43 = vld [vmem:[%s4490_s11 + $0x6c0] sm:$0xff] }
  0xa2   : > { %1652 = vmatprep.mubr.f32.mxu0 %v960_v44  ;;  %1837 = vmatprep.mubr.f32.mxu1 %v962_v45  ;;  %v523_v44 = vld [vmem:[%s4490_s11 + $0x6d0] sm:$0xff] }
  0xa3   : > { %1941 = vmatprep.subr.mxu0 %v4349_v0  ;;  %1653 = vmatmul.mubr.f32.gmra.mxu0 %v959_v47  ;;  %v1363_v45 = vld [vmem:[%s7400_s1 + $0x310] sm:$0xff]  ;;  %v1329_v47 = vld [vmem:[%s7400_s1 + $0x200] sm:$0xff]  ;;  %v1051_v54 = vmul.f32 %v4775_v15, %v523_v44 }
  0xa4   : > { %1838 = vmatmul.mubr.f32.gmra.mxu1 %v961_v51  ;;  %1942 = vmatpush1.msra.mxu0 %v1335_v53  ;;  %v1052_v51 = vmul.f32 %v4764_v11, %v524_v42  ;;  %v1049_v53 = vmul.f32 %v4771_v14, %v521_v43  ;;  %v612_v43 = vld [vmem:[%s4490_s11 + $0x998] sm:$0xff] }
  0xa5   : > { %2124 = vmatprep.subr.mxu1 %v4349_v0  ;;  %1943 = vmatprep.subr.mxu0 %v4349_v0 }
  0xa6   : > { %2125 = vmatpush1.msra.mxu1 %v1368_v59  ;;  %1657 = vmatprep.mubr.f32.mxu0 %v978_v55  ;;  %v540_v55 = vld [vmem:[%s4490_s11 + $0x758] sm:$0xff]  ;;  %v539_v59 = vld [vmem:[%s4490_s11 + $0x750] sm:$0xff] }
  0xa7   : > { %1842 = vmatprep.mubr.f32.mxu1 %v980_v60  ;;  %1944 = vmatpush1.msra.mxu0 %v1334_v61  ;;  %v541_v60 = vld [vmem:[%s4490_s11 + $0x760] sm:$0xff]  ;;  %v1360_v61 = vld [vmem:[%s7400_s1 + $0x2f8] sm:$0xff]  ;;  %v1068_v1 = vmul.f32 %v4751_v7, %v540_v55  ;;  %v1067_v6 = vmul.f32 %v4771_v14, %v539_v59  ;;  %v1354_v55 = vld [vmem:[%s7400_s1 + $0x2c8] sm:$0xff] }
  0xa8   : > { %2126 = vmatprep.subr.mxu1 %v4349_v0  ;;  %1658 = vmatmul.mubr.f32.gmra.mxu0 %v977_v63  ;;  %v1361_v63 = vld [vmem:[%s7400_s1 + $0x300] sm:$0xff]  ;;  %v1069_v9 = vmul.f32 %v4775_v15, %v541_v60  ;;  %v630_v59 = vld [vmem:[%s4490_s11 + $0xa28] sm:$0xff] }
  0xa9   : > { %1843 = vmatmul.mubr.f32.gmra.mxu1 %v979_v5  ;;  %1945 = vmatprep.subr.mxu0 %v4349_v0  ;;  %v1070_v5 = vmul.f32 %v4764_v11, %v542_v58 }
  0xaa   : > { %2127 = vmatpush1.msra.mxu1 %v1367_v10  ;;  %1946 = vmatpush1.msra.mxu0 %v1333_v12  ;;  %v560_v10 = vld [vmem:[%s4490_s11 + $0x7f8] sm:$0xff]  ;;  %v1359_v12 = vld [vmem:[%s7400_s1 + $0x2f0] sm:$0xff] }
  0xab   : > { %2128 = vmatprep.subr.mxu1 %v4349_v0  ;;  %1662 = vmatprep.mubr.f32.mxu0 %v996_v13  ;;  %v557_v13 = vld [vmem:[%s4490_s11 + $0x7e0] sm:$0xff] }
  0xac   : > { %1847 = vmatprep.mubr.f32.mxu1 %v998_v16  ;;  %2129 = vmatpush1.msra.mxu1 %v1366_v17  ;;  %v1086_v16 = vmul.f32 %v4751_v7, %v558_v8  ;;  %v559_v17 = vld [vmem:[%s4490_s11 + $0x7f0] sm:$0xff]  ;;  %v1085_v21 = vmul.f32 %v4771_v14, %v557_v13  ;;  %v1158_v8 = vmul.f32 %v4751_v7, %v630_v59 }
  0xad   : > { %1663 = vmatmul.mubr.f32.gmra.mxu0 %v995_v18  ;;  %1848 = vmatmul.mubr.f32.gmra.mxu1 %v997_v19  ;;  %v1392_v18 = vld [vmem:[%s7400_s1 + $0x3f8] sm:$0xff]  ;;  %v1088_v19 = vmul.f32 %v4764_v11, %v560_v10  ;;  %v1087_v23 = vmul.f32 %v4775_v15, %v559_v17  ;;  %v1386_v10 = vld [vmem:[%s7400_s1 + $0x3c8] sm:$0xff] }
  0xae   : > { %1947 = vmatprep.subr.mxu0 %v4349_v0  ;;  %2130 = vmatprep.subr.mxu1 %v4349_v0  ;;  %v650_v17 = vld [vmem:[%s4490_s11 + $0xac8] sm:$0xff] }
  0xaf   : > { %1948 = vmatpush1.msra.mxu0 %v1332_v24  ;;  %2131 = vmatpush1.msra.mxu1 %v1365_v25  ;;  %v578_v24 = vld [vmem:[%s4490_s11 + $0x888] sm:$0xff]  ;;  %v575_v25 = vld [vmem:[%s4490_s11 + $0x870] sm:$0xff] }
  0xb0   : > { %1667 = vmatprep.mubr.f32.mxu0 %v1014_v26  ;;  %1852 = vmatprep.mubr.f32.mxu1 %v1016_v27  ;;  %v577_v26 = vld [vmem:[%s4490_s11 + $0x880] sm:$0xff]  ;;  %v1391_v27 = vld [vmem:[%s7400_s1 + $0x3f0] sm:$0xff] }
  0xb1   : > { %1949 = vmatprep.subr.mxu0 %v4349_v0  ;;  %1668 = vmatmul.mubr.f32.gmra.mxu0 %v1013_v28  ;;  %v1357_v28 = vld [vmem:[%s7400_s1 + $0x2e0] sm:$0xff]  ;;  %v1105_v33 = vmul.f32 %v4775_v15, %v577_v26 }
  0xb2   : > { %1853 = vmatmul.mubr.f32.gmra.mxu1 %v1015_v30  ;;  %1950 = vmatpush1.msra.mxu0 %v1331_v32  ;;  %v1106_v30 = vmul.f32 %v4764_v11, %v578_v24  ;;  %v1103_v32 = vmul.f32 %v4771_v14, %v575_v25  ;;  %v666_v25 = vld [vmem:[%s4490_s11 + $0xb48] sm:$0xff] }
  0xb3   : > { %2132 = vmatprep.subr.mxu1 %v4349_v0  ;;  %1951 = vmatprep.subr.mxu0 %v4349_v0 }
  0xb4   : > { %2133 = vmatpush1.msra.mxu1 %v1364_v36  ;;  %1672 = vmatprep.mubr.f32.mxu0 %v1032_v34  ;;  %v594_v34 = vld [vmem:[%s4490_s11 + $0x908] sm:$0xff]  ;;  %v593_v36 = vld [vmem:[%s4490_s11 + $0x900] sm:$0xff] }
  0xb5   : > { %1857 = vmatprep.mubr.f32.mxu1 %v1034_v37  ;;  %1952 = vmatpush1.msra.mxu0 %v1330_v38  ;;  %v595_v37 = vld [vmem:[%s4490_s11 + $0x910] sm:$0xff]  ;;  %v1356_v38 = vld [vmem:[%s7400_s1 + $0x2d8] sm:$0xff]  ;;  %v1122_v40 = vmul.f32 %v4751_v7, %v594_v34  ;;  %v1121_v42 = vmul.f32 %v4771_v14, %v593_v36  ;;  %v1350_v34 = vld [vmem:[%s7400_s1 + $0x2a8] sm:$0xff] }
  0xb6   : > { %2134 = vmatprep.subr.mxu1 %v4349_v0  ;;  %1673 = vmatmul.mubr.f32.gmra.mxu0 %v1031_v39  ;;  %v1389_v39 = vld [vmem:[%s7400_s1 + $0x3e0] sm:$0xff]  ;;  %v1123_v44 = vmul.f32 %v4775_v15, %v595_v37  ;;  %v684_v36 = vld [vmem:[%s4490_s11 + $0xbd8] sm:$0xff] }
  0xb7   : > { %1858 = vmatmul.mubr.f32.gmra.mxu1 %v1033_v41  ;;  %1953 = vmatprep.subr.mxu0 %v4349_v0  ;;  %v1124_v41 = vmul.f32 %v4764_v11, %v596_v35 }
  0xb8   : > { %2135 = vmatpush1.msra.mxu1 %v1363_v45  ;;  %1954 = vmatpush1.msra.mxu0 %v1329_v47  ;;  %v614_v45 = vld [vmem:[%s4490_s11 + $0x9a8] sm:$0xff]  ;;  %v1355_v47 = vld [vmem:[%s7400_s1 + $0x2d0] sm:$0xff] }
  0xb9   : > { %2136 = vmatprep.subr.mxu1 %v4349_v0  ;;  %1677 = vmatprep.mubr.f32.mxu0 %v1050_v48  ;;  %v611_v48 = vld [vmem:[%s4490_s11 + $0x990] sm:$0xff] }
  0xba   : > { %1862 = vmatprep.mubr.f32.mxu1 %v1052_v51  ;;  %2137 = vmatpush1.msra.mxu1 %v1362_v52  ;;  %v1140_v51 = vmul.f32 %v4751_v7, %v612_v43  ;;  %v613_v52 = vld [vmem:[%s4490_s11 + $0x9a0] sm:$0xff]  ;;  %v1139_v58 = vmul.f32 %v4771_v14, %v611_v48  ;;  %v1212_v43 = vmul.f32 %v4751_v7, %v684_v36 }
  0xbb   : > { %1678 = vmatmul.mubr.f32.gmra.mxu0 %v1049_v53  ;;  %1863 = vmatmul.mubr.f32.gmra.mxu1 %v1051_v54  ;;  %v1388_v53 = vld [vmem:[%s7400_s1 + $0x3d8] sm:$0xff]  ;;  %v1142_v54 = vmul.f32 %v4764_v11, %v614_v45  ;;  %v1141_v60 = vmul.f32 %v4775_v15, %v613_v52  ;;  %v1382_v45 = vld [vmem:[%s7400_s1 + $0x3a8] sm:$0xff]  ;;  %v329_v36 = vld [vmem:[%s4490_s11 + $0xc0] sm:$0xff] }
  0xbc   : > { %1955 = vmatprep.subr.mxu0 %v4349_v0  ;;  %2138 = vmatprep.subr.mxu1 %v4349_v0  ;;  %v704_v52 = vld [vmem:[%s4490_s11 + $0xc78] sm:$0xff] }
  0xbd   : > { %1956 = vmatpush2.msra.mxu0 %v1360_v61  ;;  %2139 = vmatpush1.msra.mxu1 %v1361_v63  ;;  %v632_v61 = vld [vmem:[%s4490_s11 + $0xa38] sm:$0xff]  ;;  %v629_v63 = vld [vmem:[%s4490_s11 + $0xa20] sm:$0xff] }
  0xbe   : > { %1682 = vmatprep.mubr.f32.mxu0 %v1068_v1  ;;  %1867 = vmatprep.mubr.f32.mxu1 %v1070_v5  ;;  %v631_v1 = vld [vmem:[%s4490_s11 + $0xa30] sm:$0xff] }
  0xbf   : > { %1957 = vmatprep.subr.mxu0 %v4349_v0  ;;  %1683 = vmatmul.mubr.f32.gmra.mxu0 %v1067_v6  ;;  %v1387_v5 = vld [vmem:[%s7400_s1 + $0x3d0] sm:$0xff]  ;;  %v1353_v6 = vld [vmem:[%s7400_s1 + $0x2c0] sm:$0xff]  ;;  %v1159_v13 = vmul.f32 %v4775_v15, %v631_v1 }
  0xc0   : > { %1868 = vmatmul.mubr.f32.gmra.mxu1 %v1069_v9  ;;  %1958 = vmatpush2.msra.mxu0 %v1359_v12  ;;  %v1160_v9 = vmul.f32 %v4764_v11, %v632_v61  ;;  %v1157_v12 = vmul.f32 %v4771_v14, %v629_v63  ;;  %v720_v63 = vld [vmem:[%s4490_s11 + $0xcf8] sm:$0xff] }
  0xc1   : > { %2140 = vmatprep.subr.mxu1 %v4349_v0  ;;  %1959 = vmatprep.subr.mxu0 %v4349_v0 }
  0xc2   : > { %2141 = vmatpush2.msra.mxu1 %v1392_v18  ;;  %1687 = vmatprep.mubr.f32.mxu0 %v1086_v16  ;;  %v648_v16 = vld [vmem:[%s4490_s11 + $0xab8] sm:$0xff]  ;;  %v647_v18 = vld [vmem:[%s4490_s11 + $0xab0] sm:$0xff] }
  0xc3   : > { %1872 = vmatprep.mubr.f32.mxu1 %v1088_v19  ;;  %1960 = vmatpush2.msra.mxu0 %v1358_v20  ;;  %v649_v19 = vld [vmem:[%s4490_s11 + $0xac0] sm:$0xff]  ;;  %v1352_v20 = vld [vmem:[%s7400_s1 + $0x2b8] sm:$0xff]  ;;  %v1176_v22 = vmul.f32 %v4751_v7, %v648_v16  ;;  %v1175_v24 = vmul.f32 %v4771_v14, %v647_v18 }
  0xc4   : > { %2142 = vmatprep.subr.mxu1 %v4349_v0  ;;  %1688 = vmatmul.mubr.f32.gmra.mxu0 %v1085_v21  ;;  %v1385_v21 = vld [vmem:[%s7400_s1 + $0x3c0] sm:$0xff]  ;;  %v1177_v26 = vmul.f32 %v4775_v15, %v649_v19  ;;  %v1380_v16 = vld [vmem:[%s7400_s1 + $0x398] sm:$0xff]  ;;  %v1346_v19 = vld [vmem:[%s7400_s1 + $0x288] sm:$0xff] }
  0xc5   : > { %1873 = vmatmul.mubr.f32.gmra.mxu1 %v1087_v23  ;;  %1961 = vmatprep.subr.mxu0 %v4349_v0  ;;  %v1178_v23 = vmul.f32 %v4764_v11, %v650_v17  ;;  %v4249_v18 = vld [vmem:[#allocation4] sm:$0xff] }
  0xc6   : > { %2143 = vmatpush2.msra.mxu1 %v1391_v27  ;;  %1962 = vmatpush2.msra.mxu0 %v1357_v28  ;;  %v668_v27 = vld [vmem:[%s4490_s11 + $0xb58] sm:$0xff]  ;;  %v1351_v28 = vld [vmem:[%s7400_s1 + $0x2b0] sm:$0xff] }
  0xc7   : > { %2144 = vmatprep.subr.mxu1 %v4349_v0  ;;  %1692 = vmatprep.mubr.f32.mxu0 %v1104_v29  ;;  %v665_v29 = vld [vmem:[%s4490_s11 + $0xb40] sm:$0xff] }
  0xc8   : > { %1877 = vmatprep.mubr.f32.mxu1 %v1106_v30  ;;  %2145 = vmatpush2.msra.mxu1 %v1390_v31  ;;  %v1194_v30 = vmul.f32 %v4751_v7, %v666_v25  ;;  %v667_v31 = vld [vmem:[%s4490_s11 + $0xb50] sm:$0xff]  ;;  %v1193_v35 = vmul.f32 %v4771_v14, %v665_v29  ;;  %v309_v25 = vld [vmem:[%s4490_s11 + $0x20] sm:$0xff] }
  0xc9   : > { %1693 = vmatmul.mubr.f32.gmra.mxu0 %v1103_v32  ;;  %1878 = vmatmul.mubr.f32.gmra.mxu1 %v1105_v33  ;;  %v1384_v32 = vld [vmem:[%s7400_s1 + $0x3b8] sm:$0xff]  ;;  %v1196_v33 = vmul.f32 %v4764_v11, %v668_v27  ;;  %v1195_v37 = vmul.f32 %v4775_v15, %v667_v31  ;;  %v1377_v31 = vld [vmem:[%s7400_s1 + $0x380] sm:$0xff] }
  0xca   : > { %1963 = vmatprep.subr.mxu0 %v4349_v0  ;;  %2146 = vmatprep.subr.mxu1 %v4349_v0 }
  0xcb   : > { %1964 = vmatpush2.msra.mxu0 %v1356_v38  ;;  %2147 = vmatpush2.msra.mxu1 %v1389_v39  ;;  %v686_v38 = vld [vmem:[%s4490_s11 + $0xbe8] sm:$0xff]  ;;  %v683_v39 = vld [vmem:[%s4490_s11 + $0xbd0] sm:$0xff] }
  0xcc   : > { %1697 = vmatprep.mubr.f32.mxu0 %v1122_v40  ;;  %1882 = vmatprep.mubr.f32.mxu1 %v1124_v41  ;;  %v685_v40 = vld [vmem:[%s4490_s11 + $0xbe0] sm:$0xff]  ;;  %v1383_v41 = vld [vmem:[%s7400_s1 + $0x3b0] sm:$0xff] }
  0xcd   : > { %1965 = vmatprep.subr.mxu0 %v4349_v0  ;;  %1698 = vmatmul.mubr.f32.gmra.mxu0 %v1121_v42  ;;  %v1349_v42 = vld [vmem:[%s7400_s1 + $0x2a0] sm:$0xff]  ;;  %v1213_v48 = vmul.f32 %v4775_v15, %v685_v40 }
  0xce   : > { %1883 = vmatmul.mubr.f32.gmra.mxu1 %v1123_v44  ;;  %1966 = vmatpush2.msra.mxu0 %v1355_v47  ;;  %v1214_v44 = vmul.f32 %v4764_v11, %v686_v38  ;;  %v1211_v47 = vmul.f32 %v4771_v14, %v683_v39  ;;  %v1408_v38 = vld [vmem:[%s7400_s1 + $0x478] sm:$0xff]  ;;  %v346_v39 = vld [vmem:[%s4490_s11 + $0x148] sm:$0xff] }
  0xcf   : > { %2148 = vmatprep.subr.mxu1 %v4349_v0  ;;  %1967 = vmatprep.subr.mxu0 %v4349_v0 }
  0xd0   : > { %2149 = vmatpush2.msra.mxu1 %v1388_v53  ;;  %1702 = vmatprep.mubr.f32.mxu0 %v1140_v51  ;;  %v702_v51 = vld [vmem:[%s4490_s11 + $0xc68] sm:$0xff]  ;;  %v701_v53 = vld [vmem:[%s4490_s11 + $0xc60] sm:$0xff] }
  0xd1   : > { %1887 = vmatprep.mubr.f32.mxu1 %v1142_v54  ;;  %1968 = vmatpush2.msra.mxu0 %v1354_v55  ;;  %v703_v54 = vld [vmem:[%s4490_s11 + $0xc70] sm:$0xff]  ;;  %v1348_v55 = vld [vmem:[%s7400_s1 + $0x298] sm:$0xff]  ;;  %v1230_v59 = vmul.f32 %v4751_v7, %v702_v51  ;;  %v1229_v61 = vmul.f32 %v4771_v14, %v701_v53 }
  0xd2   : > { %2150 = vmatprep.subr.mxu1 %v4349_v0  ;;  %1703 = vmatmul.mubr.f32.gmra.mxu0 %v1139_v58  ;;  %v1381_v58 = vld [vmem:[%s7400_s1 + $0x3a0] sm:$0xff]  ;;  %v1231_v1 = vmul.f32 %v4775_v15, %v703_v54  ;;  %v364_v54 = vld [vmem:[%s4490_s11 + $0x1d8] sm:$0xff] }
  0xd3   : > { %1888 = vmatmul.mubr.f32.gmra.mxu1 %v1141_v60  ;;  %1969 = vmatprep.subr.mxu0 %v4349_v0  ;;  %v1232_v60 = vmul.f32 %v4764_v11, %v704_v52  ;;  %v1406_v52 = vld [vmem:[%s7400_s1 + $0x468] sm:$0xff] }
  0xd4   : > { %2151 = vmatpush2.msra.mxu1 %v1387_v5  ;;  %1970 = vmatpush2.msra.mxu0 %v1353_v6  ;;  %v722_v5 = vld [vmem:[%s4490_s11 + $0xd08] sm:$0xff]  ;;  %v765_v6 = vsub.s32 5, %v4674_v46 }
  0xd5   : > { %2152 = vmatprep.subr.mxu1 %v4349_v0  ;;  %1707 = vmatprep.mubr.f32.mxu0 %v1158_v8  ;;  %v1347_v8 = vld [vmem:[%s7400_s1 + $0x290] sm:$0xff]  ;;  %v1250_v17 = vmul.f32 %v4764_v11, %v722_v5 }
  0xd6   : > { %1892 = vmatprep.mubr.f32.mxu1 %v1160_v9  ;;  %2153 = vmatpush2.msra.mxu1 %v1386_v10  ;;  %v773_v9 = vsub.s32 7, %v4674_v46  ;;  %v1248_v10 = vmul.f32 %v4751_v7, %v720_v63  ;;  %v5219_v7 = vrot.slane %v4249_v18, %v765_v6  ;;  %v1379_v11 = vld [vmem:[%s7400_s1 + $0x390] sm:$0xff]  ;;  %v1405_v63 = vld [vmem:[%s7400_s1 + $0x460] sm:$0xff]  ;;  %v1506_v46 = vld [vmem:[%s7400_s1 + $0x788] sm:$0xff] }
  0xd7   : > { %1708 = vmatmul.mubr.f32.gmra.mxu0 %v1157_v12  ;;  %1893 = vmatmul.mubr.f32.gmra.mxu1 %v1159_v13  ;;  %v719_v12 = vld [vmem:[%s4490_s11 + $0xcf0] sm:$0xff]  ;;  %v721_v13 = vld [vmem:[%s4490_s11 + $0xd00] sm:$0xff] }
  0xd8   : > { %1971 = vmatprep.subr.mxu0 %v4349_v0  ;;  %2154 = vmatprep.subr.mxu1 %v4349_v0 }
  0xd9   : > { %1972 = vmatpush2.msra.mxu0 %v1352_v20  ;;  %2155 = vmatpush2.msra.mxu1 %v1385_v21  ;;  %v1247_v20 = vmul.f32 %v4771_v14, %v719_v12  ;;  %v1249_v21 = vmul.f32 %v4775_v15, %v721_v13  ;;  %v1378_v14 = vld [vmem:[%s7400_s1 + $0x388] sm:$0xff]  ;;  %v1345_v15 = vld [vmem:[%s7400_s1 + $0x280] sm:$0xff] }
  0xda   : > { %1712 = vmatprep.mubr.f32.mxu0 %v1176_v22  ;;  %1897 = vmatprep.mubr.f32.mxu1 %v1178_v23  ;;  %v310_v22 = vld [vmem:[%s4490_s11 + $0x28] sm:$0xff]  ;;  %v5234_v23 = vrot.slane %v4249_v18, %v773_v9  ;;  %v383_v18 = vld [vmem:[%s4490_s11 + $0x270] sm:$0xff] }
  0xdb   : > { %1973 = vmatprep.subr.mxu0 %v4349_v0  ;;  %1713 = vmatmul.mubr.f32.gmra.mxu0 %v1175_v24  ;;  %v312_v24 = vld [vmem:[%s4490_s11 + $0x38] sm:$0xff]  ;;  %v838_v27 = vmul.f32 %v5219_v7, %v310_v22  ;;  %v382_v13 = vld [vmem:[%s4490_s11 + $0x268] sm:$0xff] }
  0xdc   : > { %1898 = vmatmul.mubr.f32.gmra.mxu1 %v1177_v26  ;;  %1974 = vmatpush2.msra.mxu0 %v1351_v28  ;;  %v311_v26 = vld [vmem:[%s4490_s11 + $0x30] sm:$0xff]  ;;  %v328_v28 = vld [vmem:[%s4490_s11 + $0xb8] sm:$0xff]  ;;  %v840_v29 = vmul.f32 %v5234_v23, %v312_v24 }
  0xdd   : > { %2156 = vmatprep.subr.mxu1 %v4349_v0  ;;  %1975 = vmatprep.subr.mxu0 %v4349_v0  ;;  %v400_v24 = vld [vmem:[%s4490_s11 + $0x2f8] sm:$0xff] }
  0xde   : > { %2157 = vmatpush2.msra.mxu1 %v1384_v32  ;;  %1717 = vmatprep.mubr.f32.mxu0 %v1194_v30  ;;  %v330_v30 = vld [vmem:[%s4490_s11 + $0xc8] sm:$0xff]  ;;  %v837_v32 = vmul.f32 %v4704_v56, %v309_v25  ;;  %v911_v25 = vmul.f32 %v4708_v57, %v383_v18 }
  0xdf   : > { %1902 = vmatprep.mubr.f32.mxu1 %v1196_v33  ;;  %1976 = vmatpush2.msra.mxu0 %v1350_v34  ;;  %v839_v33 = vmul.f32 %v4708_v57, %v311_v26  ;;  %v856_v34 = vmul.f32 %v5219_v7, %v328_v28  ;;  %v402_v26 = vld [vmem:[%s4490_s11 + $0x308] sm:$0xff]  ;;  %v401_v28 = vld [vmem:[%s4490_s11 + $0x300] sm:$0xff] }
  0xe0   : > { %2158 = vmatprep.subr.mxu1 %v4349_v0  ;;  %1718 = vmatmul.mubr.f32.gmra.mxu0 %v1193_v35  ;;  %v327_v35 = vld [vmem:[%s4490_s11 + $0xb0] sm:$0xff] }
  0xe1   : > { %1903 = vmatmul.mubr.f32.gmra.mxu1 %v1195_v37  ;;  %1977 = vmatprep.subr.mxu0 %v4349_v0  ;;  %v858_v37 = vmul.f32 %v5234_v23, %v330_v30  ;;  %v855_v40 = vmul.f32 %v4704_v56, %v327_v35  ;;  %v930_v30 = vmul.f32 %v5234_v23, %v402_v26  ;;  %v420_v35 = vld [vmem:[%s4490_s11 + $0x398] sm:$0xff]  ;;  %v1430_v26 = vld [vmem:[%s7400_s1 + $0x528] sm:$0xff] }
  0xe2   : > { %2159 = vmatpush2.msra.mxu1 %v1383_v41  ;;  %1978 = vmatpush2.msra.mxu0 %v1349_v42  ;;  %v857_v41 = vmul.f32 %v4708_v57, %v329_v36  ;;  %v348_v42 = vld [vmem:[%s4490_s11 + $0x158] sm:$0xff]  ;;  %v417_v36 = vld [vmem:[%s4490_s11 + $0x380] sm:$0xff] }
  0xe3   : > { %2160 = vmatprep.subr.mxu1 %v4349_v0  ;;  %1722 = vmatprep.mubr.f32.mxu0 %v1212_v43  ;;  %v345_v43 = vld [vmem:[%s4490_s11 + $0x140] sm:$0xff]  ;;  %v876_v51 = vmul.f32 %v5234_v23, %v348_v42  ;;  %v1434_v42 = vld [vmem:[%s7400_s1 + $0x548] sm:$0xff] }
  0xe4   : > { %1907 = vmatprep.mubr.f32.mxu1 %v1214_v44  ;;  %2161 = vmatpush2.msra.mxu1 %v1382_v45  ;;  %v1407_v44 = vld [vmem:[%s7400_s1 + $0x470] sm:$0xff]  ;;  %v1440_v45 = vld [vmem:[%s7400_s1 + $0x578] sm:$0xff]  ;;  %v873_v53 = vmul.f32 %v4704_v56, %v345_v43  ;;  %v945_v43 = vmul.f32 %v4704_v56, %v417_v36 }
  0xe5   : > { %1723 = vmatmul.mubr.f32.gmra.mxu0 %v1211_v47  ;;  %1908 = vmatmul.mubr.f32.gmra.mxu1 %v1213_v48  ;;  %v874_v47 = vmul.f32 %v5219_v7, %v346_v39  ;;  %v347_v48 = vld [vmem:[%s4490_s11 + $0x150] sm:$0xff]  ;;  %v1401_v39 = vld [vmem:[%s7400_s1 + $0x440] sm:$0xff]  ;;  %v508_v36 = vld [vmem:[%s4490_s11 + $0x658] sm:$0xff] }
  0xe6   : > { %1979 = vmatprep.subr.mxu0 %v4349_v0  ;;  %2162 = vmatprep.subr.mxu1 %v4349_v0 }
  0xe7   : > { %1980 = vmatpush2.msra.mxu0 %v1348_v55  ;;  %2163 = vmatpush2.msra.mxu1 %v1381_v58  ;;  %v875_v55 = vmul.f32 %v4708_v57, %v347_v48  ;;  %v366_v58 = vld [vmem:[%s4490_s11 + $0x1e8] sm:$0xff]  ;;  %v435_v48 = vld [vmem:[%s4490_s11 + $0x410] sm:$0xff] }
  0xe8   : > { %1727 = vmatprep.mubr.f32.mxu0 %v1230_v59  ;;  %1912 = vmatprep.mubr.f32.mxu1 %v1232_v60  ;;  %v363_v59 = vld [vmem:[%s4490_s11 + $0x1d0] sm:$0xff]  ;;  %v365_v60 = vld [vmem:[%s4490_s11 + $0x1e0] sm:$0xff]  ;;  %v894_v5 = vmul.f32 %v5234_v23, %v366_v58  ;;  %v963_v58 = vmul.f32 %v4704_v56, %v435_v48  ;;  %v526_v48 = vld [vmem:[%s4490_s11 + $0x6e8] sm:$0xff] }
  0xe9   : > { %1981 = vmatprep.subr.mxu0 %v4349_v0  ;;  %1728 = vmatmul.mubr.f32.gmra.mxu0 %v1229_v61  ;;  %v1439_v61 = vld [vmem:[%s7400_s1 + $0x570] sm:$0xff]  ;;  %v893_v12 = vmul.f32 %v4708_v57, %v365_v60 }
  0xea   : > { %1913 = vmatmul.mubr.f32.gmra.mxu1 %v1231_v1  ;;  %1982 = vmatpush2.msra.mxu0 %v1347_v8  ;;  %v892_v1 = vmul.f32 %v5219_v7, %v364_v54  ;;  %v1438_v8 = vld [vmem:[%s7400_s1 + $0x568] sm:$0xff] }
  0xeb   : > { %2164 = vmatprep.subr.mxu1 %v4349_v0  ;;  %1983 = vmatprep.subr.mxu0 %v4349_v0 }
  0xec   : > { %2165 = vmatpush2.msra.mxu1 %v1380_v16  ;;  %1732 = vmatprep.mubr.f32.mxu0 %v1248_v10  ;;  %v891_v10 = vmul.f32 %v4704_v56, %v363_v59  ;;  %v384_v16 = vld [vmem:[%s4490_s11 + $0x278] sm:$0xff]  ;;  %v454_v59 = vld [vmem:[%s4490_s11 + $0x4a8] sm:$0xff] }
  0xed   : > { %2166 = vmatprep.subr.mxu1 %v4349_v0  ;;  %1917 = vmatprep.mubr.f32.mxu1 %v1250_v17  ;;  %v381_v17 = vld [vmem:[%s4490_s11 + $0x260] sm:$0xff] }
  0xee   : > { %1984 = vmatpush2.msra.mxu0 %v1346_v19  ;;  %2167 = vmatpush2.msra.mxu1 %v1379_v11  ;;  %v1404_v19 = vld [vmem:[%s7400_s1 + $0x458] sm:$0xff]  ;;  %v1437_v11 = vld [vmem:[%s7400_s1 + $0x560] sm:$0xff]  ;;  %v909_v22 = vmul.f32 %v4704_v56, %v381_v17 }
  0xef   : > { %1733 = vmatmul.mubr.f32.gmra.mxu0 %v1247_v20  ;;  %1918 = vmatmul.mubr.f32.gmra.mxu1 %v1249_v21  ;;  %v910_v20 = vmul.f32 %v5219_v7, %v382_v13  ;;  %v912_v21 = vmul.f32 %v5234_v23, %v384_v16  ;;  %v1398_v13 = vld [vmem:[%s7400_s1 + $0x428] sm:$0xff]  ;;  %v472_v17 = vld [vmem:[%s4490_s11 + $0x538] sm:$0xff] }
  0xf0   : > { %2168 = vmatprep.subr.mxu1 %v4349_v0  ;;  %1985 = vmatprep.subr.mxu0 %v4349_v0 }
  0xf1   : > { %2169 = vmatpush2.msra.mxu1 %v1378_v14  ;;  %1986 = vmatpush2.msra.mxu0 %v1345_v15  ;;  %v1403_v14 = vld [vmem:[%s7400_s1 + $0x450] sm:$0xff] }
  0xf2   : > { %2170 = vmatprep.subr.mxu1 %v4349_v0  ;;  %1987 = vmatprep.mubr.f32.mxu0 %v838_v27  ;;  %v399_v15 = vld [vmem:[%s4490_s11 + $0x2f0] sm:$0xff]  ;;  %v928_v27 = vmul.f32 %v5219_v7, %v400_v24  ;;  %v1000_v24 = vmul.f32 %v5219_v7, %v472_v17 }
  0xf3   : > { %2171 = vmatpush2.msra.mxu1 %v1377_v31  ;;  %2172 = vmatprep.mubr.f32.mxu1 %v840_v29  ;;  %v1436_v29 = vld [vmem:[%s7400_s1 + $0x558] sm:$0xff]  ;;  %v1402_v31 = vld [vmem:[%s7400_s1 + $0x448] sm:$0xff] }
  0xf4   : > { %1988 = vmatmul.mubr.f32.vlgmr.msra.gmra.mxu0 %v837_v32  ;;  %2173 = vmatmul.mubr.f32.vlgmr.msra.gmra.mxu1 %v839_v33  ;;  %v927_v32 = vmul.f32 %v4704_v56, %v399_v15  ;;  %v418_v33 = vld [vmem:[%s4490_s11 + $0x388] sm:$0xff] }
  0xf5   : > { %2293 = vmatprep.subr.mxu0 %v4349_v0  ;;  %1992 = vmatprep.mubr.f32.mxu0 %v856_v34  ;;  %v929_v34 = vmul.f32 %v4708_v57, %v401_v28  ;;  %v492_v28 = vld [vmem:[%s4490_s11 + $0x5d8] sm:$0xff] }
  0xf6   : > { %2294 = vmatpush1.msra.mxu0 %v1408_v38  ;;  %2177 = vmatprep.mubr.f32.mxu1 %v858_v37  ;;  %v419_v37 = vld [vmem:[%s4490_s11 + $0x390] sm:$0xff] }
  0xf7   : > { %2295 = vmatprep.subr.mxu0 %v4349_v0  ;;  %2478 = vmatprep.subr.mxu1 %v4349_v0  ;;  %v1435_v38 = vld [vmem:[%s7400_s1 + $0x550] sm:$0xff] }
  0xf8   : > { %1993 = vmatmul.mubr.f32.gmra.mxu0 %v855_v40  ;;  %2178 = vmatmul.mubr.f32.gmra.mxu1 %v857_v41  ;;  %v946_v40 = vmul.f32 %v5219_v7, %v418_v33  ;;  %v948_v41 = vmul.f32 %v5234_v23, %v420_v35 }
  0xf9   : > { %2296 = vmatpush1.msra.mxu0 %v1407_v44  ;;  %2479 = vmatpush1.msra.mxu1 %v1440_v45  ;;  %v947_v44 = vmul.f32 %v4708_v57, %v419_v37  ;;  %v436_v45 = vld [vmem:[%s4490_s11 + $0x418] sm:$0xff] }
  0xfa   : > { %2297 = vmatprep.subr.mxu0 %v4349_v0  ;;  %1997 = vmatprep.mubr.f32.mxu0 %v874_v47  ;;  %v438_v47 = vld [vmem:[%s4490_s11 + $0x428] sm:$0xff]  ;;  %v964_v54 = vmul.f32 %v5219_v7, %v436_v45 }
  0xfb   : > { %2182 = vmatprep.mubr.f32.mxu1 %v876_v51  ;;  %2298 = vmatpush1.msra.mxu0 %v1406_v52  ;;  %v437_v51 = vld [vmem:[%s4490_s11 + $0x420] sm:$0xff]  ;;  %v1400_v52 = vld [vmem:[%s7400_s1 + $0x438] sm:$0xff]  ;;  %v1394_v45 = vld [vmem:[%s7400_s1 + $0x408] sm:$0xff] }
  0xfc   : > { %2480 = vmatprep.subr.mxu1 %v4349_v0  ;;  %1998 = vmatmul.mubr.f32.gmra.mxu0 %v873_v53  ;;  %v1433_v53 = vld [vmem:[%s7400_s1 + $0x540] sm:$0xff]  ;;  %v965_v60 = vmul.f32 %v4708_v57, %v437_v51 }
  0xfd   : > { %2183 = vmatmul.mubr.f32.gmra.mxu1 %v875_v55  ;;  %2299 = vmatprep.subr.mxu0 %v4349_v0  ;;  %v966_v55 = vmul.f32 %v5234_v23, %v438_v47 }
  0xfe   : > { %2481 = vmatpush1.msra.mxu1 %v1439_v61  ;;  %2300 = vmatpush1.msra.mxu0 %v1405_v63  ;;  %v456_v61 = vld [vmem:[%s4490_s11 + $0x4b8] sm:$0xff]  ;;  %v1399_v63 = vld [vmem:[%s7400_s1 + $0x430] sm:$0xff] }
  0xff   : > { %2482 = vmatprep.subr.mxu1 %v4349_v0  ;;  %2002 = vmatprep.mubr.f32.mxu0 %v892_v1  ;;  %v453_v1 = vld [vmem:[%s4490_s11 + $0x4a0] sm:$0xff] }
 0x100   : > { %2187 = vmatprep.mubr.f32.mxu1 %v894_v5  ;;  %2483 = vmatpush1.msra.mxu1 %v1438_v8  ;;  %v982_v5 = vmul.f32 %v5219_v7, %v454_v59  ;;  %v455_v8 = vld [vmem:[%s4490_s11 + $0x4b0] sm:$0xff]  ;;  %v981_v16 = vmul.f32 %v4704_v56, %v453_v1  ;;  %v1054_v59 = vmul.f32 %v5219_v7, %v526_v48 }
 0x101   : > { %2003 = vmatmul.mubr.f32.gmra.mxu0 %v891_v10  ;;  %2188 = vmatmul.mubr.f32.gmra.mxu1 %v893_v12  ;;  %v1432_v10 = vld [vmem:[%s7400_s1 + $0x538] sm:$0xff]  ;;  %v984_v12 = vmul.f32 %v5234_v23, %v456_v61  ;;  %v983_v18 = vmul.f32 %v4708_v57, %v455_v8  ;;  %v1426_v61 = vld [vmem:[%s7400_s1 + $0x508] sm:$0xff] }
 0x102   : > { %2301 = vmatprep.subr.mxu0 %v4349_v0  ;;  %2484 = vmatprep.subr.mxu1 %v4349_v0  ;;  %v546_v8 = vld [vmem:[%s4490_s11 + $0x788] sm:$0xff] }
 0x103   : > { %2302 = vmatpush1.msra.mxu0 %v1404_v19  ;;  %2485 = vmatpush1.msra.mxu1 %v1437_v11  ;;  %v474_v19 = vld [vmem:[%s4490_s11 + $0x548] sm:$0xff]  ;;  %v471_v11 = vld [vmem:[%s4490_s11 + $0x530] sm:$0xff] }
 0x104   : > { %2007 = vmatprep.mubr.f32.mxu0 %v910_v20  ;;  %2192 = vmatprep.mubr.f32.mxu1 %v912_v21  ;;  %v473_v20 = vld [vmem:[%s4490_s11 + $0x540] sm:$0xff]  ;;  %v1431_v21 = vld [vmem:[%s7400_s1 + $0x530] sm:$0xff] }
 0x105   : > { %2303 = vmatprep.subr.mxu0 %v4349_v0  ;;  %2008 = vmatmul.mubr.f32.gmra.mxu0 %v909_v22  ;;  %v1397_v22 = vld [vmem:[%s7400_s1 + $0x420] sm:$0xff]  ;;  %v1001_v15 = vmul.f32 %v4708_v57, %v473_v20 }
 0x106   : > { %2193 = vmatmul.mubr.f32.gmra.mxu1 %v911_v25  ;;  %2304 = vmatpush1.msra.mxu0 %v1403_v14  ;;  %v1002_v25 = vmul.f32 %v5234_v23, %v474_v19  ;;  %v999_v14 = vmul.f32 %v4704_v56, %v471_v11  ;;  %v562_v11 = vld [vmem:[%s4490_s11 + $0x808] sm:$0xff] }
 0x107   : > { %2486 = vmatprep.subr.mxu1 %v4349_v0  ;;  %2305 = vmatprep.subr.mxu0 %v4349_v0 }
 0x108   : > { %2487 = vmatpush1.msra.mxu1 %v1436_v29  ;;  %2012 = vmatprep.mubr.f32.mxu0 %v928_v27  ;;  %v490_v27 = vld [vmem:[%s4490_s11 + $0x5c8] sm:$0xff]  ;;  %v489_v29 = vld [vmem:[%s4490_s11 + $0x5c0] sm:$0xff] }
 0x109   : > { %2197 = vmatprep.mubr.f32.mxu1 %v930_v30  ;;  %2306 = vmatpush1.msra.mxu0 %v1402_v31  ;;  %v491_v30 = vld [vmem:[%s4490_s11 + $0x5d0] sm:$0xff]  ;;  %v1396_v31 = vld [vmem:[%s7400_s1 + $0x418] sm:$0xff]  ;;  %v1018_v33 = vmul.f32 %v5219_v7, %v490_v27  ;;  %v1017_v35 = vmul.f32 %v4704_v56, %v489_v29  ;;  %v1422_v27 = vld [vmem:[%s7400_s1 + $0x4e8] sm:$0xff] }
 0x10a   : > { %2488 = vmatprep.subr.mxu1 %v4349_v0  ;;  %2013 = vmatmul.mubr.f32.gmra.mxu0 %v927_v32  ;;  %v1429_v32 = vld [vmem:[%s7400_s1 + $0x520] sm:$0xff]  ;;  %v1019_v37 = vmul.f32 %v4708_v57, %v491_v30  ;;  %v580_v29 = vld [vmem:[%s4490_s11 + $0x898] sm:$0xff] }
 0x10b   : > { %2198 = vmatmul.mubr.f32.gmra.mxu1 %v929_v34  ;;  %2307 = vmatprep.subr.mxu0 %v4349_v0  ;;  %v1020_v34 = vmul.f32 %v5234_v23, %v492_v28 }
 0x10c   : > { %2489 = vmatpush1.msra.mxu1 %v1435_v38  ;;  %2308 = vmatpush1.msra.mxu0 %v1401_v39  ;;  %v510_v38 = vld [vmem:[%s4490_s11 + $0x668] sm:$0xff]  ;;  %v1395_v39 = vld [vmem:[%s7400_s1 + $0x410] sm:$0xff] }
 0x10d   : > { %2490 = vmatprep.subr.mxu1 %v4349_v0  ;;  %2017 = vmatprep.mubr.f32.mxu0 %v946_v40  ;;  %v507_v40 = vld [vmem:[%s4490_s11 + $0x650] sm:$0xff] }
 0x10e   : > { %2202 = vmatprep.mubr.f32.mxu1 %v948_v41  ;;  %2491 = vmatpush1.msra.mxu1 %v1434_v42  ;;  %v1036_v41 = vmul.f32 %v5219_v7, %v508_v36  ;;  %v509_v42 = vld [vmem:[%s4490_s11 + $0x660] sm:$0xff]  ;;  %v1035_v47 = vmul.f32 %v4704_v56, %v507_v40  ;;  %v1108_v36 = vmul.f32 %v5219_v7, %v580_v29 }
 0x10f   : > { %2018 = vmatmul.mubr.f32.gmra.mxu0 %v945_v43  ;;  %2203 = vmatmul.mubr.f32.gmra.mxu1 %v947_v44  ;;  %v1428_v43 = vld [vmem:[%s7400_s1 + $0x518] sm:$0xff]  ;;  %v1038_v44 = vmul.f32 %v5234_v23, %v510_v38  ;;  %v1037_v51 = vmul.f32 %v4708_v57, %v509_v42  ;;  %v1454_v38 = vld [vmem:[%s7400_s1 + $0x5e8] sm:$0xff] }
 0x110   : > { %2309 = vmatprep.subr.mxu0 %v4349_v0  ;;  %2492 = vmatprep.subr.mxu1 %v4349_v0  ;;  %v600_v42 = vld [vmem:[%s4490_s11 + $0x938] sm:$0xff] }
 0x111   : > { %2310 = vmatpush1.msra.mxu0 %v1400_v52  ;;  %2493 = vmatpush1.msra.mxu1 %v1433_v53  ;;  %v528_v52 = vld [vmem:[%s4490_s11 + $0x6f8] sm:$0xff]  ;;  %v525_v53 = vld [vmem:[%s4490_s11 + $0x6e0] sm:$0xff] }
 0x112   : > { %2022 = vmatprep.mubr.f32.mxu0 %v964_v54  ;;  %2207 = vmatprep.mubr.f32.mxu1 %v966_v55  ;;  %v527_v54 = vld [vmem:[%s4490_s11 + $0x6f0] sm:$0xff] }
 0x113   : > { %2311 = vmatprep.subr.mxu0 %v4349_v0  ;;  %2023 = vmatmul.mubr.f32.gmra.mxu0 %v963_v58  ;;  %v1427_v55 = vld [vmem:[%s7400_s1 + $0x510] sm:$0xff]  ;;  %v1393_v58 = vld [vmem:[%s7400_s1 + $0x400] sm:$0xff]  ;;  %v1055_v1 = vmul.f32 %v4708_v57, %v527_v54 }
 0x114   : > { %2208 = vmatmul.mubr.f32.gmra.mxu1 %v965_v60  ;;  %2312 = vmatpush1.msra.mxu0 %v1399_v63  ;;  %v1056_v60 = vmul.f32 %v5234_v23, %v528_v52  ;;  %v1053_v63 = vmul.f32 %v4704_v56, %v525_v53  ;;  %v616_v53 = vld [vmem:[%s4490_s11 + $0x9b8] sm:$0xff] }
 0x115   : > { %2494 = vmatprep.subr.mxu1 %v4349_v0  ;;  %2313 = vmatprep.subr.mxu0 %v4349_v0 }
 0x116   : > { %2495 = vmatpush1.msra.mxu1 %v1432_v10  ;;  %2027 = vmatprep.mubr.f32.mxu0 %v982_v5  ;;  %v544_v5 = vld [vmem:[%s4490_s11 + $0x778] sm:$0xff]  ;;  %v543_v10 = vld [vmem:[%s4490_s11 + $0x770] sm:$0xff] }
 0x117   : > { %2212 = vmatprep.mubr.f32.mxu1 %v984_v12  ;;  %2314 = vmatpush1.msra.mxu0 %v1398_v13  ;;  %v545_v12 = vld [vmem:[%s4490_s11 + $0x780] sm:$0xff]  ;;  %v1424_v13 = vld [vmem:[%s7400_s1 + $0x4f8] sm:$0xff]  ;;  %v1072_v17 = vmul.f32 %v5219_v7, %v544_v5  ;;  %v1071_v19 = vmul.f32 %v4704_v56, %v543_v10  ;;  %v1418_v5 = vld [vmem:[%s7400_s1 + $0x4c8] sm:$0xff] }
 0x118   : > { %2496 = vmatprep.subr.mxu1 %v4349_v0  ;;  %2028 = vmatmul.mubr.f32.gmra.mxu0 %v981_v16  ;;  %v1425_v16 = vld [vmem:[%s7400_s1 + $0x500] sm:$0xff]  ;;  %v1073_v20 = vmul.f32 %v4708_v57, %v545_v12  ;;  %v634_v10 = vld [vmem:[%s4490_s11 + $0xa48] sm:$0xff] }
 0x119   : > { %2213 = vmatmul.mubr.f32.gmra.mxu1 %v983_v18  ;;  %2315 = vmatprep.subr.mxu0 %v4349_v0  ;;  %v1074_v18 = vmul.f32 %v5234_v23, %v546_v8 }
 0x11a   : > { %2497 = vmatpush1.msra.mxu1 %v1431_v21  ;;  %2316 = vmatpush1.msra.mxu0 %v1397_v22  ;;  %v564_v21 = vld [vmem:[%s4490_s11 + $0x818] sm:$0xff]  ;;  %v1423_v22 = vld [vmem:[%s7400_s1 + $0x4f0] sm:$0xff] }
 0x11b   : > { %2498 = vmatprep.subr.mxu1 %v4349_v0  ;;  %2032 = vmatprep.mubr.f32.mxu0 %v1000_v24  ;;  %v561_v24 = vld [vmem:[%s4490_s11 + $0x800] sm:$0xff] }
 0x11c   : > { %2217 = vmatprep.mubr.f32.mxu1 %v1002_v25  ;;  %2499 = vmatpush1.msra.mxu1 %v1430_v26  ;;  %v1090_v25 = vmul.f32 %v5219_v7, %v562_v11  ;;  %v563_v26 = vld [vmem:[%s4490_s11 + $0x810] sm:$0xff]  ;;  %v1089_v28 = vmul.f32 %v4704_v56, %v561_v24  ;;  %v1162_v11 = vmul.f32 %v5219_v7, %v634_v10 }
 0x11d   : > { %2033 = vmatmul.mubr.f32.gmra.mxu0 %v999_v14  ;;  %2218 = vmatmul.mubr.f32.gmra.mxu1 %v1001_v15  ;;  %v1456_v14 = vld [vmem:[%s7400_s1 + $0x5f8] sm:$0xff]  ;;  %v1092_v15 = vmul.f32 %v5234_v23, %v564_v21  ;;  %v1091_v30 = vmul.f32 %v4708_v57, %v563_v26  ;;  %v1450_v21 = vld [vmem:[%s7400_s1 + $0x5c8] sm:$0xff] }
 0x11e   : > { %2317 = vmatprep.subr.mxu0 %v4349_v0  ;;  %2500 = vmatprep.subr.mxu1 %v4349_v0  ;;  %v654_v26 = vld [vmem:[%s4490_s11 + $0xae8] sm:$0xff] }
 0x11f   : > { %2318 = vmatpush1.msra.mxu0 %v1396_v31  ;;  %2501 = vmatpush1.msra.mxu1 %v1429_v32  ;;  %v582_v31 = vld [vmem:[%s4490_s11 + $0x8a8] sm:$0xff]  ;;  %v579_v32 = vld [vmem:[%s4490_s11 + $0x890] sm:$0xff] }
 0x120   : > { %2037 = vmatprep.mubr.f32.mxu0 %v1018_v33  ;;  %2222 = vmatprep.mubr.f32.mxu1 %v1020_v34  ;;  %v581_v33 = vld [vmem:[%s4490_s11 + $0x8a0] sm:$0xff]  ;;  %v1455_v34 = vld [vmem:[%s7400_s1 + $0x5f0] sm:$0xff] }
 0x121   : > { %2319 = vmatprep.subr.mxu0 %v4349_v0  ;;  %2038 = vmatmul.mubr.f32.gmra.mxu0 %v1017_v35  ;;  %v1421_v35 = vld [vmem:[%s7400_s1 + $0x4e0] sm:$0xff]  ;;  %v1109_v40 = vmul.f32 %v4708_v57, %v581_v33  ;;  %v1182_v33 = vmul.f32 %v5234_v23, %v654_v26 }
 0x122   : > { %2223 = vmatmul.mubr.f32.gmra.mxu1 %v1019_v37  ;;  %2320 = vmatpush1.msra.mxu0 %v1395_v39  ;;  %v1110_v37 = vmul.f32 %v5234_v23, %v582_v31  ;;  %v1107_v39 = vmul.f32 %v4704_v56, %v579_v32  ;;  %v1449_v31 = vld [vmem:[%s7400_s1 + $0x5c0] sm:$0xff] }
 0x123   : > { %2502 = vmatprep.subr.mxu1 %v4349_v0  ;;  %2321 = vmatprep.subr.mxu0 %v4349_v0  ;;  %v705_v26 = vld [vmem:[%s4490_s11 + $0xc80] sm:$0xff] }
 0x124   : > { %2503 = vmatpush1.msra.mxu1 %v1428_v43  ;;  %2042 = vmatprep.mubr.f32.mxu0 %v1036_v41  ;;  %v598_v41 = vld [vmem:[%s4490_s11 + $0x928] sm:$0xff]  ;;  %v597_v43 = vld [vmem:[%s4490_s11 + $0x920] sm:$0xff] }
 0x125   : > { %2227 = vmatprep.mubr.f32.mxu1 %v1038_v44  ;;  %2322 = vmatpush1.msra.mxu0 %v1394_v45  ;;  %v599_v44 = vld [vmem:[%s4490_s11 + $0x930] sm:$0xff]  ;;  %v1420_v45 = vld [vmem:[%s7400_s1 + $0x4d8] sm:$0xff]  ;;  %v1126_v48 = vmul.f32 %v5219_v7, %v598_v41  ;;  %v1125_v52 = vmul.f32 %v4704_v56, %v597_v43  ;;  %v669_v43 = vld [vmem:[%s4490_s11 + $0xb60] sm:$0xff] }
 0x126   : > { %2504 = vmatprep.subr.mxu1 %v4349_v0  ;;  %2043 = vmatmul.mubr.f32.gmra.mxu0 %v1035_v47  ;;  %v1453_v47 = vld [vmem:[%s7400_s1 + $0x5e0] sm:$0xff]  ;;  %v1127_v54 = vmul.f32 %v4708_v57, %v599_v44 }
 0x127   : > { %2228 = vmatmul.mubr.f32.gmra.mxu1 %v1037_v51  ;;  %2323 = vmatprep.subr.mxu0 %v4349_v0  ;;  %v1128_v51 = vmul.f32 %v5234_v23, %v600_v42  ;;  %v1415_v42 = vld [vmem:[%s7400_s1 + $0x4b0] sm:$0xff] }
 0x128   : > { %2505 = vmatpush1.msra.mxu1 %v1427_v55  ;;  %2324 = vmatpush1.msra.mxu0 %v1393_v58  ;;  %v618_v55 = vld [vmem:[%s4490_s11 + $0x9c8] sm:$0xff]  ;;  %v1419_v58 = vld [vmem:[%s7400_s1 + $0x4d0] sm:$0xff] }
 0x129   : > { %2506 = vmatprep.subr.mxu1 %v4349_v0  ;;  %2047 = vmatprep.mubr.f32.mxu0 %v1054_v59  ;;  %v615_v59 = vld [vmem:[%s4490_s11 + $0x9b0] sm:$0xff] }
 0x12a   : > { %2232 = vmatprep.mubr.f32.mxu1 %v1056_v60  ;;  %2507 = vmatpush1.msra.mxu1 %v1426_v61  ;;  %v1144_v60 = vmul.f32 %v5219_v7, %v616_v53  ;;  %v617_v61 = vld [vmem:[%s4490_s11 + $0x9c0] sm:$0xff]  ;;  %v1143_v8 = vmul.f32 %v4704_v56, %v615_v59 }
 0x12b   : > { %2048 = vmatmul.mubr.f32.gmra.mxu0 %v1053_v63  ;;  %2233 = vmatmul.mubr.f32.gmra.mxu1 %v1055_v1  ;;  %v1452_v63 = vld [vmem:[%s7400_s1 + $0x5d8] sm:$0xff]  ;;  %v1146_v1 = vmul.f32 %v5234_v23, %v618_v55  ;;  %v1145_v12 = vmul.f32 %v4708_v57, %v617_v61  ;;  %v1197_v55 = vmul.f32 %v4704_v56, %v669_v43  ;;  %v690_v61 = vld [vmem:[%s4490_s11 + $0xc08] sm:$0xff] }
 0x12c   : > { %2325 = vmatprep.subr.mxu0 %v4349_v0  ;;  %2508 = vmatprep.subr.mxu1 %v4349_v0 }
 0x12d   : > { %2326 = vmatpush2.msra.mxu0 %v1424_v13  ;;  %2509 = vmatpush1.msra.mxu1 %v1425_v16  ;;  %v636_v13 = vld [vmem:[%s4490_s11 + $0xa58] sm:$0xff]  ;;  %v633_v16 = vld [vmem:[%s4490_s11 + $0xa40] sm:$0xff] }
 0x12e   : > { %2052 = vmatprep.mubr.f32.mxu0 %v1072_v17  ;;  %2237 = vmatprep.mubr.f32.mxu1 %v1074_v18  ;;  %v635_v17 = vld [vmem:[%s4490_s11 + $0xa50] sm:$0xff] }
 0x12f   : > { %2327 = vmatprep.subr.mxu0 %v4349_v0  ;;  %2053 = vmatmul.mubr.f32.gmra.mxu0 %v1071_v19  ;;  %v1451_v18 = vld [vmem:[%s7400_s1 + $0x5d0] sm:$0xff]  ;;  %v1417_v19 = vld [vmem:[%s7400_s1 + $0x4c0] sm:$0xff]  ;;  %v1163_v24 = vmul.f32 %v4708_v57, %v635_v17 }
 0x130   : > { %2238 = vmatmul.mubr.f32.gmra.mxu1 %v1073_v20  ;;  %2328 = vmatpush2.msra.mxu0 %v1423_v22  ;;  %v1164_v20 = vmul.f32 %v5234_v23, %v636_v13  ;;  %v1161_v22 = vmul.f32 %v4704_v56, %v633_v16  ;;  %v1413_v13 = vld [vmem:[%s7400_s1 + $0x4a0] sm:$0xff] }
 0x131   : > { %2510 = vmatprep.subr.mxu1 %v4349_v0  ;;  %2329 = vmatprep.subr.mxu0 %v4349_v0 }
 0x132   : > { %2511 = vmatpush2.msra.mxu1 %v1456_v14  ;;  %2057 = vmatprep.mubr.f32.mxu0 %v1090_v25  ;;  %v652_v25 = vld [vmem:[%s4490_s11 + $0xad8] sm:$0xff]  ;;  %v651_v14 = vld [vmem:[%s4490_s11 + $0xad0] sm:$0xff] }
 0x133   : > { %2242 = vmatprep.mubr.f32.mxu1 %v1092_v15  ;;  %2330 = vmatpush2.msra.mxu0 %v1422_v27  ;;  %v1180_v32 = vmul.f32 %v5219_v7, %v652_v25 }
 0x134   : > { %2512 = vmatprep.subr.mxu1 %v4349_v0  ;;  %2058 = vmatmul.mubr.f32.gmra.mxu0 %v1089_v28  ;;  %v653_v28 = vld [vmem:[%s4490_s11 + $0xae0] sm:$0xff] }
 0x135   : > { %2243 = vmatmul.mubr.f32.gmra.mxu1 %v1091_v30  ;;  %2331 = vmatprep.subr.mxu0 %v4349_v0  ;;  %v1416_v30 = vld [vmem:[%s7400_s1 + $0x4b8] sm:$0xff] }
 0x136   : > { %2513 = vmatpush2.msra.mxu1 %v1455_v34  ;;  %2332 = vmatpush2.msra.mxu0 %v1421_v35 }
 0x137   : > { %2514 = vmatprep.subr.mxu1 %v4349_v0  ;;  %2062 = vmatprep.mubr.f32.mxu0 %v1108_v36  ;;  %v1179_v36 = vmul.f32 %v4704_v56, %v651_v14 }
 0x138   : > { %2247 = vmatprep.mubr.f32.mxu1 %v1110_v37  ;;  %2515 = vmatpush2.msra.mxu1 %v1454_v38  ;;  %v670_v37 = vld [vmem:[%s4490_s11 + $0xb68] sm:$0xff]  ;;  %v1181_v38 = vmul.f32 %v4708_v57, %v653_v28 }
 0x139   : > { %2063 = vmatmul.mubr.f32.gmra.mxu0 %v1107_v39  ;;  %2248 = vmatmul.mubr.f32.gmra.mxu1 %v1109_v40  ;;  %v672_v39 = vld [vmem:[%s4490_s11 + $0xb78] sm:$0xff] }
 0x13a   : > { %2333 = vmatprep.subr.mxu0 %v4349_v0  ;;  %2516 = vmatprep.subr.mxu1 %v4349_v0  ;;  %v1200_v53 = vmul.f32 %v5234_v23, %v672_v39 }
 0x13b   : > { %2334 = vmatpush2.msra.mxu0 %v1420_v45  ;;  %2517 = vmatpush2.msra.mxu1 %v1453_v47  ;;  %v1198_v45 = vmul.f32 %v5219_v7, %v670_v37  ;;  %v671_v47 = vld [vmem:[%s4490_s11 + $0xb70] sm:$0xff] }
 0x13c   : > { %2067 = vmatprep.mubr.f32.mxu0 %v1126_v48  ;;  %2252 = vmatprep.mubr.f32.mxu1 %v1128_v51 }
 0x13d   : > { %2335 = vmatprep.subr.mxu0 %v4349_v0  ;;  %2068 = vmatmul.mubr.f32.gmra.mxu0 %v1125_v52  ;;  %v1448_v52 = vld [vmem:[%s7400_s1 + $0x5b8] sm:$0xff] }
 0x13e   : > { %2253 = vmatmul.mubr.f32.gmra.mxu1 %v1127_v54  ;;  %2336 = vmatpush2.msra.mxu0 %v1419_v58  ;;  %v1414_v54 = vld [vmem:[%s7400_s1 + $0x4a8] sm:$0xff]  ;;  %v688_v58 = vld [vmem:[%s4490_s11 + $0xbf8] sm:$0xff] }
 0x13f   : > { %2518 = vmatprep.subr.mxu1 %v4349_v0  ;;  %2337 = vmatprep.subr.mxu0 %v4349_v0  ;;  %v1216_v16 = vmul.f32 %v5219_v7, %v688_v58 }
 0x140   : > { %2519 = vmatpush2.msra.mxu1 %v1452_v63  ;;  %2072 = vmatprep.mubr.f32.mxu0 %v1144_v60  ;;  %v1199_v60 = vmul.f32 %v4708_v57, %v671_v47  ;;  %v723_v47 = vld [vmem:[%s4490_s11 + $0xd10] sm:$0xff] }
 0x141   : > { %2257 = vmatprep.mubr.f32.mxu1 %v1146_v1  ;;  %2338 = vmatpush2.msra.mxu0 %v1418_v5  ;;  %v687_v1 = vld [vmem:[%s4490_s11 + $0xbf0] sm:$0xff]  ;;  %v689_v5 = vld [vmem:[%s4490_s11 + $0xc00] sm:$0xff]  ;;  %v1251_v58 = vmul.f32 %v4704_v56, %v723_v47  ;;  %v1504_v47 = vld [vmem:[%s7400_s1 + $0x778] sm:$0xff] }
 0x142   : > { %2520 = vmatprep.subr.mxu1 %v4349_v0  ;;  %2073 = vmatmul.mubr.f32.gmra.mxu0 %v1143_v8 }
 0x143   : > { %2258 = vmatmul.mubr.f32.gmra.mxu1 %v1145_v12  ;;  %2339 = vmatprep.subr.mxu0 %v4349_v0  ;;  %v1447_v12 = vld [vmem:[%s7400_s1 + $0x5b0] sm:$0xff] }
 0x144   : > { %2521 = vmatpush2.msra.mxu1 %v1451_v18  ;;  %2340 = vmatpush2.msra.mxu0 %v1417_v19  ;;  %v1619_v15 = vpop.f32.mrf.mxu0  ;;  %v1804_v27 = vpop.f32.mrf.mxu1  ;;  %v1218_v18 = vmul.f32 %v5234_v23, %v690_v61  ;;  %v1446_v19 = vld [vmem:[%s7400_s1 + $0x5a8] sm:$0xff] }
 0x145   : > { %2522 = vmatprep.subr.mxu1 %v4349_v0  ;;  %2077 = vmatprep.mubr.f32.mxu0 %v1162_v11  ;;  %v5592_v29 = vadd.f32 %v1804_v27, %v1619_v15  ;;  %v1215_v11 = vmul.f32 %v4704_v56, %v687_v1  ;;  %v707_v15 = vld [vmem:[%s4490_s11 + $0xc90] sm:$0xff] }
 0x146   : > { %2262 = vmatprep.mubr.f32.mxu1 %v1164_v20  ;;  %2523 = vmatpush2.msra.mxu1 %v1450_v21  ;;  %v1621_v34 = vpop.f32.mrf.mxu0  ;;  %v1806_v35 = vpop.f32.mrf.mxu1  ;;  %v1217_v20 = vmul.f32 %v4708_v57, %v689_v5  ;;  %v706_v21 = vld [vmem:[%s4490_s11 + $0xc88] sm:$0xff]  ;;  %v1235_v37 = vmul.f32 %v4708_v57, %v707_v15  ;;  %v316_v5 = vld [vmem:[%s4490_s11 + $0x58] sm:$0xff] }
 0x147   : > { %2078 = vmatmul.mubr.f32.gmra.mxu0 %v1161_v22  ;;  %2263 = vmatmul.mubr.f32.gmra.mxu1 %v1163_v24  ;;  %v708_v22 = vld [vmem:[%s4490_s11 + $0xc98] sm:$0xff]  ;;  %v1233_v34 = vmul.f32 %v4704_v56, %v705_v26 }
 0x148   : > { %2341 = vmatprep.subr.mxu0 %v4349_v0  ;;  %2524 = vmatprep.subr.mxu1 %v4349_v0  ;;  %v1624_v40 = vpop.f32.mrf.mxu0  ;;  %v1809_v41 = vpop.f32.mrf.mxu1  ;;  %v724_v35 = vld [vmem:[%s4490_s11 + $0xd18] sm:$0xff] }
 0x149   : > { %2342 = vmatpush2.msra.mxu0 %v1416_v30  ;;  %2525 = vmatpush2.msra.mxu1 %v1449_v31  ;;  %v5612_v44 = vadd.f32 %v1809_v41, %v1624_v40  ;;  %v1412_v30 = vld [vmem:[%s7400_s1 + $0x498] sm:$0xff]  ;;  %v1445_v31 = vld [vmem:[%s7400_s1 + $0x5a0] sm:$0xff]  ;;  %v738_v40 = vld [vmem:[#allocation4 + $0x8] sm:$0xff] }
 0x14a   : > { %2082 = vmatprep.mubr.f32.mxu0 %v1180_v32  ;;  %2267 = vmatprep.mubr.f32.mxu1 %v1182_v33  ;;  %v1626_v48 = vpop.f32.mrf.mxu0  ;;  %v1811_v51 = vpop.f32.mrf.mxu1  ;;  %v1234_v32 = vmul.f32 %v5219_v7, %v706_v21  ;;  %v1236_v33 = vmul.f32 %v5234_v23, %v708_v22  ;;  %v1411_v41 = vld [vmem:[%s7400_s1 + $0x490] sm:$0xff]  ;;  %v5699_v61 = vrot.slane %v738_v40, %v757_v2  ;;  %v313_v2 = vld [vmem:[%s4490_s11 + $0x40] sm:$0xff] }
 0x14b   : > { %2343 = vmatprep.subr.mxu0 %v4349_v0  ;;  %2083 = vmatmul.mubr.f32.gmra.mxu0 %v1179_v36  ;;  %v725_v48 = vld [vmem:[%s4490_s11 + $0xd20] sm:$0xff]  ;;  %v5703_v1 = vrot.slane %v738_v40, %v753_v4  ;;  %v1442_v4 = vld [vmem:[%s7400_s1 + $0x588] sm:$0xff] }
 0x14c   : > { %2268 = vmatmul.mubr.f32.gmra.mxu1 %v1181_v38  ;;  %2344 = vmatpush2.msra.mxu0 %v1415_v42  ;;  %v1629_v59 = vpop.f32.mrf.mxu0  ;;  %v726_v38 = vld [vmem:[%s4490_s11 + $0xd28] sm:$0xff]  ;;  %v1441_v22 = vld [vmem:[%s7400_s1 + $0x580] sm:$0xff] }
 0x14d   : > { %2526 = vmatprep.subr.mxu1 %v4349_v0  ;;  %2345 = vmatprep.subr.mxu0 %v4349_v0  ;;  %v1814_v63 = vpop.f32.mrf.mxu1 }
 0x14e   : > { %2527 = vmatpush2.msra.mxu1 %v1448_v52  ;;  %2087 = vmatprep.mubr.f32.mxu0 %v1198_v45  ;;  %v5632_v8 = vadd.f32 %v1814_v63, %v1629_v59  ;;  %v1631_v10 = vpop.f32.mrf.mxu0  ;;  %v1252_v45 = vmul.f32 %v5219_v7, %v724_v35  ;;  %v1444_v52 = vld [vmem:[%s7400_s1 + $0x598] sm:$0xff]  ;;  %v1253_v59 = vmul.f32 %v4708_v57, %v725_v48 }
 0x14f   : > { %2272 = vmatprep.mubr.f32.mxu1 %v1200_v53  ;;  %2346 = vmatpush2.msra.mxu0 %v1414_v54  ;;  %v1816_v17 = vpop.f32.mrf.mxu1  ;;  %v1254_v53 = vmul.f32 %v5234_v23, %v726_v38  ;;  %v5684_v54 = vrot.slane %v738_v40, %v4727_v62  ;;  %v1443_v23 = vld [vmem:[%s7400_s1 + $0x590] sm:$0xff]  ;;  %v5707_v10 = vrot.slane %v738_v40, %v4739_v3  ;;  %v352_v38 = vld [vmem:[%s4490_s11 + $0x178] sm:$0xff]  ;;  %v349_v40 = vld [vmem:[%s4490_s11 + $0x160] sm:$0xff] }
 0x150   : > { %2528 = vmatprep.subr.mxu1 %v4349_v0  ;;  %2088 = vmatmul.mubr.f32.gmra.mxu0 %v1197_v55  ;;  %v1410_v55 = vld [vmem:[%s7400_s1 + $0x488] sm:$0xff] }
 0x151   : > { %2273 = vmatmul.mubr.f32.gmra.mxu1 %v1199_v60  ;;  %2347 = vmatprep.subr.mxu0 %v4349_v0  ;;  %v1634_v24 = vpop.f32.mrf.mxu0  ;;  %v1819_v25 = vpop.f32.mrf.mxu1  ;;  %v314_v60 = vld [vmem:[%s4490_s11 + $0x48] sm:$0xff] }
 0x152   : > { %2529 = vmatpush2.msra.mxu1 %v1447_v12  ;;  %2348 = vmatpush2.msra.mxu0 %v1413_v13  ;;  %v5652_v14 = vadd.f32 %v1819_v25, %v1634_v24  ;;  %v315_v12 = vld [vmem:[%s4490_s11 + $0x50] sm:$0xff]  ;;  %v842_v17 = vmul.f32 %v5684_v54, %v314_v60  ;;  %v841_v24 = vmul.f32 %v5707_v10, %v313_v2  ;;  %v370_v60 = vld [vmem:[%s4490_s11 + $0x208] sm:$0xff] }
 0x153   : > { %2530 = vmatprep.subr.mxu1 %v4349_v0  ;;  %2092 = vmatprep.mubr.f32.mxu0 %v1216_v16  ;;  %v1636_v27 = vpop.f32.mrf.mxu0  ;;  %v1821_v28 = vpop.f32.mrf.mxu1  ;;  %v1409_v16 = vld [vmem:[%s7400_s1 + $0x480] sm:$0xff]  ;;  %v843_v25 = vmul.f32 %v5703_v1, %v315_v12 }
 0x154   : > { %2277 = vmatprep.mubr.f32.mxu1 %v1218_v18  ;;  %2531 = vmatpush2.msra.mxu1 %v1446_v19  ;;  %v332_v18 = vld [vmem:[%s4490_s11 + $0xd8] sm:$0xff]  ;;  %v844_v19 = vmul.f32 %v5699_v61, %v316_v5  ;;  %v331_v27 = vld [vmem:[%s4490_s11 + $0xd0] sm:$0xff]  ;;  %v333_v28 = vld [vmem:[%s4490_s11 + $0xe0] sm:$0xff] }
 0x155   : > { %2093 = vmatmul.mubr.f32.gmra.mxu0 %v1215_v11  ;;  %2278 = vmatmul.mubr.f32.gmra.mxu1 %v1217_v20  ;;  %v1639_v36 = vpop.f32.mrf.mxu0  ;;  %v334_v11 = vld [vmem:[%s4490_s11 + $0xe8] sm:$0xff]  ;;  %v860_v15 = vmul.f32 %v5684_v54, %v332_v18  ;;  %v367_v5 = vld [vmem:[%s4490_s11 + $0x1f0] sm:$0xff]  ;;  %v898_v18 = vmul.f32 %v5699_v61, %v370_v60 }
 0x156   : > { %2349 = vmatprep.subr.mxu0 %v4349_v0  ;;  %2532 = vmatprep.subr.mxu1 %v4349_v0  ;;  %v1824_v39 = vpop.f32.mrf.mxu1  ;;  %v422_v60 = vld [vmem:[%s4490_s11 + $0x3a8] sm:$0xff] }
 0x157   : > { %2350 = vmatpush2.msra.mxu0 %v1412_v30  ;;  %2533 = vmatpush2.msra.mxu1 %v1445_v31  ;;  %v5673_v42 = vadd.f32 %v1824_v39, %v1639_v36  ;;  %v1641_v43 = vpop.f32.mrf.mxu0  ;;  %v859_v36 = vmul.f32 %v5707_v10, %v331_v27 }
 0x158   : > { %2097 = vmatprep.mubr.f32.mxu0 %v1234_v32  ;;  %2282 = vmatprep.mubr.f32.mxu1 %v1236_v33  ;;  %v1826_v51 = vpop.f32.mrf.mxu1  ;;  %v862_v32 = vmul.f32 %v5699_v61, %v334_v11  ;;  %v1472_v33 = vld [vmem:[%s7400_s1 + $0x678] sm:$0xff]  ;;  %v895_v11 = vmul.f32 %v5707_v10, %v367_v5 }
 0x159   : > { %2351 = vmatprep.subr.mxu0 %v4349_v0  ;;  %2098 = vmatmul.mubr.f32.gmra.mxu0 %v1233_v34  ;;  %v350_v34 = vld [vmem:[%s4490_s11 + $0x168] sm:$0xff]  ;;  %v351_v51 = vld [vmem:[%s4490_s11 + $0x170] sm:$0xff] }
 0x15a   : > { %2283 = vmatmul.mubr.f32.gmra.mxu1 %v1235_v37  ;;  %2352 = vmatpush2.msra.mxu0 %v1411_v41  ;;  %v1644_v7 = vpop.f32.mrf.mxu0  ;;  %v861_v37 = vmul.f32 %v5703_v1, %v333_v28  ;;  %v878_v48 = vmul.f32 %v5684_v54, %v350_v34  ;;  %v387_v28 = vld [vmem:[%s4490_s11 + $0x290] sm:$0xff] }
 0x15b   : > { %2534 = vmatprep.subr.mxu1 %v4349_v0  ;;  %2353 = vmatprep.subr.mxu0 %v4349_v0  ;;  %v1829_v63 = vpop.f32.mrf.mxu1 }
 0x15c   : > { %2535 = vmatpush2.msra.mxu1 %v1444_v52  ;;  %2102 = vmatprep.mubr.f32.mxu0 %v1252_v45  ;;  %v5709_v56 = vadd.f32 %v1829_v63, %v1644_v7  ;;  %v1646_v57 = vpop.f32.mrf.mxu0  ;;  %v1471_v45 = vld [vmem:[%s7400_s1 + $0x670] sm:$0xff]  ;;  %v1470_v7 = vld [vmem:[%s7400_s1 + $0x668] sm:$0xff] }
 0x15d   : > { %2536 = vmatprep.subr.mxu1 %v4349_v0  ;;  %2287 = vmatprep.mubr.f32.mxu1 %v1254_v53  ;;  %v1831_v13 = vpop.f32.mrf.mxu1  ;;  %v880_v53 = vmul.f32 %v5699_v61, %v352_v38  ;;  %v369_v57 = vld [vmem:[%s4490_s11 + $0x200] sm:$0xff] }
 0x15e   : > { %2354 = vmatpush2.msra.mxu0 %v1410_v55  ;;  %2537 = vmatpush2.msra.mxu1 %v1443_v23  ;;  %v877_v55 = vmul.f32 %v5707_v10, %v349_v40  ;;  %v368_v23 = vld [vmem:[%s4490_s11 + $0x1f8] sm:$0xff]  ;;  %v1503_v13 = vld [vmem:[%s7400_s1 + $0x770] sm:$0xff]  ;;  %v406_v40 = vld [vmem:[%s4490_s11 + $0x328] sm:$0xff] }
 0x15f   : > { %2103 = vmatmul.mubr.f32.gmra.mxu0 %v1251_v58  ;;  %2288 = vmatmul.mubr.f32.gmra.mxu1 %v1253_v59  ;;  %v1649_v20 = vpop.f32.mrf.mxu0  ;;  %v1834_v21 = vpop.f32.mrf.mxu1  ;;  %v879_v59 = vmul.f32 %v5703_v1, %v351_v51 }
 0x160   : > { %2538 = vmatprep.subr.mxu1 %v4349_v0  ;;  %2355 = vmatprep.subr.mxu0 %v4349_v0  ;;  %v5731_v26 = vadd.f32 %v1834_v21, %v1649_v20  ;;  %v897_v20 = vmul.f32 %v5703_v1, %v369_v57  ;;  %v386_v21 = vld [vmem:[%s4490_s11 + $0x288] sm:$0xff]  ;;  %v424_v57 = vld [vmem:[%s4490_s11 + $0x3b8] sm:$0xff] }
 0x161   : > { %2539 = vmatpush2.msra.mxu1 %v1442_v4  ;;  %2356 = vmatpush2.msra.mxu0 %v1409_v16  ;;  %v1651_v30 = vpop.f32.mrf.mxu0  ;;  %v1836_v31 = vpop.f32.mrf.mxu1  ;;  %v1469_v4 = vld [vmem:[%s7400_s1 + $0x660] sm:$0xff]  ;;  %v896_v16 = vmul.f32 %v5684_v54, %v368_v23  ;;  %v914_v34 = vmul.f32 %v5684_v54, %v386_v21  ;;  %v934_v23 = vmul.f32 %v5699_v61, %v406_v40 }
 0x162   : > { %2540 = vmatprep.subr.mxu1 %v4349_v0  ;;  %2357 = vmatprep.mubr.f32.mxu0 %v842_v17  ;;  %v952_v21 = vmul.f32 %v5699_v61, %v424_v57 }
 0x163   : > { %2541 = vmatpush2.msra.mxu1 %v1441_v22  ;;  %2542 = vmatprep.mubr.f32.mxu1 %v844_v19  ;;  %v1654_v35 = vpop.f32.mrf.mxu0  ;;  %v1502_v19 = vld [vmem:[%s7400_s1 + $0x768] sm:$0xff]  ;;  %v388_v22 = vld [vmem:[%s4490_s11 + $0x298] sm:$0xff] }
 0x164   : > { %2358 = vmatmul.mubr.f32.vlgmr.msra.gmra.mxu0 %v841_v24  ;;  %2543 = vmatmul.mubr.f32.vlgmr.msra.gmra.mxu1 %v843_v25  ;;  %v1839_v39 = vpop.f32.mrf.mxu1 }
 0x165   : > { %2663 = vmatprep.subr.mxu0 %v4349_v0  ;;  %2362 = vmatprep.mubr.f32.mxu0 %v860_v15  ;;  %v5747_v41 = vadd.f32 %v1839_v39, %v1654_v35  ;;  %v1656_v43 = vpop.f32.mrf.mxu0  ;;  %v385_v15 = vld [vmem:[%s4490_s11 + $0x280] sm:$0xff]  ;;  %v916_v35 = vmul.f32 %v5699_v61, %v388_v22  ;;  %v915_v39 = vmul.f32 %v5703_v1, %v387_v28  ;;  %v1498_v22 = vld [vmem:[%s7400_s1 + $0x748] sm:$0xff] }
 0x166   : > { %2664 = vmatpush1.msra.mxu0 %v1472_v33  ;;  %2547 = vmatprep.mubr.f32.mxu1 %v862_v32  ;;  %v1841_v52 = vpop.f32.mrf.mxu1  ;;  %v1468_v32 = vld [vmem:[%s7400_s1 + $0x658] sm:$0xff]  ;;  %v1501_v33 = vld [vmem:[%s7400_s1 + $0x760] sm:$0xff]  ;;  %v442_v28 = vld [vmem:[%s4490_s11 + $0x448] sm:$0xff] }
 0x167   : > { %2665 = vmatprep.subr.mxu0 %v4349_v0  ;;  %2848 = vmatprep.subr.mxu1 %v4349_v0  ;;  %v970_v40 = vmul.f32 %v5699_v61, %v442_v28 }
 0x168   : > { %2363 = vmatmul.mubr.f32.gmra.mxu0 %v859_v36  ;;  %2548 = vmatmul.mubr.f32.gmra.mxu1 %v861_v37  ;;  %v1659_v58 = vpop.f32.mrf.mxu0  ;;  %v913_v36 = vmul.f32 %v5707_v10, %v385_v15  ;;  %v404_v37 = vld [vmem:[%s4490_s11 + $0x318] sm:$0xff] }
 0x169   : > { %2666 = vmatpush1.msra.mxu0 %v1471_v45  ;;  %2849 = vmatpush1.msra.mxu1 %v1504_v47  ;;  %v1844_v63 = vpop.f32.mrf.mxu1  ;;  %v1467_v45 = vld [vmem:[%s7400_s1 + $0x650] sm:$0xff]  ;;  %v932_v52 = vmul.f32 %v5684_v54, %v404_v37  ;;  %v440_v15 = vld [vmem:[%s4490_s11 + $0x438] sm:$0xff] }
 0x16a   : > { %2667 = vmatprep.subr.mxu0 %v4349_v0  ;;  %2367 = vmatprep.mubr.f32.mxu0 %v878_v48  ;;  %v5770_v2 = vadd.f32 %v1844_v63, %v1659_v58  ;;  %v1661_v12 = vpop.f32.mrf.mxu0  ;;  %v403_v47 = vld [vmem:[%s4490_s11 + $0x310] sm:$0xff]  ;;  %v1466_v58 = vld [vmem:[%s7400_s1 + $0x648] sm:$0xff]  ;;  %v1464_v37 = vld [vmem:[%s7400_s1 + $0x638] sm:$0xff] }
 0x16b   : > { %2552 = vmatprep.mubr.f32.mxu1 %v880_v53  ;;  %2668 = vmatpush1.msra.mxu0 %v1470_v7  ;;  %v1846_v17 = vpop.f32.mrf.mxu1  ;;  %v405_v53 = vld [vmem:[%s4490_s11 + $0x320] sm:$0xff] }
 0x16c   : > { %2850 = vmatprep.subr.mxu1 %v4349_v0  ;;  %2368 = vmatmul.mubr.f32.gmra.mxu0 %v877_v55  ;;  %v1500_v55 = vld [vmem:[%s7400_s1 + $0x758] sm:$0xff]  ;;  %v933_v5 = vmul.f32 %v5703_v1, %v405_v53 }
 0x16d   : > { %2553 = vmatmul.mubr.f32.gmra.mxu1 %v879_v59  ;;  %2669 = vmatprep.subr.mxu0 %v4349_v0  ;;  %v1664_v24 = vpop.f32.mrf.mxu0  ;;  %v1849_v25 = vpop.f32.mrf.mxu1  ;;  %v931_v59 = vmul.f32 %v5707_v10, %v403_v47 }
 0x16e   : > { %2851 = vmatpush1.msra.mxu1 %v1503_v13  ;;  %2670 = vmatpush1.msra.mxu0 %v1469_v4  ;;  %v5790_v27 = vadd.f32 %v1849_v25, %v1664_v24  ;;  %v421_v13 = vld [vmem:[%s4490_s11 + $0x3a0] sm:$0xff]  ;;  %v423_v4 = vld [vmem:[%s4490_s11 + $0x3b0] sm:$0xff] }
 0x16f   : > { %2852 = vmatprep.subr.mxu1 %v4349_v0  ;;  %2372 = vmatprep.mubr.f32.mxu0 %v896_v16  ;;  %v1666_v30 = vpop.f32.mrf.mxu0  ;;  %v1851_v31 = vpop.f32.mrf.mxu1  ;;  %v949_v24 = vmul.f32 %v5707_v10, %v421_v13  ;;  %v951_v25 = vmul.f32 %v5703_v1, %v423_v4  ;;  %v476_v4 = vld [vmem:[%s4490_s11 + $0x558] sm:$0xff] }
 0x170   : > { %2557 = vmatprep.mubr.f32.mxu1 %v898_v18  ;;  %2853 = vmatpush1.msra.mxu1 %v1502_v19  ;;  %v1499_v18 = vld [vmem:[%s7400_s1 + $0x750] sm:$0xff]  ;;  %v1465_v19 = vld [vmem:[%s7400_s1 + $0x640] sm:$0xff]  ;;  %v1004_v28 = vmul.f32 %v5684_v54, %v476_v4 }
 0x171   : > { %2373 = vmatmul.mubr.f32.gmra.mxu0 %v895_v11  ;;  %2558 = vmatmul.mubr.f32.gmra.mxu1 %v897_v20  ;;  %v1669_v38 = vpop.f32.mrf.mxu0  ;;  %v950_v11 = vmul.f32 %v5684_v54, %v422_v60  ;;  %v459_v60 = vld [vmem:[%s4490_s11 + $0x4d0] sm:$0xff] }
 0x172   : > { %2671 = vmatprep.subr.mxu0 %v4349_v0  ;;  %2854 = vmatprep.subr.mxu1 %v4349_v0  ;;  %v1854_v43 = vpop.f32.mrf.mxu1 }
 0x173   : > { %2672 = vmatpush1.msra.mxu0 %v1468_v32  ;;  %2855 = vmatpush1.msra.mxu1 %v1501_v33  ;;  %v5812_v48 = vadd.f32 %v1854_v43, %v1669_v38  ;;  %v1671_v51 = vpop.f32.mrf.mxu0  ;;  %v439_v32 = vld [vmem:[%s4490_s11 + $0x430] sm:$0xff]  ;;  %v1497_v38 = vld [vmem:[%s7400_s1 + $0x740] sm:$0xff] }
 0x174   : > { %2377 = vmatprep.mubr.f32.mxu0 %v914_v34  ;;  %2562 = vmatprep.mubr.f32.mxu1 %v916_v35  ;;  %v1856_v7 = vpop.f32.mrf.mxu1  ;;  %v441_v34 = vld [vmem:[%s4490_s11 + $0x440] sm:$0xff]  ;;  %v967_v43 = vmul.f32 %v5707_v10, %v439_v32  ;;  %v1494_v32 = vld [vmem:[%s7400_s1 + $0x728] sm:$0xff] }
 0x175   : > { %2673 = vmatprep.subr.mxu0 %v4349_v0  ;;  %2378 = vmatmul.mubr.f32.gmra.mxu0 %v913_v36  ;;  %v969_v51 = vmul.f32 %v5703_v1, %v441_v34  ;;  %v1463_v7 = vld [vmem:[%s7400_s1 + $0x630] sm:$0xff] }
 0x176   : > { %2563 = vmatmul.mubr.f32.gmra.mxu1 %v915_v39  ;;  %2674 = vmatpush1.msra.mxu0 %v1467_v45  ;;  %v1674_v63 = vpop.f32.mrf.mxu0  ;;  %v968_v39 = vmul.f32 %v5684_v54, %v440_v15  ;;  %v458_v45 = vld [vmem:[%s4490_s11 + $0x4c8] sm:$0xff]  ;;  %v1461_v15 = vld [vmem:[%s7400_s1 + $0x620] sm:$0xff] }
 0x177   : > { %2856 = vmatprep.subr.mxu1 %v4349_v0  ;;  %2675 = vmatprep.subr.mxu0 %v4349_v0  ;;  %v1859_v12 = vpop.f32.mrf.mxu1 }
 0x178   : > { %2857 = vmatpush1.msra.mxu1 %v1500_v55  ;;  %2382 = vmatprep.mubr.f32.mxu0 %v932_v52  ;;  %v5832_v16 = vadd.f32 %v1859_v12, %v1674_v63  ;;  %v1676_v17 = vpop.f32.mrf.mxu0  ;;  %v460_v52 = vld [vmem:[%s4490_s11 + $0x4d8] sm:$0xff]  ;;  %v457_v55 = vld [vmem:[%s4490_s11 + $0x4c0] sm:$0xff]  ;;  %v1462_v12 = vld [vmem:[%s7400_s1 + $0x628] sm:$0xff] }
 0x179   : > { %2567 = vmatprep.mubr.f32.mxu1 %v934_v23  ;;  %2676 = vmatpush1.msra.mxu0 %v1466_v58  ;;  %v1861_v20 = vpop.f32.mrf.mxu1  ;;  %v988_v57 = vmul.f32 %v5699_v61, %v460_v52  ;;  %v985_v13 = vmul.f32 %v5707_v10, %v457_v55  ;;  %v1460_v52 = vld [vmem:[%s7400_s1 + $0x618] sm:$0xff] }
 0x17a   : > { %2858 = vmatprep.subr.mxu1 %v4349_v0  ;;  %2383 = vmatmul.mubr.f32.gmra.mxu0 %v931_v59  ;;  %v986_v59 = vmul.f32 %v5684_v54, %v458_v45  ;;  %v475_v20 = vld [vmem:[%s4490_s11 + $0x550] sm:$0xff] }
 0x17b   : > { %2568 = vmatmul.mubr.f32.gmra.mxu1 %v933_v5  ;;  %2677 = vmatprep.subr.mxu0 %v4349_v0  ;;  %v1679_v30 = vpop.f32.mrf.mxu0  ;;  %v1864_v31 = vpop.f32.mrf.mxu1  ;;  %v1496_v5 = vld [vmem:[%s7400_s1 + $0x738] sm:$0xff]  ;;  %v1003_v34 = vmul.f32 %v5707_v10, %v475_v20  ;;  %v495_v45 = vld [vmem:[%s4490_s11 + $0x5f0] sm:$0xff] }
 0x17c   : > { %2859 = vmatpush1.msra.mxu1 %v1499_v18  ;;  %2678 = vmatpush1.msra.mxu0 %v1465_v19  ;;  %v5852_v33 = vadd.f32 %v1864_v31, %v1679_v30  ;;  %v987_v18 = vmul.f32 %v5703_v1, %v459_v60  ;;  %v478_v19 = vld [vmem:[%s4490_s11 + $0x568] sm:$0xff]  ;;  %v1492_v20 = vld [vmem:[%s7400_s1 + $0x718] sm:$0xff] }
 0x17d   : > { %2860 = vmatprep.subr.mxu1 %v4349_v0  ;;  %2387 = vmatprep.mubr.f32.mxu0 %v950_v11  ;;  %v1681_v35 = vpop.f32.mrf.mxu0  ;;  %v1866_v36 = vpop.f32.mrf.mxu1  ;;  %v1006_v31 = vmul.f32 %v5699_v61, %v478_v19  ;;  %v513_v19 = vld [vmem:[%s4490_s11 + $0x680] sm:$0xff] }
 0x17e   : > { %2572 = vmatprep.mubr.f32.mxu1 %v952_v21  ;;  %2861 = vmatpush1.msra.mxu1 %v1498_v22  ;;  %v477_v21 = vld [vmem:[%s4490_s11 + $0x560] sm:$0xff]  ;;  %v494_v36 = vld [vmem:[%s4490_s11 + $0x5e8] sm:$0xff] }
 0x17f   : > { %2388 = vmatmul.mubr.f32.gmra.mxu0 %v949_v24  ;;  %2573 = vmatmul.mubr.f32.gmra.mxu1 %v951_v25  ;;  %v1684_v47 = vpop.f32.mrf.mxu0  ;;  %v1495_v25 = vld [vmem:[%s7400_s1 + $0x730] sm:$0xff]  ;;  %v1005_v35 = vmul.f32 %v5703_v1, %v477_v21 }
 0x180   : > { %2679 = vmatprep.subr.mxu0 %v4349_v0  ;;  %2862 = vmatprep.subr.mxu1 %v4349_v0  ;;  %v1869_v53 = vpop.f32.mrf.mxu1 }
 0x181   : > { %2680 = vmatpush1.msra.mxu0 %v1464_v37  ;;  %2863 = vmatpush1.msra.mxu1 %v1497_v38  ;;  %v5874_v23 = vadd.f32 %v1869_v53, %v1684_v47  ;;  %v1686_v58 = vpop.f32.mrf.mxu0  ;;  %v496_v37 = vld [vmem:[%s4490_s11 + $0x5f8] sm:$0xff]  ;;  %v1493_v53 = vld [vmem:[%s7400_s1 + $0x720] sm:$0xff] }
 0x182   : > { %2392 = vmatprep.mubr.f32.mxu0 %v968_v39  ;;  %2577 = vmatprep.mubr.f32.mxu1 %v970_v40  ;;  %v1871_v63 = vpop.f32.mrf.mxu1  ;;  %v493_v40 = vld [vmem:[%s4490_s11 + $0x5e0] sm:$0xff]  ;;  %v1024_v55 = vmul.f32 %v5699_v61, %v496_v37 }
 0x183   : > { %2681 = vmatprep.subr.mxu0 %v4349_v0  ;;  %2393 = vmatmul.mubr.f32.gmra.mxu0 %v967_v43  ;;  %v1021_v58 = vmul.f32 %v5707_v10, %v493_v40  ;;  %v1023_v63 = vmul.f32 %v5703_v1, %v495_v45 }
 0x184   : > { %2578 = vmatmul.mubr.f32.gmra.mxu1 %v969_v51  ;;  %2682 = vmatpush1.msra.mxu0 %v1463_v7  ;;  %v1689_v17 = vpop.f32.mrf.mxu0  ;;  %v1022_v7 = vmul.f32 %v5684_v54, %v494_v36 }
 0x185   : > { %2864 = vmatprep.subr.mxu1 %v4349_v0  ;;  %2683 = vmatprep.subr.mxu0 %v4349_v0  ;;  %v1874_v11 = vpop.f32.mrf.mxu1 }
 0x186   : > { %2865 = vmatpush1.msra.mxu1 %v1496_v5  ;;  %2397 = vmatprep.mubr.f32.mxu0 %v986_v59  ;;  %v5894_v22 = vadd.f32 %v1874_v11, %v1689_v17  ;;  %v1691_v24 = vpop.f32.mrf.mxu0  ;;  %v512_v59 = vld [vmem:[%s4490_s11 + $0x678] sm:$0xff]  ;;  %v514_v5 = vld [vmem:[%s4490_s11 + $0x688] sm:$0xff] }
 0x187   : > { %2582 = vmatprep.mubr.f32.mxu1 %v988_v57  ;;  %2684 = vmatpush1.msra.mxu0 %v1462_v12  ;;  %v1876_v30 = vpop.f32.mrf.mxu1  ;;  %v1459_v12 = vld [vmem:[%s7400_s1 + $0x610] sm:$0xff]  ;;  %v1042_v21 = vmul.f32 %v5699_v61, %v514_v5  ;;  %v1458_v24 = vld [vmem:[%s7400_s1 + $0x608] sm:$0xff]  ;;  %v549_v5 = vld [vmem:[%s4490_s11 + $0x7a0] sm:$0xff] }
 0x188   : > { %2866 = vmatprep.subr.mxu1 %v4349_v0  ;;  %2398 = vmatmul.mubr.f32.gmra.mxu0 %v985_v13  ;;  %v511_v13 = vld [vmem:[%s4490_s11 + $0x670] sm:$0xff]  ;;  %v1041_v30 = vmul.f32 %v5703_v1, %v513_v19 }
 0x189   : > { %2583 = vmatmul.mubr.f32.gmra.mxu1 %v987_v18  ;;  %2685 = vmatprep.subr.mxu0 %v4349_v0  ;;  %v1694_v38 = vpop.f32.mrf.mxu0  ;;  %v1879_v39 = vpop.f32.mrf.mxu1  ;;  %v1040_v18 = vmul.f32 %v5684_v54, %v512_v59 }
 0x18a   : > { %2867 = vmatpush1.msra.mxu1 %v1495_v25  ;;  %2686 = vmatpush1.msra.mxu0 %v1461_v15  ;;  %v5914_v43 = vadd.f32 %v1879_v39, %v1694_v38  ;;  %v1039_v25 = vmul.f32 %v5707_v10, %v511_v13  ;;  %v530_v15 = vld [vmem:[%s4490_s11 + $0x708] sm:$0xff]  ;;  %v1491_v38 = vld [vmem:[%s7400_s1 + $0x710] sm:$0xff]  ;;  %v1457_v39 = vld [vmem:[%s7400_s1 + $0x600] sm:$0xff] }
 0x18b   : > { %2868 = vmatprep.subr.mxu1 %v4349_v0  ;;  %2402 = vmatprep.mubr.f32.mxu0 %v1004_v28  ;;  %v1696_v47 = vpop.f32.mrf.mxu0  ;;  %v1881_v51 = vpop.f32.mrf.mxu1  ;;  %v1058_v40 = vmul.f32 %v5684_v54, %v530_v15  ;;  %v1488_v13 = vld [vmem:[%s7400_s1 + $0x6f8] sm:$0xff] }
 0x18c   : > { %2587 = vmatprep.mubr.f32.mxu1 %v1006_v31  ;;  %2869 = vmatpush1.msra.mxu1 %v1494_v32  ;;  %v532_v31 = vld [vmem:[%s4490_s11 + $0x718] sm:$0xff]  ;;  %v1490_v51 = vld [vmem:[%s7400_s1 + $0x708] sm:$0xff] }
 0x18d   : > { %2403 = vmatmul.mubr.f32.gmra.mxu0 %v1003_v34  ;;  %2588 = vmatmul.mubr.f32.gmra.mxu1 %v1005_v35  ;;  %v1699_v60 = vpop.f32.mrf.mxu0  ;;  %v529_v34 = vld [vmem:[%s4490_s11 + $0x700] sm:$0xff]  ;;  %v531_v35 = vld [vmem:[%s4490_s11 + $0x710] sm:$0xff]  ;;  %v1060_v47 = vmul.f32 %v5699_v61, %v532_v31 }
 0x18e   : > { %2687 = vmatprep.subr.mxu0 %v4349_v0  ;;  %2870 = vmatprep.subr.mxu1 %v4349_v0  ;;  %v1884_v57 = vpop.f32.mrf.mxu1 }
 0x18f   : > { %2688 = vmatpush1.msra.mxu0 %v1460_v52  ;;  %2871 = vmatpush1.msra.mxu1 %v1493_v53  ;;  %v5936_v4 = vadd.f32 %v1884_v57, %v1699_v60  ;;  %v1701_v17 = vpop.f32.mrf.mxu0  ;;  %v1057_v52 = vmul.f32 %v5707_v10, %v529_v34  ;;  %v1059_v53 = vmul.f32 %v5703_v1, %v531_v35  ;;  %v547_v60 = vld [vmem:[%s4490_s11 + $0x790] sm:$0xff] }
 0x190   : > { %2407 = vmatprep.mubr.f32.mxu0 %v1022_v7  ;;  %2592 = vmatprep.mubr.f32.mxu1 %v1024_v55  ;;  %v1886_v11 = vpop.f32.mrf.mxu1  ;;  %v548_v7 = vld [vmem:[%s4490_s11 + $0x798] sm:$0xff]  ;;  %v550_v55 = vld [vmem:[%s4490_s11 + $0x7a8] sm:$0xff]  ;;  %v1489_v17 = vld [vmem:[%s7400_s1 + $0x700] sm:$0xff] }
 0x191   : > { %2689 = vmatprep.subr.mxu0 %v4349_v0  ;;  %2408 = vmatmul.mubr.f32.gmra.mxu0 %v1021_v58  ;;  %v1078_v19 = vmul.f32 %v5699_v61, %v550_v55  ;;  %v1075_v11 = vmul.f32 %v5707_v10, %v547_v60  ;;  %v567_v35 = vld [vmem:[%s4490_s11 + $0x830] sm:$0xff] }
 0x192   : > { %2593 = vmatmul.mubr.f32.gmra.mxu1 %v1023_v63  ;;  %2690 = vmatpush1.msra.mxu0 %v1459_v12  ;;  %v1704_v28 = vpop.f32.mrf.mxu0  ;;  %v583_v55 = vld [vmem:[%s4490_s11 + $0x8b0] sm:$0xff] }
 0x193   : > { %2872 = vmatprep.subr.mxu1 %v4349_v0  ;;  %2691 = vmatprep.subr.mxu0 %v4349_v0  ;;  %v1889_v32 = vpop.f32.mrf.mxu1 }
 0x194   : > { %2873 = vmatpush1.msra.mxu1 %v1492_v20  ;;  %2412 = vmatprep.mubr.f32.mxu0 %v1040_v18  ;;  %v5956_v36 = vadd.f32 %v1889_v32, %v1704_v28  ;;  %v1706_v37 = vpop.f32.mrf.mxu0  ;;  %v1076_v18 = vmul.f32 %v5684_v54, %v548_v7  ;;  %v566_v20 = vld [vmem:[%s4490_s11 + $0x828] sm:$0xff]  ;;  %v1487_v28 = vld [vmem:[%s7400_s1 + $0x6f0] sm:$0xff] }
 0x195   : > { %2597 = vmatprep.mubr.f32.mxu1 %v1042_v21  ;;  %2692 = vmatpush1.msra.mxu0 %v1458_v24  ;;  %v1891_v45 = vpop.f32.mrf.mxu1  ;;  %v1077_v24 = vmul.f32 %v5703_v1, %v549_v5  ;;  %v1094_v34 = vmul.f32 %v5684_v54, %v566_v20  ;;  %v1519_v5 = vld [vmem:[%s7400_s1 + $0x7f0] sm:$0xff]  ;;  %v602_v20 = vld [vmem:[%s4490_s11 + $0x948] sm:$0xff] }
 0x196   : > { %2874 = vmatprep.subr.mxu1 %v4349_v0  ;;  %2413 = vmatmul.mubr.f32.gmra.mxu0 %v1039_v25  ;;  %v568_v25 = vld [vmem:[%s4490_s11 + $0x838] sm:$0xff] }
 0x197   : > { %2598 = vmatmul.mubr.f32.gmra.mxu1 %v1041_v30  ;;  %2693 = vmatprep.subr.mxu0 %v4349_v0  ;;  %v1709_v58 = vpop.f32.mrf.mxu0  ;;  %v1894_v59 = vpop.f32.mrf.mxu1  ;;  %v565_v30 = vld [vmem:[%s4490_s11 + $0x820] sm:$0xff] }
 0x198   : > { %2875 = vmatpush1.msra.mxu1 %v1491_v38  ;;  %2694 = vmatpush1.msra.mxu0 %v1457_v39  ;;  %v5976_v63 = vadd.f32 %v1894_v59, %v1709_v58  ;;  %v1520_v38 = vld [vmem:[%s7400_s1 + $0x7f8] sm:$0xff]  ;;  %v1096_v39 = vmul.f32 %v5699_v61, %v568_v25  ;;  %v1093_v45 = vmul.f32 %v5707_v10, %v565_v30  ;;  %v585_v58 = vld [vmem:[%s4490_s11 + $0x8c0] sm:$0xff]  ;;  %v603_v30 = vld [vmem:[%s4490_s11 + $0x950] sm:$0xff] }
 0x199   : > { %2876 = vmatprep.subr.mxu1 %v4349_v0  ;;  %2417 = vmatprep.mubr.f32.mxu0 %v1058_v40  ;;  %v1711_v57 = vpop.f32.mrf.mxu0  ;;  %v1896_v12 = vpop.f32.mrf.mxu1  ;;  %v1486_v40 = vld [vmem:[%s7400_s1 + $0x6e8] sm:$0xff] }
 0x19a   : > { %2602 = vmatprep.mubr.f32.mxu1 %v1060_v47  ;;  %2877 = vmatpush1.msra.mxu1 %v1490_v51  ;;  %v584_v47 = vld [vmem:[%s4490_s11 + $0x8b8] sm:$0xff]  ;;  %v1485_v57 = vld [vmem:[%s7400_s1 + $0x6e0] sm:$0xff] }
 0x19b   : > { %2418 = vmatmul.mubr.f32.gmra.mxu0 %v1057_v52  ;;  %2603 = vmatmul.mubr.f32.gmra.mxu1 %v1059_v53  ;;  %v1714_v21 = vpop.f32.mrf.mxu0  ;;  %v1095_v52 = vmul.f32 %v5703_v1, %v567_v35  ;;  %v586_v53 = vld [vmem:[%s4490_s11 + $0x8c8] sm:$0xff]  ;;  %v1112_v12 = vmul.f32 %v5684_v54, %v584_v47  ;;  %v1484_v35 = vld [vmem:[%s7400_s1 + $0x6d8] sm:$0xff] }
 0x19c   : > { %2695 = vmatprep.subr.mxu0 %v4349_v0  ;;  %2878 = vmatprep.subr.mxu1 %v4349_v0  ;;  %v1899_v15 = vpop.f32.mrf.mxu1 }
 0x19d   : > { %2696 = vmatpush2.msra.mxu0 %v1488_v13  ;;  %2879 = vmatpush1.msra.mxu1 %v1489_v17  ;;  %v5998_v31 = vadd.f32 %v1899_v15, %v1714_v21  ;;  %v1716_v32 = vpop.f32.mrf.mxu0  ;;  %v1114_v17 = vmul.f32 %v5699_v61, %v586_v53  ;;  %v604_v21 = vld [vmem:[%s4490_s11 + $0x958] sm:$0xff]  ;;  %v601_v15 = vld [vmem:[%s4490_s11 + $0x940] sm:$0xff] }
 0x19e   : > { %2422 = vmatprep.mubr.f32.mxu0 %v1076_v18  ;;  %2607 = vmatprep.mubr.f32.mxu1 %v1078_v19  ;;  %v1901_v37 = vpop.f32.mrf.mxu1  ;;  %v1518_v18 = vld [vmem:[%s7400_s1 + $0x7e8] sm:$0xff]  ;;  %v1111_v19 = vmul.f32 %v5707_v10, %v583_v55  ;;  %v619_v55 = vld [vmem:[%s4490_s11 + $0x9d0] sm:$0xff] }
 0x19f   : > { %2697 = vmatprep.subr.mxu0 %v4349_v0  ;;  %2423 = vmatmul.mubr.f32.gmra.mxu0 %v1075_v11  ;;  %v1113_v11 = vmul.f32 %v5703_v1, %v585_v58  ;;  %v1517_v37 = vld [vmem:[%s7400_s1 + $0x7e0] sm:$0xff] }
 0x1a0   : > { %2608 = vmatmul.mubr.f32.gmra.mxu1 %v1077_v24  ;;  %2698 = vmatpush2.msra.mxu0 %v1487_v28  ;;  %v1719_v51 = vpop.f32.mrf.mxu0 }
 0x1a1   : > { %2880 = vmatprep.subr.mxu1 %v4349_v0  ;;  %2699 = vmatprep.subr.mxu0 %v4349_v0  ;;  %v1904_v7 = vpop.f32.mrf.mxu1 }
 0x1a2   : > { %2881 = vmatpush2.msra.mxu1 %v1520_v38  ;;  %2427 = vmatprep.mubr.f32.mxu0 %v1094_v34  ;;  %v6018_v59 = vadd.f32 %v1904_v7, %v1719_v51  ;;  %v1721_v60 = vpop.f32.mrf.mxu0  ;;  %v1130_v38 = vmul.f32 %v5684_v54, %v602_v20  ;;  %v1131_v51 = vmul.f32 %v5703_v1, %v603_v30  ;;  %v1483_v7 = vld [vmem:[%s7400_s1 + $0x6d0] sm:$0xff] }
 0x1a3   : > { %2612 = vmatprep.mubr.f32.mxu1 %v1096_v39  ;;  %2700 = vmatpush2.msra.mxu0 %v1486_v40  ;;  %v1906_v13 = vpop.f32.mrf.mxu1  ;;  %v1132_v39 = vmul.f32 %v5699_v61, %v604_v21  ;;  %v1129_v40 = vmul.f32 %v5707_v10, %v601_v15  ;;  %v640_v21 = vld [vmem:[%s4490_s11 + $0xa78] sm:$0xff]  ;;  %v637_v15 = vld [vmem:[%s4490_s11 + $0xa60] sm:$0xff]  ;;  %v639_v30 = vld [vmem:[%s4490_s11 + $0xa70] sm:$0xff] }
 0x1a4   : > { %2882 = vmatprep.subr.mxu1 %v4349_v0  ;;  %2428 = vmatmul.mubr.f32.gmra.mxu0 %v1093_v45  ;;  %v620_v45 = vld [vmem:[%s4490_s11 + $0x9d8] sm:$0xff] }
 0x1a5   : > { %2613 = vmatmul.mubr.f32.gmra.mxu1 %v1095_v52  ;;  %2701 = vmatprep.subr.mxu0 %v4349_v0  ;;  %v1724_v24 = vpop.f32.mrf.mxu0  ;;  %v1909_v25 = vpop.f32.mrf.mxu1  ;;  %v622_v52 = vld [vmem:[%s4490_s11 + $0x9e8] sm:$0xff]  ;;  %v1516_v13 = vld [vmem:[%s7400_s1 + $0x7d8] sm:$0xff] }
 0x1a6   : > { %2883 = vmatpush2.msra.mxu1 %v1519_v5  ;;  %2702 = vmatpush2.msra.mxu0 %v1485_v57  ;;  %v6038_v28 = vadd.f32 %v1909_v25, %v1724_v24  ;;  %v1148_v5 = vmul.f32 %v5684_v54, %v620_v45  ;;  %v621_v57 = vld [vmem:[%s4490_s11 + $0x9e0] sm:$0xff]  ;;  %v1514_v45 = vld [vmem:[%s7400_s1 + $0x7c8] sm:$0xff] }
 0x1a7   : > { %2884 = vmatprep.subr.mxu1 %v4349_v0  ;;  %2432 = vmatprep.mubr.f32.mxu0 %v1112_v12  ;;  %v1726_v32 = vpop.f32.mrf.mxu0  ;;  %v1911_v34 = vpop.f32.mrf.mxu1  ;;  %v1149_v20 = vmul.f32 %v5703_v1, %v621_v57 }
 0x1a8   : > { %2617 = vmatprep.mubr.f32.mxu1 %v1114_v17  ;;  %2885 = vmatpush2.msra.mxu1 %v1518_v18  ;;  %v1150_v17 = vmul.f32 %v5699_v61, %v622_v52  ;;  %v1482_v18 = vld [vmem:[%s7400_s1 + $0x6c8] sm:$0xff]  ;;  %v1515_v34 = vld [vmem:[%s7400_s1 + $0x7d0] sm:$0xff]  ;;  %v656_v52 = vld [vmem:[%s4490_s11 + $0xaf8] sm:$0xff] }
 0x1a9   : > { %2433 = vmatmul.mubr.f32.gmra.mxu0 %v1111_v19  ;;  %2618 = vmatmul.mubr.f32.gmra.mxu1 %v1113_v11  ;;  %v1729_v47 = vpop.f32.mrf.mxu0  ;;  %v1147_v19 = vmul.f32 %v5707_v10, %v619_v55  ;;  %v638_v11 = vld [vmem:[%s4490_s11 + $0xa68] sm:$0xff] }
 0x1aa   : > { %2703 = vmatprep.subr.mxu0 %v4349_v0  ;;  %2886 = vmatprep.subr.mxu1 %v4349_v0  ;;  %v1914_v53 = vpop.f32.mrf.mxu1 }
 0x1ab   : > { %2704 = vmatpush2.msra.mxu0 %v1484_v35  ;;  %2887 = vmatpush2.msra.mxu1 %v1517_v37  ;;  %v6060_v58 = vadd.f32 %v1914_v53, %v1729_v47  ;;  %v1731_v60 = vpop.f32.mrf.mxu0  ;;  %v1481_v35 = vld [vmem:[%s7400_s1 + $0x6c0] sm:$0xff]  ;;  %v1166_v37 = vmul.f32 %v5684_v54, %v638_v11  ;;  %v1165_v47 = vmul.f32 %v5707_v10, %v637_v15  ;;  %v658_v53 = vld [vmem:[%s4490_s11 + $0xb08] sm:$0xff] }
 0x1ac   : > { %2437 = vmatprep.mubr.f32.mxu0 %v1130_v38  ;;  %2622 = vmatprep.mubr.f32.mxu1 %v1132_v39  ;;  %v1916_v12 = vpop.f32.mrf.mxu1 }
 0x1ad   : > { %2705 = vmatprep.subr.mxu0 %v4349_v0  ;;  %2438 = vmatmul.mubr.f32.gmra.mxu0 %v1129_v40  ;;  %v1168_v40 = vmul.f32 %v5699_v61, %v640_v21  ;;  %v1480_v12 = vld [vmem:[%s7400_s1 + $0x6b8] sm:$0xff] }
 0x1ae   : > { %2623 = vmatmul.mubr.f32.gmra.mxu1 %v1131_v51  ;;  %2706 = vmatpush2.msra.mxu0 %v1483_v7  ;;  %v1167_v51 = vmul.f32 %v5703_v1, %v639_v30  ;;  %v655_v7 = vld [vmem:[%s4490_s11 + $0xaf0] sm:$0xff] }
 0x1af   : > { %2888 = vmatprep.subr.mxu1 %v4349_v0  ;;  %2707 = vmatprep.subr.mxu0 %v4349_v0  ;;  %v1734_v24 = vpop.f32.mrf.mxu0  ;;  %v1919_v25 = vpop.f32.mrf.mxu1 }
 0x1b0   : > { %2889 = vmatpush2.msra.mxu1 %v1516_v13  ;;  %2442 = vmatprep.mubr.f32.mxu0 %v1148_v5  ;;  %v6080_v32 = vadd.f32 %v1919_v25, %v1734_v24  ;;  %v657_v5 = vld [vmem:[%s4490_s11 + $0xb00] sm:$0xff]  ;;  %v676_v25 = vld [vmem:[%s4490_s11 + $0xb98] sm:$0xff] }
 0x1b1   : > { %2627 = vmatprep.mubr.f32.mxu1 %v1150_v17  ;;  %2708 = vmatpush2.msra.mxu0 %v1482_v18  ;;  %v1736_v38 = vpop.f32.mrf.mxu0  ;;  %v1921_v39 = vpop.f32.mrf.mxu1  ;;  %v1513_v13 = vld [vmem:[%s7400_s1 + $0x7c0] sm:$0xff]  ;;  %v1184_v17 = vmul.f32 %v5684_v54, %v656_v52  ;;  %v1186_v18 = vmul.f32 %v5699_v61, %v658_v53  ;;  %v1185_v24 = vmul.f32 %v5703_v1, %v657_v5  ;;  %v1478_v52 = vld [vmem:[%s7400_s1 + $0x6a8] sm:$0xff] }
 0x1b2   : > { %2890 = vmatprep.subr.mxu1 %v4349_v0  ;;  %2443 = vmatmul.mubr.f32.gmra.mxu0 %v1147_v19  ;;  %v675_v39 = vld [vmem:[%s4490_s11 + $0xb90] sm:$0xff]  ;;  %v694_v5 = vld [vmem:[%s4490_s11 + $0xc28] sm:$0xff] }
 0x1b3   : > { %2628 = vmatmul.mubr.f32.gmra.mxu1 %v1149_v20  ;;  %2709 = vmatprep.subr.mxu0 %v4349_v0  ;;  %v674_v20 = vld [vmem:[%s4490_s11 + $0xb88] sm:$0xff] }
 0x1b4   : > { %2891 = vmatpush2.msra.mxu1 %v1515_v34  ;;  %2710 = vmatpush2.msra.mxu0 %v1481_v35  ;;  %v1989_v55 = vpop.f32.mrf.mxu0  ;;  %v2174_v60 = vpop.f32.mrf.mxu1  ;;  %v1479_v34 = vld [vmem:[%s7400_s1 + $0x6b0] sm:$0xff]  ;;  %v673_v35 = vld [vmem:[%s4490_s11 + $0xb80] sm:$0xff]  ;;  %v1202_v38 = vmul.f32 %v5684_v54, %v674_v20 }
 0x1b5   : > { %2892 = vmatprep.subr.mxu1 %v4349_v0  ;;  %2447 = vmatprep.mubr.f32.mxu0 %v1166_v37  ;;  %v1990_v57 = vadd.f32 %v1989_v55, %v5592_v29  ;;  %v1183_v29 = vmul.f32 %v5707_v10, %v655_v7  ;;  %v1201_v53 = vmul.f32 %v5707_v10, %v673_v35  ;;  %v692_v7 = vld [vmem:[%s4490_s11 + $0xc18] sm:$0xff] }
 0x1b6   : > { %2632 = vmatprep.mubr.f32.mxu1 %v1168_v40  ;;  %2893 = vmatpush2.msra.mxu1 %v1514_v45  ;;  %v1991_v19 = vpop.f32.mrf.mxu0  ;;  %v2176_v11 = vpop.f32.mrf.mxu1  ;;  %v712_v35 = vld [vmem:[%s4490_s11 + $0xcb8] sm:$0xff] }
 0x1b7   : > { %2448 = vmatmul.mubr.f32.gmra.mxu0 %v1165_v47  ;;  %2633 = vmatmul.mubr.f32.gmra.mxu1 %v1167_v51  ;;  %v6113_v21 = vadd.f32 %v2174_v60, %v1990_v57  ;;  %v1512_v47 = vld [vmem:[%s7400_s1 + $0x7b8] sm:$0xff]  ;;  %v1204_v51 = vmul.f32 %v5699_v61, %v676_v25  ;;  %v1203_v60 = vmul.f32 %v5703_v1, %v675_v39  ;;  %v1511_v19 = vld [vmem:[%s7400_s1 + $0x7b0] sm:$0xff]  ;;  %v1477_v11 = vld [vmem:[%s7400_s1 + $0x6a0] sm:$0xff] }
 0x1b8   : > { %2711 = vmatprep.subr.mxu0 %v4349_v0  ;;  %2894 = vmatprep.subr.mxu1 %v4349_v0  ;;  %v1994_v15 = vpop.f32.mrf.mxu0  ;;  %v2179_v30 = vpop.f32.mrf.mxu1  ;;  %v1510_v25 = vld [vmem:[%s7400_s1 + $0x7a8] sm:$0xff]  ;;  %v709_v39 = vld [vmem:[%s4490_s11 + $0xca0] sm:$0xff] }
 0x1b9   : > { %2712 = vmatpush2.msra.mxu0 %v1480_v12  ;;  %2895 = vmatpush2.msra.mxu1 %v1513_v13  ;;  %v1995_v37 = vadd.f32 %v1994_v15, %v5612_v44  ;;  %v691_v13 = vld [vmem:[%s4490_s11 + $0xc10] sm:$0xff] }
 0x1ba   : > { %2452 = vmatprep.mubr.f32.mxu0 %v1184_v17  ;;  %2637 = vmatprep.mubr.f32.mxu1 %v1186_v18  ;;  %v1996_v40 = vpop.f32.mrf.mxu0  ;;  %v2181_v45 = vpop.f32.mrf.mxu1  ;;  %v693_v17 = vld [vmem:[%s4490_s11 + $0xc20] sm:$0xff]  ;;  %v1219_v15 = vmul.f32 %v5707_v10, %v691_v13  ;;  %v730_v13 = vld [vmem:[%s4490_s11 + $0xd48] sm:$0xff] }
 0x1bb   : > { %2713 = vmatprep.subr.mxu0 %v4349_v0  ;;  %2453 = vmatmul.mubr.f32.gmra.mxu0 %v1183_v29  ;;  %v6131_v44 = vadd.f32 %v2179_v30, %v1995_v37  ;;  %v1221_v30 = vmul.f32 %v5703_v1, %v693_v17  ;;  %v711_v45 = vld [vmem:[%s4490_s11 + $0xcb0] sm:$0xff] }
 0x1bc   : > { %2638 = vmatmul.mubr.f32.gmra.mxu1 %v1185_v24  ;;  %2714 = vmatpush2.msra.mxu0 %v1479_v34  ;;  %v1999_v55 = vpop.f32.mrf.mxu0  ;;  %v1222_v24 = vmul.f32 %v5699_v61, %v694_v5  ;;  %v710_v34 = vld [vmem:[%s4490_s11 + $0xca8] sm:$0xff]  ;;  %v728_v5 = vld [vmem:[%s4490_s11 + $0xd38] sm:$0xff] }
 0x1bd   : > { %2896 = vmatprep.subr.mxu1 %v4349_v0  ;;  %2715 = vmatprep.subr.mxu0 %v4349_v0  ;;  %v2000_v57 = vadd.f32 %v1999_v55, %v5632_v8  ;;  %v2184_v12 = vpop.f32.mrf.mxu1  ;;  %v1220_v8 = vmul.f32 %v5684_v54, %v692_v7  ;;  %v1240_v7 = vmul.f32 %v5699_v61, %v712_v35  ;;  %v4250_v35 = vld [vmem:[#allocation4 + $0x8] sm:$0xff] }
 0x1be   : > { %2897 = vmatpush2.msra.mxu1 %v1512_v47  ;;  %2457 = vmatprep.mubr.f32.mxu0 %v1202_v38  ;;  %v2001_v18 = vpop.f32.mrf.mxu0 }
 0x1bf   : > { %2642 = vmatprep.mubr.f32.mxu1 %v1204_v51  ;;  %2716 = vmatpush2.msra.mxu0 %v1478_v52  ;;  %v6152_v29 = vadd.f32 %v2184_v12, %v2000_v57  ;;  %v2186_v20 = vpop.f32.mrf.mxu1  ;;  %v1476_v52 = vld [vmem:[%s7400_s1 + $0x698] sm:$0xff]  ;;  %v1239_v12 = vmul.f32 %v5703_v1, %v711_v45 }
 0x1c0   : > { %2898 = vmatprep.subr.mxu1 %v4349_v0  ;;  %2458 = vmatmul.mubr.f32.gmra.mxu0 %v1201_v53  ;;  %v1509_v53 = vld [vmem:[%s7400_s1 + $0x7a0] sm:$0xff]  ;;  %v1256_v20 = vmul.f32 %v5684_v54, %v728_v5  ;;  %v338_v5 = vld [vmem:[%s4490_s11 + $0x108] sm:$0xff] }
 0x1c1   : > { %2643 = vmatmul.mubr.f32.gmra.mxu1 %v1203_v60  ;;  %2717 = vmatprep.subr.mxu0 %v4349_v0  ;;  %v2004_v37 = vpop.f32.mrf.mxu0  ;;  %v2189_v38 = vpop.f32.mrf.mxu1  ;;  %v1237_v60 = vmul.f32 %v5707_v10, %v709_v39  ;;  %v318_v39 = vld [vmem:[%s4490_s11 + $0x68] sm:$0xff] }
 0x1c2   : > { %2899 = vmatpush2.msra.mxu1 %v1511_v19  ;;  %2718 = vmatpush2.msra.mxu0 %v1477_v11  ;;  %v2005_v40 = vadd.f32 %v2004_v37, %v5652_v14  ;;  %v1238_v14 = vmul.f32 %v5684_v54, %v710_v34  ;;  %v1475_v19 = vld [vmem:[%s7400_s1 + $0x690] sm:$0xff]  ;;  %v6201_v54 = vrot.slane %v4250_v35, %v765_v6 }
 0x1c3   : > { %2900 = vmatprep.subr.mxu1 %v4349_v0  ;;  %2462 = vmatprep.mubr.f32.mxu0 %v1220_v8  ;;  %v2006_v47 = vpop.f32.mrf.mxu0  ;;  %v2191_v51 = vpop.f32.mrf.mxu1  ;;  %v727_v11 = vld [vmem:[%s4490_s11 + $0xd30] sm:$0xff]  ;;  %v6215_v6 = vrot.slane %v4250_v35, %v773_v9  ;;  %v317_v9 = vld [vmem:[%s4490_s11 + $0x60] sm:$0xff] }
 0x1c4   : > { %2647 = vmatprep.mubr.f32.mxu1 %v1222_v24  ;;  %2901 = vmatpush2.msra.mxu1 %v1510_v25  ;;  %v6176_v55 = vadd.f32 %v2189_v38, %v2005_v40  ;;  %v729_v24 = vld [vmem:[%s4490_s11 + $0xd40] sm:$0xff]  ;;  %v1255_v34 = vmul.f32 %v5707_v10, %v727_v11  ;;  %v1507_v10 = vld [vmem:[%s7400_s1 + $0x790] sm:$0xff]  ;;  %v6220_v47 = vrot.slane %v4250_v35, %v761_v49 }
 0x1c5   : > { %2463 = vmatmul.mubr.f32.gmra.mxu0 %v1219_v15  ;;  %2648 = vmatmul.mubr.f32.gmra.mxu1 %v1221_v30  ;;  %v2009_v57 = vpop.f32.mrf.mxu0  ;;  %v1258_v30 = vmul.f32 %v5699_v61, %v730_v13  ;;  %v1474_v61 = vld [vmem:[%s7400_s1 + $0x688] sm:$0xff]  ;;  %v1257_v38 = vmul.f32 %v5703_v1, %v729_v24  ;;  %v6224_v51 = vrot.slane %v4250_v35, %v769_v50  ;;  %v320_v1 = vld [vmem:[%s4490_s11 + $0x78] sm:$0xff]  ;;  %v1473_v49 = vld [vmem:[%s7400_s1 + $0x680] sm:$0xff] }
 0x1c6   : > { %2719 = vmatprep.subr.mxu0 %v4349_v0  ;;  %2902 = vmatprep.subr.mxu1 %v4349_v0  ;;  %v2010_v17 = vadd.f32 %v2009_v57, %v5673_v42  ;;  %v2194_v18 = vpop.f32.mrf.mxu1  ;;  %v1508_v42 = vld [vmem:[%s7400_s1 + $0x798] sm:$0xff]  ;;  %v846_v50 = vmul.f32 %v6201_v54, %v318_v39  ;;  %v1505_v13 = vld [vmem:[%s7400_s1 + $0x780] sm:$0xff] }
 0x1c7   : > { %2720 = vmatpush2.msra.mxu0 %v1476_v52  ;;  %2903 = vmatpush2.msra.mxu1 %v1509_v53  ;;  %v2011_v8 = vpop.f32.mrf.mxu0 }
 0x1c8   : > { %2467 = vmatprep.mubr.f32.mxu0 %v1238_v14  ;;  %2652 = vmatprep.mubr.f32.mxu1 %v1240_v7  ;;  %v6191_v25 = vadd.f32 %v2194_v18, %v2010_v17  ;;  %v2196_v15 = vpop.f32.mrf.mxu1  ;;  %v336_v7 = vld [vmem:[%s4490_s11 + $0xf8] sm:$0xff]  ;;  %v845_v17 = vmul.f32 %v6220_v47, %v317_v9  ;;  %v335_v8 = vld [vmem:[%s4490_s11 + $0xf0] sm:$0xff]  ;;  %v353_v9 = vld [vmem:[%s4490_s11 + $0x180] sm:$0xff] }
 0x1c9   : > { %2721 = vmatprep.subr.mxu0 %v4349_v0  ;;  %2468 = vmatmul.mubr.f32.gmra.mxu0 %v1237_v60  ;;  %v848_v60 = vmul.f32 %v6215_v6, %v320_v1  ;;  %v864_v11 = vmul.f32 %v6201_v54, %v336_v7  ;;  %v1535_v1 = vld [vmem:[%s7400_s1 + $0x870] sm:$0xff]  ;;  %v1534_v7 = vld [vmem:[%s7400_s1 + $0x868] sm:$0xff] }
 0x1ca   : > { %2653 = vmatmul.mubr.f32.gmra.mxu1 %v1239_v12  ;;  %2722 = vmatpush2.msra.mxu0 %v1475_v19  ;;  %v2014_v37 = vpop.f32.mrf.mxu0 }
 0x1cb   : > { %2904 = vmatprep.subr.mxu1 %v4349_v0  ;;  %2723 = vmatprep.subr.mxu0 %v4349_v0  ;;  %v2015_v40 = vadd.f32 %v2014_v37, %v5709_v56  ;;  %v2199_v45 = vpop.f32.mrf.mxu1  ;;  %v319_v56 = vld [vmem:[%s4490_s11 + $0x70] sm:$0xff]  ;;  %v863_v37 = vmul.f32 %v6220_v47, %v335_v8 }
 0x1cc   : > { %2905 = vmatpush2.msra.mxu1 %v1508_v42  ;;  %2472 = vmatprep.mubr.f32.mxu0 %v1256_v20  ;;  %v2016_v52 = vpop.f32.mrf.mxu0  ;;  %v847_v18 = vmul.f32 %v6224_v51, %v319_v56  ;;  %v337_v20 = vld [vmem:[%s4490_s11 + $0x100] sm:$0xff]  ;;  %v866_v42 = vmul.f32 %v6215_v6, %v338_v5  ;;  %v374_v5 = vld [vmem:[%s4490_s11 + $0x228] sm:$0xff] }
 0x1cd   : > { %2906 = vmatprep.subr.mxu1 %v4349_v0  ;;  %2657 = vmatprep.mubr.f32.mxu1 %v1258_v30  ;;  %v6230_v53 = vadd.f32 %v2199_v45, %v2015_v40  ;;  %v2201_v14 = vpop.f32.mrf.mxu1  ;;  %v355_v40 = vld [vmem:[%s4490_s11 + $0x190] sm:$0xff] }
 0x1ce   : > { %2724 = vmatpush2.msra.mxu0 %v1474_v61  ;;  %2907 = vmatpush2.msra.mxu1 %v1507_v10  ;;  %v865_v61 = vmul.f32 %v6224_v51, %v337_v20  ;;  %v356_v10 = vld [vmem:[%s4490_s11 + $0x198] sm:$0xff]  ;;  %v902_v20 = vmul.f32 %v6215_v6, %v374_v5  ;;  %v1531_v5 = vld [vmem:[%s7400_s1 + $0x850] sm:$0xff] }
 0x1cf   : > { %2473 = vmatmul.mubr.f32.gmra.mxu0 %v1255_v34  ;;  %2658 = vmatmul.mubr.f32.gmra.mxu1 %v1257_v38  ;;  %v2019_v57 = vpop.f32.mrf.mxu0  ;;  %v2204_v12 = vpop.f32.mrf.mxu1  ;;  %v354_v34 = vld [vmem:[%s4490_s11 + $0x188] sm:$0xff]  ;;  %v884_v14 = vmul.f32 %v6215_v6, %v356_v10  ;;  %v391_v10 = vld [vmem:[%s4490_s11 + $0x2b0] sm:$0xff] }
 0x1d0   : > { %2908 = vmatprep.subr.mxu1 %v4349_v0  ;;  %2725 = vmatprep.subr.mxu0 %v4349_v0  ;;  %v2020_v19 = vadd.f32 %v2019_v57, %v5731_v26  ;;  %v1536_v26 = vld [vmem:[%s7400_s1 + $0x878] sm:$0xff]  ;;  %v882_v52 = vmul.f32 %v6201_v54, %v354_v34 }
 0x1d1   : > { %2909 = vmatpush2.msra.mxu1 %v1506_v46  ;;  %2726 = vmatpush2.msra.mxu0 %v1473_v49  ;;  %v2021_v24 = vpop.f32.mrf.mxu0  ;;  %v2206_v15 = vpop.f32.mrf.mxu1  ;;  %v883_v46 = vmul.f32 %v6224_v51, %v355_v40  ;;  %v372_v49 = vld [vmem:[%s4490_s11 + $0x218] sm:$0xff] }
 0x1d2   : > { %2910 = vmatprep.subr.mxu1 %v4349_v0  ;;  %2727 = vmatprep.mubr.f32.mxu0 %v846_v50  ;;  %v6255_v30 = vadd.f32 %v2204_v12, %v2020_v19  ;;  %v900_v19 = vmul.f32 %v6201_v54, %v372_v49  ;;  %v1532_v40 = vld [vmem:[%s7400_s1 + $0x858] sm:$0xff] }
 0x1d3   : > { %2911 = vmatpush2.msra.mxu1 %v1505_v13  ;;  %2912 = vmatprep.mubr.f32.mxu1 %v848_v60  ;;  %v2024_v35 = vpop.f32.mrf.mxu0  ;;  %v881_v60 = vmul.f32 %v6220_v47, %v353_v9  ;;  %v371_v13 = vld [vmem:[%s4490_s11 + $0x210] sm:$0xff]  ;;  %v408_v9 = vld [vmem:[%s4490_s11 + $0x338] sm:$0xff] }
 0x1d4   : > { %2728 = vmatmul.mubr.f32.vlgmr.msra.gmra.mxu0 %v845_v17  ;;  %2913 = vmatmul.mubr.f32.vlgmr.msra.gmra.mxu1 %v847_v18  ;;  %v2025_v38 = vadd.f32 %v2024_v35, %v5747_v41  ;;  %v2209_v39 = vpop.f32.mrf.mxu1  ;;  %v373_v17 = vld [vmem:[%s4490_s11 + $0x220] sm:$0xff]  ;;  %v899_v24 = vmul.f32 %v6220_v47, %v371_v13 }
 0x1d5   : > { %3033 = vmatprep.subr.mxu0 %v4349_v0  ;;  %2732 = vmatprep.mubr.f32.mxu0 %v864_v11  ;;  %v2026_v45 = vpop.f32.mrf.mxu0  ;;  %v901_v15 = vmul.f32 %v6224_v51, %v373_v17 }
 0x1d6   : > { %3034 = vmatpush1.msra.mxu0 %v1536_v26  ;;  %2917 = vmatprep.mubr.f32.mxu1 %v866_v42  ;;  %v6272_v56 = vadd.f32 %v2209_v39, %v2025_v38  ;;  %v2211_v41 = vpop.f32.mrf.mxu1  ;;  %v390_v42 = vld [vmem:[%s4490_s11 + $0x2a8] sm:$0xff] }
 0x1d7   : > { %3035 = vmatprep.subr.mxu0 %v4349_v0  ;;  %4077 = vmatprep.subr.mxu1 %v4349_v0  ;;  %v918_v45 = vmul.f32 %v6201_v54, %v390_v42 }
 0x1d8   : > { %2733 = vmatmul.mubr.f32.gmra.mxu0 %v863_v37  ;;  %2918 = vmatmul.mubr.f32.gmra.mxu1 %v865_v61  ;;  %v2029_v50 = vpop.f32.mrf.mxu0  ;;  %v389_v37 = vld [vmem:[%s4490_s11 + $0x2a0] sm:$0xff] }
 0x1d9   : > { %3036 = vmatpush1.msra.mxu0 %v1535_v1  ;;  %4109 = vmatpush1.msra.mxu1 %v1536_v26  ;;  %v2030_v57 = vadd.f32 %v2029_v50, %v5770_v2  ;;  %v2214_v12 = vpop.f32.mrf.mxu1  ;;  %v1533_v2 = vld [vmem:[%s7400_s1 + $0x860] sm:$0xff]  ;;  %v392_v26 = vld [vmem:[%s4490_s11 + $0x2b8] sm:$0xff] }
 0x1da   : > { %3037 = vmatprep.subr.mxu0 %v4349_v0  ;;  %2737 = vmatprep.mubr.f32.mxu0 %v882_v52  ;;  %v2031_v18 = vpop.f32.mrf.mxu0 }
 0x1db   : > { %2922 = vmatprep.mubr.f32.mxu1 %v884_v14  ;;  %4078 = vmatprep.subr.mxu1 %v4349_v0  ;;  %v6290_v11 = vadd.f32 %v2214_v12, %v2030_v57  ;;  %v2216_v8 = vpop.f32.mrf.mxu1  ;;  %v919_v14 = vmul.f32 %v6224_v51, %v391_v10  ;;  %v936_v57 = vmul.f32 %v6201_v54, %v408_v9  ;;  %v407_v12 = vld [vmem:[%s4490_s11 + $0x330] sm:$0xff] }
 0x1dc   : > { %3038 = vmatpush1.msra.mxu0 %v1534_v7  ;;  %2923 = vmatmul.mubr.f32.gmra.mxu1 %v883_v46  ;;  %v410_v46 = vld [vmem:[%s4490_s11 + $0x348] sm:$0xff] }
 0x1dd   : > { %2738 = vmatmul.mubr.f32.gmra.mxu0 %v881_v60  ;;  %4110 = vmatpush1.msra.mxu1 %v1535_v1  ;;  %v2034_v34 = vpop.f32.mrf.mxu0  ;;  %v2219_v35 = vpop.f32.mrf.mxu1  ;;  %v920_v1 = vmul.f32 %v6215_v6, %v392_v26  ;;  %v425_v26 = vld [vmem:[%s4490_s11 + $0x3c0] sm:$0xff] }
 0x1de   : > { %3039 = vmatprep.subr.mxu0 %v4349_v0  ;;  %4079 = vmatprep.subr.mxu1 %v4349_v0  ;;  %v2035_v61 = vadd.f32 %v2034_v34, %v5790_v27  ;;  %v917_v27 = vmul.f32 %v6220_v47, %v389_v37  ;;  %v427_v34 = vld [vmem:[%s4490_s11 + $0x3d0] sm:$0xff] }
 0x1df   : > { %3040 = vmatpush1.msra.mxu0 %v1533_v2  ;;  %2742 = vmatprep.mubr.f32.mxu0 %v900_v19  ;;  %v2036_v38 = vpop.f32.mrf.mxu0  ;;  %v2221_v39 = vpop.f32.mrf.mxu1  ;;  %v426_v19 = vld [vmem:[%s4490_s11 + $0x3c8] sm:$0xff] }
 0x1e0   : > { %2927 = vmatprep.mubr.f32.mxu1 %v902_v20  ;;  %4111 = vmatpush1.msra.mxu1 %v1534_v7  ;;  %v6310_v52 = vadd.f32 %v2219_v35, %v2035_v61  ;;  %v409_v7 = vld [vmem:[%s4490_s11 + $0x340] sm:$0xff]  ;;  %v935_v20 = vmul.f32 %v6220_v47, %v407_v12  ;;  %v954_v37 = vmul.f32 %v6201_v54, %v426_v19  ;;  %v462_v12 = vld [vmem:[%s4490_s11 + $0x4e8] sm:$0xff] }
 0x1e1   : > { %2743 = vmatmul.mubr.f32.gmra.mxu0 %v899_v24  ;;  %2928 = vmatmul.mubr.f32.gmra.mxu1 %v901_v15  ;;  %v2039_v41 = vpop.f32.mrf.mxu0  ;;  %v937_v18 = vmul.f32 %v6224_v51, %v409_v7  ;;  %v428_v24 = vld [vmem:[%s4490_s11 + $0x3d8] sm:$0xff]  ;;  %v953_v39 = vmul.f32 %v6220_v47, %v425_v26 }
 0x1e2   : > { %3041 = vmatprep.subr.mxu0 %v4349_v0  ;;  %4080 = vmatprep.subr.mxu1 %v4349_v0  ;;  %v2040_v49 = vadd.f32 %v2039_v41, %v5812_v48  ;;  %v2224_v50 = vpop.f32.mrf.mxu1  ;;  %v938_v48 = vmul.f32 %v6215_v6, %v410_v46  ;;  %v956_v38 = vmul.f32 %v6215_v6, %v428_v24  ;;  %v443_v41 = vld [vmem:[%s4490_s11 + $0x450] sm:$0xff]  ;;  %v445_v46 = vld [vmem:[%s4490_s11 + $0x460] sm:$0xff]  ;;  %v1528_v7 = vld [vmem:[%s7400_s1 + $0x838] sm:$0xff] }
 0x1e3   : > { %3042 = vmatpush1.msra.mxu0 %v1532_v40  ;;  %4112 = vmatpush1.msra.mxu1 %v1533_v2  ;;  %v2041_v60 = vpop.f32.mrf.mxu0  ;;  %v1530_v2 = vld [vmem:[%s7400_s1 + $0x848] sm:$0xff]  ;;  %v1527_v24 = vld [vmem:[%s7400_s1 + $0x830] sm:$0xff] }
 0x1e4   : > { %2747 = vmatprep.mubr.f32.mxu0 %v918_v45  ;;  %2932 = vmatprep.mubr.f32.mxu1 %v920_v1  ;;  %v6325_v13 = vadd.f32 %v2224_v50, %v2040_v49  ;;  %v2226_v17 = vpop.f32.mrf.mxu1  ;;  %v444_v45 = vld [vmem:[%s4490_s11 + $0x458] sm:$0xff]  ;;  %v446_v1 = vld [vmem:[%s4490_s11 + $0x468] sm:$0xff] }
 0x1e5   : > { %3043 = vmatprep.subr.mxu0 %v4349_v0  ;;  %2748 = vmatmul.mubr.f32.gmra.mxu0 %v917_v27  ;;  %v972_v60 = vmul.f32 %v6201_v54, %v444_v45 }
 0x1e6   : > { %2933 = vmatmul.mubr.f32.gmra.mxu1 %v919_v14  ;;  %4081 = vmatprep.subr.mxu1 %v4349_v0  ;;  %v2044_v8 = vpop.f32.mrf.mxu0 }
 0x1e7   : > { %3044 = vmatpush1.msra.mxu0 %v1531_v5  ;;  %4113 = vmatpush1.msra.mxu1 %v1532_v40  ;;  %v2045_v15 = vadd.f32 %v2044_v8, %v5832_v16  ;;  %v2229_v42 = vpop.f32.mrf.mxu1  ;;  %v1529_v16 = vld [vmem:[%s7400_s1 + $0x840] sm:$0xff]  ;;  %v955_v40 = vmul.f32 %v6224_v51, %v427_v34 }
 0x1e8   : > { %3045 = vmatprep.subr.mxu0 %v4349_v0  ;;  %2752 = vmatprep.mubr.f32.mxu0 %v936_v57  ;;  %v2046_v35 = vpop.f32.mrf.mxu0 }
 0x1e9   : > { %2937 = vmatprep.mubr.f32.mxu1 %v938_v48  ;;  %4082 = vmatprep.subr.mxu1 %v4349_v0  ;;  %v6343_v61 = vadd.f32 %v2229_v42, %v2045_v15  ;;  %v2231_v10 = vpop.f32.mrf.mxu1  ;;  %v973_v48 = vmul.f32 %v6224_v51, %v445_v46  ;;  %v990_v15 = vmul.f32 %v6201_v54, %v462_v12  ;;  %v461_v42 = vld [vmem:[%s4490_s11 + $0x4e0] sm:$0xff] }
 0x1ea   : > { %3046 = vmatpush1.msra.mxu0 %v1530_v2  ;;  %2938 = vmatmul.mubr.f32.gmra.mxu1 %v937_v18  ;;  %v464_v18 = vld [vmem:[%s4490_s11 + $0x4f8] sm:$0xff] }
 0x1eb   : > { %2753 = vmatmul.mubr.f32.gmra.mxu0 %v935_v20  ;;  %4114 = vmatpush1.msra.mxu1 %v1531_v5  ;;  %v2049_v27 = vpop.f32.mrf.mxu0  ;;  %v2234_v9 = vpop.f32.mrf.mxu1  ;;  %v974_v5 = vmul.f32 %v6215_v6, %v446_v1  ;;  %v479_v1 = vld [vmem:[%s4490_s11 + $0x570] sm:$0xff] }
 0x1ec   : > { %3047 = vmatprep.subr.mxu0 %v4349_v0  ;;  %4083 = vmatprep.subr.mxu1 %v4349_v0  ;;  %v2050_v14 = vadd.f32 %v2049_v27, %v5852_v33  ;;  %v971_v33 = vmul.f32 %v6220_v47, %v443_v41  ;;  %v481_v27 = vld [vmem:[%s4490_s11 + $0x580] sm:$0xff] }
 0x1ed   : > { %3048 = vmatpush1.msra.mxu0 %v1529_v16  ;;  %2757 = vmatprep.mubr.f32.mxu0 %v954_v37  ;;  %v2051_v49 = vpop.f32.mrf.mxu0  ;;  %v2236_v50 = vpop.f32.mrf.mxu1  ;;  %v480_v37 = vld [vmem:[%s4490_s11 + $0x578] sm:$0xff] }
 0x1ee   : > { %2942 = vmatprep.mubr.f32.mxu1 %v956_v38  ;;  %4115 = vmatpush1.msra.mxu1 %v1530_v2  ;;  %v6363_v57 = vadd.f32 %v2234_v9, %v2050_v14  ;;  %v463_v2 = vld [vmem:[%s4490_s11 + $0x4f0] sm:$0xff]  ;;  %v989_v38 = vmul.f32 %v6220_v47, %v461_v42  ;;  %v1008_v41 = vmul.f32 %v6201_v54, %v480_v37  ;;  %v516_v42 = vld [vmem:[%s4490_s11 + $0x698] sm:$0xff] }
 0x1ef   : > { %2758 = vmatmul.mubr.f32.gmra.mxu0 %v953_v39  ;;  %2943 = vmatmul.mubr.f32.gmra.mxu1 %v955_v40  ;;  %v2054_v17 = vpop.f32.mrf.mxu0  ;;  %v991_v35 = vmul.f32 %v6224_v51, %v463_v2  ;;  %v482_v39 = vld [vmem:[%s4490_s11 + $0x588] sm:$0xff]  ;;  %v1007_v50 = vmul.f32 %v6220_v47, %v479_v1  ;;  %v1524_v2 = vld [vmem:[%s7400_s1 + $0x818] sm:$0xff] }
 0x1f0   : > { %3049 = vmatprep.subr.mxu0 %v4349_v0  ;;  %4084 = vmatprep.subr.mxu1 %v4349_v0  ;;  %v2055_v19 = vadd.f32 %v2054_v17, %v5874_v23  ;;  %v2239_v8 = vpop.f32.mrf.mxu1  ;;  %v992_v23 = vmul.f32 %v6215_v6, %v464_v18  ;;  %v1010_v49 = vmul.f32 %v6215_v6, %v482_v39  ;;  %v497_v17 = vld [vmem:[%s4490_s11 + $0x600] sm:$0xff]  ;;  %v499_v18 = vld [vmem:[%s4490_s11 + $0x610] sm:$0xff] }
 0x1f1   : > { %3050 = vmatpush1.msra.mxu0 %v1528_v7  ;;  %4116 = vmatpush1.msra.mxu1 %v1529_v16  ;;  %v2056_v20 = vpop.f32.mrf.mxu0  ;;  %v1526_v16 = vld [vmem:[%s7400_s1 + $0x828] sm:$0xff]  ;;  %v1523_v39 = vld [vmem:[%s7400_s1 + $0x810] sm:$0xff] }
 0x1f2   : > { %2762 = vmatprep.mubr.f32.mxu0 %v972_v60  ;;  %2947 = vmatprep.mubr.f32.mxu1 %v974_v5  ;;  %v6378_v26 = vadd.f32 %v2239_v8, %v2055_v19  ;;  %v2241_v34 = vpop.f32.mrf.mxu1  ;;  %v498_v60 = vld [vmem:[%s4490_s11 + $0x608] sm:$0xff]  ;;  %v500_v5 = vld [vmem:[%s4490_s11 + $0x618] sm:$0xff] }
 0x1f3   : > { %3051 = vmatprep.subr.mxu0 %v4349_v0  ;;  %2763 = vmatmul.mubr.f32.gmra.mxu0 %v971_v33  ;;  %v1026_v20 = vmul.f32 %v6201_v54, %v498_v60 }
 0x1f4   : > { %2948 = vmatmul.mubr.f32.gmra.mxu1 %v973_v48  ;;  %4085 = vmatprep.subr.mxu1 %v4349_v0  ;;  %v2059_v10 = vpop.f32.mrf.mxu0 }
 0x1f5   : > { %3052 = vmatpush1.msra.mxu0 %v1527_v24  ;;  %4117 = vmatpush1.msra.mxu1 %v1528_v7  ;;  %v2060_v40 = vadd.f32 %v2059_v10, %v5894_v22  ;;  %v2244_v45 = vpop.f32.mrf.mxu1  ;;  %v1525_v22 = vld [vmem:[%s7400_s1 + $0x820] sm:$0xff]  ;;  %v1009_v7 = vmul.f32 %v6224_v51, %v481_v27 }
 0x1f6   : > { %3053 = vmatprep.subr.mxu0 %v4349_v0  ;;  %2767 = vmatprep.mubr.f32.mxu0 %v990_v15  ;;  %v2061_v9 = vpop.f32.mrf.mxu0 }
 0x1f7   : > { %2952 = vmatprep.mubr.f32.mxu1 %v992_v23  ;;  %4086 = vmatprep.subr.mxu1 %v4349_v0  ;;  %v6396_v14 = vadd.f32 %v2244_v45, %v2060_v40  ;;  %v2246_v46 = vpop.f32.mrf.mxu1  ;;  %v1027_v23 = vmul.f32 %v6224_v51, %v499_v18  ;;  %v1044_v40 = vmul.f32 %v6201_v54, %v516_v42  ;;  %v515_v45 = vld [vmem:[%s4490_s11 + $0x690] sm:$0xff] }
 0x1f8   : > { %3054 = vmatpush1.msra.mxu0 %v1526_v16  ;;  %2953 = vmatmul.mubr.f32.gmra.mxu1 %v991_v35  ;;  %v518_v35 = vld [vmem:[%s4490_s11 + $0x6a8] sm:$0xff] }
 0x1f9   : > { %2768 = vmatmul.mubr.f32.gmra.mxu0 %v989_v38  ;;  %4118 = vmatpush1.msra.mxu1 %v1527_v24  ;;  %v2064_v33 = vpop.f32.mrf.mxu0  ;;  %v2249_v12 = vpop.f32.mrf.mxu1  ;;  %v1028_v24 = vmul.f32 %v6215_v6, %v500_v5  ;;  %v533_v5 = vld [vmem:[%s4490_s11 + $0x720] sm:$0xff] }
 0x1fa   : > { %3055 = vmatprep.subr.mxu0 %v4349_v0  ;;  %4087 = vmatprep.subr.mxu1 %v4349_v0  ;;  %v2065_v48 = vadd.f32 %v2064_v33, %v5914_v43  ;;  %v1025_v43 = vmul.f32 %v6220_v47, %v497_v17  ;;  %v535_v33 = vld [vmem:[%s4490_s11 + $0x730] sm:$0xff] }
 0x1fb   : > { %3056 = vmatpush1.msra.mxu0 %v1525_v22  ;;  %2772 = vmatprep.mubr.f32.mxu0 %v1008_v41  ;;  %v2066_v19 = vpop.f32.mrf.mxu0  ;;  %v2251_v8 = vpop.f32.mrf.mxu1  ;;  %v534_v41 = vld [vmem:[%s4490_s11 + $0x728] sm:$0xff] }
 0x1fc   : > { %2957 = vmatprep.mubr.f32.mxu1 %v1010_v49  ;;  %4119 = vmatpush1.msra.mxu1 %v1526_v16  ;;  %v6416_v15 = vadd.f32 %v2249_v12, %v2065_v48  ;;  %v517_v16 = vld [vmem:[%s4490_s11 + $0x6a0] sm:$0xff]  ;;  %v1043_v49 = vmul.f32 %v6220_v47, %v515_v45  ;;  %v1062_v17 = vmul.f32 %v6201_v54, %v534_v41  ;;  %v570_v45 = vld [vmem:[%s4490_s11 + $0x848] sm:$0xff] }
 0x1fd   : > { %2773 = vmatmul.mubr.f32.gmra.mxu0 %v1007_v50  ;;  %2958 = vmatmul.mubr.f32.gmra.mxu1 %v1009_v7  ;;  %v2069_v34 = vpop.f32.mrf.mxu0  ;;  %v1045_v9 = vmul.f32 %v6224_v51, %v517_v16  ;;  %v536_v50 = vld [vmem:[%s4490_s11 + $0x738] sm:$0xff]  ;;  %v1061_v8 = vmul.f32 %v6220_v47, %v533_v5 }
 0x1fe   : > { %3057 = vmatprep.subr.mxu0 %v4349_v0  ;;  %4088 = vmatprep.subr.mxu1 %v4349_v0  ;;  %v2070_v37 = vadd.f32 %v2069_v34, %v5936_v4  ;;  %v2254_v10 = vpop.f32.mrf.mxu1  ;;  %v1046_v4 = vmul.f32 %v6215_v6, %v518_v35  ;;  %v1064_v19 = vmul.f32 %v6215_v6, %v536_v50  ;;  %v551_v34 = vld [vmem:[%s4490_s11 + $0x7b0] sm:$0xff]  ;;  %v553_v35 = vld [vmem:[%s4490_s11 + $0x7c0] sm:$0xff]  ;;  %v1552_v16 = vld [vmem:[%s7400_s1 + $0x8f8] sm:$0xff] }
 0x1ff   : > { %3058 = vmatpush1.msra.mxu0 %v1524_v2  ;;  %4120 = vmatpush1.msra.mxu1 %v1525_v22  ;;  %v2071_v38 = vpop.f32.mrf.mxu0  ;;  %v1522_v22 = vld [vmem:[%s7400_s1 + $0x808] sm:$0xff]  ;;  %v1551_v50 = vld [vmem:[%s7400_s1 + $0x8f0] sm:$0xff] }
 0x200   : > { %2777 = vmatprep.mubr.f32.mxu0 %v1026_v20  ;;  %2962 = vmatprep.mubr.f32.mxu1 %v1028_v24  ;;  %v6431_v1 = vadd.f32 %v2254_v10, %v2070_v37  ;;  %v2256_v27 = vpop.f32.mrf.mxu1  ;;  %v552_v20 = vld [vmem:[%s4490_s11 + $0x7b8] sm:$0xff]  ;;  %v554_v24 = vld [vmem:[%s4490_s11 + $0x7c8] sm:$0xff] }
 0x201   : > { %3059 = vmatprep.subr.mxu0 %v4349_v0  ;;  %2778 = vmatmul.mubr.f32.gmra.mxu0 %v1025_v43  ;;  %v1080_v38 = vmul.f32 %v6201_v54, %v552_v20 }
 0x202   : > { %2963 = vmatmul.mubr.f32.gmra.mxu1 %v1027_v23  ;;  %4089 = vmatprep.subr.mxu1 %v4349_v0  ;;  %v2074_v46 = vpop.f32.mrf.mxu0 }
 0x203   : > { %3060 = vmatpush1.msra.mxu0 %v1523_v39  ;;  %4121 = vmatpush1.msra.mxu1 %v1524_v2  ;;  %v2075_v7 = vadd.f32 %v2074_v46, %v5956_v36  ;;  %v2259_v60 = vpop.f32.mrf.mxu1  ;;  %v1521_v36 = vld [vmem:[%s7400_s1 + $0x800] sm:$0xff]  ;;  %v1063_v2 = vmul.f32 %v6224_v51, %v535_v33 }
 0x204   : > { %3061 = vmatprep.subr.mxu0 %v4349_v0  ;;  %2782 = vmatprep.mubr.f32.mxu0 %v1044_v40  ;;  %v2076_v12 = vpop.f32.mrf.mxu0 }
 0x205   : > { %2967 = vmatprep.mubr.f32.mxu1 %v1046_v4  ;;  %4090 = vmatprep.subr.mxu1 %v4349_v0  ;;  %v6449_v48 = vadd.f32 %v2259_v60, %v2075_v7  ;;  %v2261_v18 = vpop.f32.mrf.mxu1  ;;  %v1081_v4 = vmul.f32 %v6224_v51, %v553_v35  ;;  %v1098_v7 = vmul.f32 %v6201_v54, %v570_v45  ;;  %v569_v60 = vld [vmem:[%s4490_s11 + $0x840] sm:$0xff] }
 0x206   : > { %3062 = vmatpush1.msra.mxu0 %v1522_v22  ;;  %2968 = vmatmul.mubr.f32.gmra.mxu1 %v1045_v9  ;;  %v572_v9 = vld [vmem:[%s4490_s11 + $0x858] sm:$0xff] }
 0x207   : > { %2783 = vmatmul.mubr.f32.gmra.mxu0 %v1043_v49  ;;  %4122 = vmatpush1.msra.mxu1 %v1523_v39  ;;  %v2079_v43 = vpop.f32.mrf.mxu0  ;;  %v2264_v42 = vpop.f32.mrf.mxu1  ;;  %v1082_v39 = vmul.f32 %v6215_v6, %v554_v24  ;;  %v587_v24 = vld [vmem:[%s4490_s11 + $0x8d0] sm:$0xff] }
 0x208   : > { %3063 = vmatprep.subr.mxu0 %v4349_v0  ;;  %4091 = vmatprep.subr.mxu1 %v4349_v0  ;;  %v2080_v23 = vadd.f32 %v2079_v43, %v5976_v63  ;;  %v1079_v63 = vmul.f32 %v6220_v47, %v551_v34  ;;  %v589_v43 = vld [vmem:[%s4490_s11 + $0x8e0] sm:$0xff] }
 0x209   : > { %3064 = vmatpush1.msra.mxu0 %v1521_v36  ;;  %2787 = vmatprep.mubr.f32.mxu0 %v1062_v17  ;;  %v2081_v37 = vpop.f32.mrf.mxu0  ;;  %v2266_v10 = vpop.f32.mrf.mxu1  ;;  %v588_v17 = vld [vmem:[%s4490_s11 + $0x8d8] sm:$0xff] }
 0x20a   : > { %2972 = vmatprep.mubr.f32.mxu1 %v1064_v19  ;;  %4123 = vmatpush1.msra.mxu1 %v1522_v22  ;;  %v6469_v40 = vadd.f32 %v2264_v42, %v2080_v23  ;;  %v571_v22 = vld [vmem:[%s4490_s11 + $0x850] sm:$0xff]  ;;  %v1097_v19 = vmul.f32 %v6220_v47, %v569_v60  ;;  %v1116_v34 = vmul.f32 %v6201_v54, %v588_v17  ;;  %v624_v60 = vld [vmem:[%s4490_s11 + $0x9f8] sm:$0xff] }
 0x20b   : > { %2788 = vmatmul.mubr.f32.gmra.mxu0 %v1061_v8  ;;  %2973 = vmatmul.mubr.f32.gmra.mxu1 %v1063_v2  ;;  %v2084_v27 = vpop.f32.mrf.mxu0  ;;  %v1099_v12 = vmul.f32 %v6224_v51, %v571_v22  ;;  %v590_v8 = vld [vmem:[%s4490_s11 + $0x8e8] sm:$0xff]  ;;  %v1115_v10 = vmul.f32 %v6220_v47, %v587_v24  ;;  %v1548_v22 = vld [vmem:[%s7400_s1 + $0x8d8] sm:$0xff] }
 0x20c   : > { %3065 = vmatprep.subr.mxu0 %v4349_v0  ;;  %4092 = vmatprep.subr.mxu1 %v4349_v0  ;;  %v2085_v41 = vadd.f32 %v2084_v27, %v5998_v31  ;;  %v2269_v46 = vpop.f32.mrf.mxu1  ;;  %v1100_v31 = vmul.f32 %v6215_v6, %v572_v9  ;;  %v1118_v37 = vmul.f32 %v6215_v6, %v590_v8  ;;  %v605_v27 = vld [vmem:[%s4490_s11 + $0x960] sm:$0xff]  ;;  %v607_v9 = vld [vmem:[%s4490_s11 + $0x970] sm:$0xff] }
 0x20d   : > { %3066 = vmatpush2.msra.mxu0 %v1552_v16  ;;  %4124 = vmatpush1.msra.mxu1 %v1521_v36  ;;  %v2086_v49 = vpop.f32.mrf.mxu0  ;;  %v1550_v36 = vld [vmem:[%s7400_s1 + $0x8e8] sm:$0xff]  ;;  %v1547_v8 = vld [vmem:[%s7400_s1 + $0x8d0] sm:$0xff] }
 0x20e   : > { %2792 = vmatprep.mubr.f32.mxu0 %v1080_v38  ;;  %2977 = vmatprep.mubr.f32.mxu1 %v1082_v39  ;;  %v6484_v5 = vadd.f32 %v2269_v46, %v2085_v41  ;;  %v2271_v33 = vpop.f32.mrf.mxu1  ;;  %v606_v38 = vld [vmem:[%s4490_s11 + $0x968] sm:$0xff]  ;;  %v608_v39 = vld [vmem:[%s4490_s11 + $0x978] sm:$0xff] }
 0x20f   : > { %3067 = vmatprep.subr.mxu0 %v4349_v0  ;;  %2793 = vmatmul.mubr.f32.gmra.mxu0 %v1079_v63  ;;  %v1134_v49 = vmul.f32 %v6201_v54, %v606_v38  ;;  %v641_v38 = vld [vmem:[%s4490_s11 + $0xa80] sm:$0xff] }
 0x210   : > { %2978 = vmatmul.mubr.f32.gmra.mxu1 %v1081_v4  ;;  %4093 = vmatprep.subr.mxu1 %v4349_v0  ;;  %v2089_v18 = vpop.f32.mrf.mxu0 }
 0x211   : > { %3068 = vmatpush2.msra.mxu0 %v1551_v50  ;;  %4125 = vmatpush2.msra.mxu1 %v1552_v16  ;;  %v2090_v2 = vadd.f32 %v2089_v18, %v6018_v59  ;;  %v2274_v20 = vpop.f32.mrf.mxu1  ;;  %v1549_v59 = vld [vmem:[%s7400_s1 + $0x8e0] sm:$0xff]  ;;  %v1117_v16 = vmul.f32 %v6224_v51, %v589_v43 }
 0x212   : > { %3069 = vmatprep.subr.mxu0 %v4349_v0  ;;  %2797 = vmatprep.mubr.f32.mxu0 %v1098_v7  ;;  %v2091_v42 = vpop.f32.mrf.mxu0 }
 0x213   : > { %2982 = vmatprep.mubr.f32.mxu1 %v1100_v31  ;;  %4094 = vmatprep.subr.mxu1 %v4349_v0  ;;  %v6502_v23 = vadd.f32 %v2274_v20, %v2090_v2  ;;  %v2276_v35 = vpop.f32.mrf.mxu1  ;;  %v1135_v31 = vmul.f32 %v6224_v51, %v607_v9  ;;  %v1152_v2 = vmul.f32 %v6201_v54, %v624_v60  ;;  %v623_v20 = vld [vmem:[%s4490_s11 + $0x9f0] sm:$0xff]  ;;  %v1545_v9 = vld [vmem:[%s7400_s1 + $0x8c0] sm:$0xff] }
 0x214   : > { %3070 = vmatpush2.msra.mxu0 %v1550_v36  ;;  %2983 = vmatmul.mubr.f32.gmra.mxu1 %v1099_v12  ;;  %v626_v12 = vld [vmem:[%s4490_s11 + $0xa08] sm:$0xff] }
 0x215   : > { %2798 = vmatmul.mubr.f32.gmra.mxu0 %v1097_v19  ;;  %4126 = vmatpush2.msra.mxu1 %v1551_v50  ;;  %v2094_v63 = vpop.f32.mrf.mxu0  ;;  %v2279_v45 = vpop.f32.mrf.mxu1  ;;  %v1136_v50 = vmul.f32 %v6215_v6, %v608_v39  ;;  %v1546_v35 = vld [vmem:[%s7400_s1 + $0x8c8] sm:$0xff]  ;;  %v643_v39 = vld [vmem:[%s4490_s11 + $0xa90] sm:$0xff] }
 0x216   : > { %3071 = vmatprep.subr.mxu0 %v4349_v0  ;;  %4095 = vmatprep.subr.mxu1 %v4349_v0  ;;  %v2095_v4 = vadd.f32 %v2094_v63, %v6038_v28  ;;  %v1133_v28 = vmul.f32 %v6220_v47, %v605_v27 }
 0x217   : > { %3072 = vmatpush2.msra.mxu0 %v1549_v59  ;;  %2802 = vmatprep.mubr.f32.mxu0 %v1116_v34  ;;  %v2096_v41 = vpop.f32.mrf.mxu0  ;;  %v2281_v46 = vpop.f32.mrf.mxu1  ;;  %v642_v34 = vld [vmem:[%s4490_s11 + $0xa88] sm:$0xff] }
 0x218   : > { %2987 = vmatprep.mubr.f32.mxu1 %v1118_v37  ;;  %4127 = vmatpush2.msra.mxu1 %v1550_v36  ;;  %v6522_v7 = vadd.f32 %v2279_v45, %v2095_v4  ;;  %v625_v36 = vld [vmem:[%s4490_s11 + $0xa00] sm:$0xff]  ;;  %v644_v37 = vld [vmem:[%s4490_s11 + $0xa98] sm:$0xff]  ;;  %v1170_v45 = vmul.f32 %v6201_v54, %v642_v34 }
 0x219   : > { %2803 = vmatmul.mubr.f32.gmra.mxu0 %v1115_v10  ;;  %2988 = vmatmul.mubr.f32.gmra.mxu1 %v1117_v16  ;;  %v2099_v33 = vpop.f32.mrf.mxu0  ;;  %v1153_v42 = vmul.f32 %v6224_v51, %v625_v36  ;;  %v1172_v41 = vmul.f32 %v6215_v6, %v644_v37  ;;  %v1543_v37 = vld [vmem:[%s7400_s1 + $0x8b0] sm:$0xff] }
 0x21a   : > { %3073 = vmatprep.subr.mxu0 %v4349_v0  ;;  %4096 = vmatprep.subr.mxu1 %v4349_v0  ;;  %v2100_v17 = vadd.f32 %v2099_v33, %v6060_v58  ;;  %v2284_v18 = vpop.f32.mrf.mxu1  ;;  %v1154_v58 = vmul.f32 %v6215_v6, %v626_v12 }
 0x21b   : > { %3074 = vmatpush2.msra.mxu0 %v1548_v22  ;;  %4128 = vmatpush2.msra.mxu1 %v1549_v59  ;;  %v2101_v19 = vpop.f32.mrf.mxu0  ;;  %v1151_v59 = vmul.f32 %v6220_v47, %v623_v20  ;;  %v678_v20 = vld [vmem:[%s4490_s11 + $0xba8] sm:$0xff] }
 0x21c   : > { %2807 = vmatprep.mubr.f32.mxu0 %v1134_v49  ;;  %2992 = vmatprep.mubr.f32.mxu1 %v1136_v50  ;;  %v6537_v24 = vadd.f32 %v2284_v18, %v2100_v17  ;;  %v2286_v43 = vpop.f32.mrf.mxu1  ;;  %v660_v49 = vld [vmem:[%s4490_s11 + $0xb18] sm:$0xff]  ;;  %v662_v50 = vld [vmem:[%s4490_s11 + $0xb28] sm:$0xff] }
 0x21d   : > { %3075 = vmatprep.subr.mxu0 %v4349_v0  ;;  %2808 = vmatmul.mubr.f32.gmra.mxu0 %v1133_v28  ;;  %v659_v28 = vld [vmem:[%s4490_s11 + $0xb10] sm:$0xff]  ;;  %v1544_v17 = vld [vmem:[%s7400_s1 + $0x8b8] sm:$0xff]  ;;  %v1188_v18 = vmul.f32 %v6201_v54, %v660_v49  ;;  %v1190_v36 = vmul.f32 %v6215_v6, %v662_v50 }
 0x21e   : > { %2993 = vmatmul.mubr.f32.gmra.mxu1 %v1135_v31  ;;  %4097 = vmatprep.subr.mxu1 %v4349_v0  ;;  %v661_v31 = vld [vmem:[%s4490_s11 + $0xb20] sm:$0xff]  ;;  %v695_v50 = vld [vmem:[%s4490_s11 + $0xc30] sm:$0xff] }
 0x21f   : > { %3076 = vmatpush2.msra.mxu0 %v1547_v8  ;;  %4129 = vmatpush2.msra.mxu1 %v1548_v22  ;;  %v2104_v10 = vpop.f32.mrf.mxu0  ;;  %v2289_v16 = vpop.f32.mrf.mxu1  ;;  %v1171_v22 = vmul.f32 %v6224_v51, %v643_v39  ;;  %v1189_v43 = vmul.f32 %v6224_v51, %v661_v31 }
 0x220   : > { %3077 = vmatprep.subr.mxu0 %v4349_v0  ;;  %2812 = vmatprep.mubr.f32.mxu0 %v1152_v2  ;;  %v2105_v63 = vadd.f32 %v2104_v10, %v6080_v32  ;;  %v1169_v32 = vmul.f32 %v6220_v47, %v641_v38  ;;  %v1187_v2 = vmul.f32 %v6220_v47, %v659_v28  ;;  %v697_v28 = vld [vmem:[%s4490_s11 + $0xc40] sm:$0xff] }
 0x221   : > { %2997 = vmatprep.mubr.f32.mxu1 %v1154_v58  ;;  %4098 = vmatprep.subr.mxu1 %v4349_v0  ;;  %v2106_v27 = vpop.f32.mrf.mxu0  ;;  %v2291_v4 = vpop.f32.mrf.mxu1  ;;  %v680_v58 = vld [vmem:[%s4490_s11 + $0xbb8] sm:$0xff]  ;;  %v1206_v10 = vmul.f32 %v6201_v54, %v678_v20 }
 0x222   : > { %3078 = vmatpush2.msra.mxu0 %v1546_v35  ;;  %2998 = vmatmul.mubr.f32.gmra.mxu1 %v1153_v42  ;;  %v6559_v46 = vadd.f32 %v2289_v16, %v2105_v63  ;;  %v677_v16 = vld [vmem:[%s4490_s11 + $0xba0] sm:$0xff]  ;;  %v1208_v63 = vmul.f32 %v6215_v6, %v680_v58  ;;  %v696_v27 = vld [vmem:[%s4490_s11 + $0xc38] sm:$0xff] }
 0x223   : > { %2813 = vmatmul.mubr.f32.gmra.mxu0 %v1151_v59  ;;  %4130 = vmatpush2.msra.mxu1 %v1547_v8 }
 0x224   : > { %3079 = vmatprep.subr.mxu0 %v4349_v0  ;;  %4099 = vmatprep.subr.mxu1 %v4349_v0  ;;  %v2359_v60 = vpop.f32.mrf.mxu0  ;;  %v2544_v33 = vpop.f32.mrf.mxu1 }
 0x225   : > { %3080 = vmatpush2.msra.mxu0 %v1545_v9  ;;  %2817 = vmatprep.mubr.f32.mxu0 %v1170_v45  ;;  %v2360_v12 = vadd.f32 %v2359_v60, %v6113_v21 }
 0x226   : > { %3002 = vmatprep.mubr.f32.mxu1 %v1172_v41  ;;  %4131 = vmatpush2.msra.mxu1 %v1546_v35  ;;  %v2361_v19 = vpop.f32.mrf.mxu0  ;;  %v2546_v8 = vpop.f32.mrf.mxu1  ;;  %v679_v35 = vld [vmem:[%s4490_s11 + $0xbb0] sm:$0xff]  ;;  %v1205_v41 = vmul.f32 %v6220_v47, %v677_v16 }
 0x227   : > { %2818 = vmatmul.mubr.f32.gmra.mxu0 %v1169_v32  ;;  %3003 = vmatmul.mubr.f32.gmra.mxu1 %v1171_v22  ;;  %v6577_v21 = vadd.f32 %v2544_v33, %v2360_v12  ;;  %v698_v32 = vld [vmem:[%s4490_s11 + $0xc48] sm:$0xff]  ;;  %v1224_v33 = vmul.f32 %v6201_v54, %v696_v27  ;;  %v716_v8 = vld [vmem:[%s4490_s11 + $0xcd8] sm:$0xff] }
 0x228   : > { %3081 = vmatprep.subr.mxu0 %v4349_v0  ;;  %4100 = vmatprep.subr.mxu1 %v4349_v0  ;;  %v2364_v42 = vpop.f32.mrf.mxu0  ;;  %v2549_v34 = vpop.f32.mrf.mxu1  ;;  %v714_v19 = vld [vmem:[%s4490_s11 + $0xcc8] sm:$0xff] }
 0x229   : > { %3082 = vmatpush2.msra.mxu0 %v1544_v17  ;;  %4132 = vmatpush2.msra.mxu1 %v1545_v9  ;;  %v2365_v59 = vadd.f32 %v2364_v42, %v6131_v44  ;;  %v1207_v44 = vmul.f32 %v6224_v51, %v679_v35  ;;  %v1542_v9 = vld [vmem:[%s7400_s1 + $0x8a8] sm:$0xff]  ;;  %v715_v42 = vld [vmem:[%s4490_s11 + $0xcd0] sm:$0xff] }
 0x22a   : > { %2822 = vmatprep.mubr.f32.mxu0 %v1188_v18  ;;  %3007 = vmatprep.mubr.f32.mxu1 %v1190_v36  ;;  %v2366_v38 = vpop.f32.mrf.mxu0  ;;  %v2551_v39 = vpop.f32.mrf.mxu1  ;;  %v1223_v18 = vmul.f32 %v6220_v47, %v695_v50  ;;  %v1225_v36 = vmul.f32 %v6224_v51, %v697_v28 }
 0x22b   : > { %3083 = vmatprep.subr.mxu0 %v4349_v0  ;;  %2823 = vmatmul.mubr.f32.gmra.mxu0 %v1187_v2  ;;  %v6592_v45 = vadd.f32 %v2549_v34, %v2365_v59  ;;  %v1540_v59 = vld [vmem:[%s7400_s1 + $0x898] sm:$0xff]  ;;  %v1243_v39 = vmul.f32 %v6224_v51, %v715_v42 }
 0x22c   : > { %3008 = vmatmul.mubr.f32.gmra.mxu1 %v1189_v43  ;;  %4101 = vmatprep.subr.mxu1 %v4349_v0  ;;  %v2369_v4 = vpop.f32.mrf.mxu0  ;;  %v713_v43 = vld [vmem:[%s4490_s11 + $0xcc0] sm:$0xff] }
 0x22d   : > { %3084 = vmatpush2.msra.mxu0 %v1543_v37  ;;  %4133 = vmatpush2.msra.mxu1 %v1544_v17  ;;  %v2370_v22 = vadd.f32 %v2369_v4, %v6152_v29  ;;  %v2554_v49 = vpop.f32.mrf.mxu1  ;;  %v1541_v29 = vld [vmem:[%s7400_s1 + $0x8a0] sm:$0xff]  ;;  %v1226_v17 = vmul.f32 %v6215_v6, %v698_v32  ;;  %v1539_v32 = vld [vmem:[%s7400_s1 + $0x890] sm:$0xff] }
 0x22e   : > { %3085 = vmatprep.subr.mxu0 %v4349_v0  ;;  %2827 = vmatprep.mubr.f32.mxu0 %v1206_v10  ;;  %v2371_v60 = vpop.f32.mrf.mxu0  ;;  %v1244_v10 = vmul.f32 %v6215_v6, %v716_v8 }
 0x22f   : > { %3012 = vmatprep.mubr.f32.mxu1 %v1208_v63  ;;  %4102 = vmatprep.subr.mxu1 %v4349_v0  ;;  %v6608_v31 = vadd.f32 %v2554_v49, %v2370_v22  ;;  %v2556_v12 = vpop.f32.mrf.mxu1  ;;  %v732_v63 = vld [vmem:[%s4490_s11 + $0xd58] sm:$0xff]  ;;  %v731_v22 = vld [vmem:[%s4490_s11 + $0xd50] sm:$0xff]  ;;  %v733_v49 = vld [vmem:[%s4490_s11 + $0xd60] sm:$0xff] }
 0x230   : > { %3086 = vmatpush2.msra.mxu0 %v1542_v9  ;;  %3013 = vmatmul.mubr.f32.gmra.mxu1 %v1207_v44  ;;  %v734_v44 = vld [vmem:[%s4490_s11 + $0xd68] sm:$0xff] }
 0x231   : > { %2828 = vmatmul.mubr.f32.gmra.mxu0 %v1205_v41  ;;  %4134 = vmatpush2.msra.mxu1 %v1543_v37  ;;  %v2374_v2 = vpop.f32.mrf.mxu0  ;;  %v2559_v20 = vpop.f32.mrf.mxu1  ;;  %v1242_v37 = vmul.f32 %v6201_v54, %v714_v19  ;;  %v1262_v60 = vmul.f32 %v6215_v6, %v734_v44  ;;  %v1261_v6 = vmul.f32 %v6224_v51, %v733_v49  ;;  %v538_v19 = vld [vmem:[%s4490_s11 + $0x748] sm:$0xff] }
 0x232   : > { %3087 = vmatprep.subr.mxu0 %v4349_v0  ;;  %4103 = vmatprep.subr.mxu1 %v4349_v0  ;;  %v2375_v58 = vadd.f32 %v2374_v2, %v6176_v55  ;;  %v1241_v55 = vmul.f32 %v6220_v47, %v713_v43  ;;  %v537_v2 = vld [vmem:[%s4490_s11 + $0x740] sm:$0xff] }
 0x233   : > { %3088 = vmatpush2.msra.mxu0 %v1541_v29  ;;  %2832 = vmatprep.mubr.f32.mxu0 %v1224_v33  ;;  %v2376_v34 = vpop.f32.mrf.mxu0  ;;  %v2561_v35 = vpop.f32.mrf.mxu1 }
 0x234   : > { %3017 = vmatprep.mubr.f32.mxu1 %v1226_v17  ;;  %4135 = vmatpush2.msra.mxu1 %v1542_v9  ;;  %v6628_v16 = vadd.f32 %v2559_v20, %v2375_v58  ;;  %v739_v9 = vld [vmem:[#allocation4 + $0x10] sm:$0x3]  ;;  %v322_v17 = vld [vmem:[%s4490_s11 + $0x88] sm:$0xff]  ;;  %v340_v58 = vld [vmem:[%s4490_s11 + $0x118] sm:$0xff] }
 0x235   : > { %2833 = vmatmul.mubr.f32.gmra.mxu0 %v1223_v18  ;;  %3018 = vmatmul.mubr.f32.gmra.mxu1 %v1225_v36  ;;  %v2379_v38 = vpop.f32.mrf.mxu0  ;;  %v6649_v33 = vrot.slane %v739_v9, %v4727_v62  ;;  %v6661_v62 = vrot.slane %v739_v9, %v4739_v3  ;;  %v556_v3 = vld [vmem:[%s4490_s11 + $0x7d8] sm:$0xff]  ;;  %v574_v9 = vld [vmem:[%s4490_s11 + $0x868] sm:$0xff] }
 0x236   : > { %3089 = vmatprep.subr.mxu0 %v4349_v0  ;;  %4104 = vmatprep.subr.mxu1 %v4349_v0  ;;  %v2380_v27 = vadd.f32 %v2379_v38, %v6191_v25  ;;  %v2564_v4 = vpop.f32.mrf.mxu1  ;;  %v1260_v25 = vmul.f32 %v6201_v54, %v732_v63  ;;  %v1259_v54 = vmul.f32 %v6220_v47, %v731_v22  ;;  %v321_v47 = vld [vmem:[%s4490_s11 + $0x80] sm:$0xff]  ;;  %v555_v63 = vld [vmem:[%s4490_s11 + $0x7d0] sm:$0xff] }
 0x237   : > { %3090 = vmatpush2.msra.mxu0 %v1540_v59  ;;  %4136 = vmatpush2.msra.mxu1 %v1541_v29  ;;  %v2381_v41 = vpop.f32.mrf.mxu0  ;;  %v1538_v29 = vld [vmem:[%s7400_s1 + $0x888] sm:$0xff]  ;;  %v850_v43 = vmul.f32 %v6649_v33, %v322_v17  ;;  %v1066_v42 = vmul.f32 %v6649_v33, %v538_v19  ;;  %v1084_v38 = vmul.f32 %v6649_v33, %v556_v3 }
 0x238   : > { %2837 = vmatprep.mubr.f32.mxu0 %v1242_v37  ;;  %3022 = vmatprep.mubr.f32.mxu1 %v1244_v10  ;;  %v6642_v50 = vadd.f32 %v2564_v4, %v2380_v27  ;;  %v2566_v28 = vpop.f32.mrf.mxu1  ;;  %v1065_v37 = vmul.f32 %v6661_v62, %v537_v2  ;;  %v358_v4 = vld [vmem:[%s4490_s11 + $0x1a8] sm:$0xff]  ;;  %v1083_v22 = vmul.f32 %v6661_v62, %v555_v63  ;;  %v375_v2 = vld [vmem:[%s4490_s11 + $0x230] sm:$0xff] }
 0x239   : > { %3091 = vmatprep.subr.mxu0 %v4349_v0  ;;  %2838 = vmatmul.mubr.f32.gmra.mxu0 %v1241_v55  ;;  %v868_v55 = vmul.f32 %v6649_v33, %v340_v58  ;;  %v886_v28 = vmul.f32 %v6649_v33, %v358_v4  ;;  %v394_v58 = vld [vmem:[%s4490_s11 + $0x2c8] sm:$0xff] }
 0x23a   : > { %3023 = vmatmul.mubr.f32.gmra.mxu1 %v1243_v39  ;;  %4105 = vmatprep.subr.mxu1 %v4349_v0  ;;  %v2384_v12 = vpop.f32.mrf.mxu0  ;;  %v339_v39 = vld [vmem:[%s4490_s11 + $0x110] sm:$0xff]  ;;  %v610_v3 = vld [vmem:[%s4490_s11 + $0x988] sm:$0xff] }
 0x23b   : > { %3092 = vmatpush2.msra.mxu0 %v1539_v32  ;;  %4137 = vmatpush2.msra.mxu1 %v1540_v59  ;;  %v2385_v18 = vadd.f32 %v2384_v12, %v6230_v53  ;;  %v2569_v36 = vpop.f32.mrf.mxu1  ;;  %v1537_v53 = vld [vmem:[%s7400_s1 + $0x880] sm:$0xff]  ;;  %v849_v59 = vmul.f32 %v6661_v62, %v321_v47 }
 0x23c   : > { %4106 = vmatprep.subr.mxu1 %v4349_v0  ;;  %3093 = vmatprep.subr.mxu0 %v4349_v0  ;;  %v2386_v8 = vpop.f32.mrf.mxu0  ;;  %v573_v12 = vld [vmem:[%s4490_s11 + $0x860] sm:$0xff] }
 0x23d   : > { %2842 = vmatprep.mubr.f32.mxu0 %v1260_v25  ;;  %3027 = vmatprep.mubr.f32.mxu1 %v1262_v60  ;;  %v6666_v51 = vadd.f32 %v2569_v36, %v2385_v18  ;;  %v2571_v20 = vpop.f32.mrf.mxu1  ;;  %v1102_v25 = vmul.f32 %v6649_v33, %v574_v9  ;;  %v357_v60 = vld [vmem:[%s4490_s11 + $0x1a0] sm:$0xff]  ;;  %v1101_v36 = vmul.f32 %v6661_v62, %v573_v12  ;;  %v430_v12 = vld [vmem:[%s4490_s11 + $0x3e8] sm:$0xff] }
 0x23e   : > { %4138 = vmatpush2.msra.mxu1 %v1539_v32  ;;  %3094 = vmatpush2.msra.mxu0 %v1538_v29  ;;  %v867_v32 = vmul.f32 %v6661_v62, %v339_v39  ;;  %v591_v20 = vld [vmem:[%s4490_s11 + $0x8f0] sm:$0xff] }
 0x23f   : > { %2843 = vmatmul.mubr.f32.gmra.mxu0 %v1259_v54  ;;  %3028 = vmatmul.mubr.f32.gmra.mxu1 %v1261_v6  ;;  %v2389_v34 = vpop.f32.mrf.mxu0  ;;  %v2574_v35 = vpop.f32.mrf.mxu1  ;;  %v376_v54 = vld [vmem:[%s4490_s11 + $0x238] sm:$0xff] }
 0x240   : > { %4107 = vmatprep.subr.mxu1 %v4349_v0  ;;  %3095 = vmatprep.subr.mxu0 %v4349_v0  ;;  %v2390_v10 = vadd.f32 %v2389_v34, %v6255_v30  ;;  %v592_v6 = vld [vmem:[%s4490_s11 + $0x8f8] sm:$0xff]  ;;  %v904_v8 = vmul.f32 %v6649_v33, %v376_v54 }
 0x241   : > { %4139 = vmatpush2.msra.mxu1 %v1538_v29  ;;  %3096 = vmatpush2.msra.mxu0 %v1537_v53  ;;  %v2391_v44 = vpop.f32.mrf.mxu0  ;;  %v2576_v27 = vpop.f32.mrf.mxu1  ;;  %v1120_v47 = vmul.f32 %v6649_v33, %v592_v6 }
 0x242   : > { %4108 = vmatprep.subr.mxu1 %v4349_v0  ;;  %3097 = vmatprep.mubr.f32.mxu0 %v850_v43  ;;  %v6687_v41 = vadd.f32 %v2574_v35, %v2390_v10  ;;  %v1138_v10 = vmul.f32 %v6649_v33, %v610_v3  ;;  %v412_v44 = vld [vmem:[%s4490_s11 + $0x358] sm:$0xff] }
 0x243   : > { %4140 = vmatpush2.msra.mxu1 %v1537_v53  ;;  %3157 = vmatprep.mubr.f32.mxu1 %v1066_v42  ;;  %v2394_v30 = vpop.f32.mrf.mxu0  ;;  %v628_v27 = vld [vmem:[%s4490_s11 + $0xa18] sm:$0xff] }
 0x244   : > { %3098 = vmatmul.mubr.f32.vlgmr.msra.gmra.mxu0 %v849_v59  ;;  %3158 = vmatmul.mubr.f32.vlgmr.msra.gmra.mxu1 %v1065_v37  ;;  %v2395_v0 = vadd.f32 %v2394_v30, %v6272_v56  ;;  %v2579_v49 = vpop.f32.mrf.mxu1  ;;  %v885_v56 = vmul.f32 %v6661_v62, %v357_v60  ;;  %v903_v59 = vmul.f32 %v6661_v62, %v375_v2  ;;  %v627_v60 = vld [vmem:[%s4490_s11 + $0xa10] sm:$0xff] }
 0x245   : > { %3102 = vmatprep.mubr.f32.mxu0 %v868_v55  ;;  %3162 = vmatprep.mubr.f32.mxu1 %v1084_v38  ;;  %v2396_v29 = vpop.f32.mrf.mxu0  ;;  %v1119_v37 = vmul.f32 %v6661_v62, %v591_v20  ;;  %v393_v55 = vld [vmem:[%s4490_s11 + $0x2c0] sm:$0xff] }
 0x246   : > { %v6698_v17 = vadd.f32 %v2579_v49, %v2395_v0  ;;  %v2581_v18 = vpop.f32.mrf.mxu1  ;;  %v609_v38 = vld [vmem:[%s4490_s11 + $0x980] sm:$0xff]  ;;  %v940_v49 = vmul.f32 %v6649_v33, %v412_v44  ;;  %v646_v29 = vld [vmem:[%s4490_s11 + $0xaa8] sm:$0xff] }
 0x247   : > { %v1174_v2 = vmul.f32 %v6649_v33, %v646_v29  ;;  %v429_v20 = vld [vmem:[%s4490_s11 + $0x3e0] sm:$0xff]  ;;  %v682_v44 = vld [vmem:[%s4490_s11 + $0xbc8] sm:$0xff]  ;;  %v700_v29 = vld [vmem:[%s4490_s11 + $0xc58] sm:$0xff] }
 0x248   : > { %3103 = vmatmul.mubr.f32.gmra.mxu0 %v867_v32  ;;  %3163 = vmatmul.mubr.f32.gmra.mxu1 %v1083_v22  ;;  %v2399_v19 = vpop.f32.mrf.mxu0  ;;  %v921_v32 = vmul.f32 %v6661_v62, %v393_v55  ;;  %v1137_v22 = vmul.f32 %v6661_v62, %v609_v38  ;;  %v447_v55 = vld [vmem:[%s4490_s11 + $0x470] sm:$0xff] }
 0x249   : > { %3107 = vmatprep.mubr.f32.mxu0 %v886_v28  ;;  %3167 = vmatprep.mubr.f32.mxu1 %v1102_v25  ;;  %v2400_v53 = vadd.f32 %v2399_v19, %v6290_v11  ;;  %v2584_v43 = vpop.f32.mrf.mxu1  ;;  %v922_v11 = vmul.f32 %v6649_v33, %v394_v58  ;;  %v1156_v28 = vmul.f32 %v6649_v33, %v628_v27  ;;  %v411_v25 = vld [vmem:[%s4490_s11 + $0x350] sm:$0xff] }
 0x24a   : > { %v2401_v42 = vpop.f32.mrf.mxu0  ;;  %v663_v38 = vld [vmem:[%s4490_s11 + $0xb30] sm:$0xff] }
 0x24b   : > { %v6709_v34 = vadd.f32 %v2584_v43, %v2400_v53  ;;  %v2586_v35 = vpop.f32.mrf.mxu1  ;;  %v448_v53 = vld [vmem:[%s4490_s11 + $0x478] sm:$0xff] }
 0x24c   : > { %3108 = vmatmul.mubr.f32.gmra.mxu0 %v885_v56  ;;  %3168 = vmatmul.mubr.f32.gmra.mxu1 %v1101_v36  ;;  %v939_v56 = vmul.f32 %v6661_v62, %v411_v25  ;;  %v1155_v36 = vmul.f32 %v6661_v62, %v627_v60  ;;  %v664_v43 = vld [vmem:[%s4490_s11 + $0xb38] sm:$0xff]  ;;  %v957_v35 = vmul.f32 %v6661_v62, %v429_v20  ;;  %v681_v25 = vld [vmem:[%s4490_s11 + $0xbc0] sm:$0xff]  ;;  %v699_v20 = vld [vmem:[%s4490_s11 + $0xc50] sm:$0xff] }
 0x24d   : > { %3112 = vmatprep.mubr.f32.mxu0 %v904_v8  ;;  %3172 = vmatprep.mubr.f32.mxu1 %v1120_v47  ;;  %v2404_v39 = vpop.f32.mrf.mxu0  ;;  %v2589_v63 = vpop.f32.mrf.mxu1  ;;  %v958_v47 = vmul.f32 %v6649_v33, %v430_v12  ;;  %v484_v12 = vld [vmem:[%s4490_s11 + $0x598] sm:$0xff] }
 0x24e   : > { %v2405_v4 = vadd.f32 %v2404_v39, %v6310_v52 }
 0x24f   : > { %v2406_v9 = vpop.f32.mrf.mxu0  ;;  %v2591_v30 = vpop.f32.mrf.mxu1 }
 0x250   : > { %3113 = vmatmul.mubr.f32.gmra.mxu0 %v903_v59  ;;  %3173 = vmatmul.mubr.f32.gmra.mxu1 %v1119_v37  ;;  %v6722_v0 = vadd.f32 %v2589_v63, %v2405_v4  ;;  %v466_v63 = vld [vmem:[%s4490_s11 + $0x508] sm:$0xff]  ;;  %v975_v9 = vmul.f32 %v6661_v62, %v447_v55  ;;  %v1191_v30 = vmul.f32 %v6661_v62, %v663_v38 }
 0x251   : > { %3117 = vmatprep.mubr.f32.mxu0 %v922_v11  ;;  %3177 = vmatprep.mubr.f32.mxu1 %v1138_v10  ;;  %v2409_v52 = vpop.f32.mrf.mxu0  ;;  %v976_v11 = vmul.f32 %v6649_v33, %v448_v53  ;;  %v1192_v10 = vmul.f32 %v6649_v33, %v664_v43  ;;  %v502_v53 = vld [vmem:[%s4490_s11 + $0x628] sm:$0xff] }
 0x252   : > { %v2410_v54 = vadd.f32 %v2409_v52, %v6325_v13  ;;  %v2594_v6 = vpop.f32.mrf.mxu1  ;;  %v645_v13 = vld [vmem:[%s4490_s11 + $0xaa0] sm:$0xff]  ;;  %v718_v43 = vld [vmem:[%s4490_s11 + $0xce8] sm:$0xff] }
 0x253   : > { %v2411_v18 = vpop.f32.mrf.mxu0  ;;  %v1173_v59 = vmul.f32 %v6661_v62, %v645_v13 }
 0x254   : > { %3118 = vmatmul.mubr.f32.gmra.mxu0 %v921_v32  ;;  %3178 = vmatmul.mubr.f32.gmra.mxu1 %v1137_v22  ;;  %v6733_v19 = vadd.f32 %v2594_v6, %v2410_v54  ;;  %v2596_v8 = vpop.f32.mrf.mxu1  ;;  %v994_v22 = vmul.f32 %v6649_v33, %v466_v63  ;;  %v1209_v18 = vmul.f32 %v6661_v62, %v681_v25  ;;  %v736_v63 = vld [vmem:[%s4490_s11 + $0xd78] sm:$0xff] }
 0x255   : > { %3122 = vmatprep.mubr.f32.mxu0 %v940_v49  ;;  %3182 = vmatprep.mubr.f32.mxu1 %v1156_v28  ;;  %v1210_v49 = vmul.f32 %v6649_v33, %v682_v44  ;;  %v465_v28 = vld [vmem:[%s4490_s11 + $0x500] sm:$0xff]  ;;  %v1012_v8 = vmul.f32 %v6649_v33, %v484_v12 }
 0x256   : > { %v2414_v58 = vpop.f32.mrf.mxu0 }
 0x257   : > { %v2415_v3 = vadd.f32 %v2414_v58, %v6343_v61  ;;  %v2599_v42 = vpop.f32.mrf.mxu1 }
 0x258   : > { %3123 = vmatmul.mubr.f32.gmra.mxu0 %v939_v56  ;;  %3183 = vmatmul.mubr.f32.gmra.mxu1 %v1155_v36  ;;  %v2416_v37 = vpop.f32.mrf.mxu0 }
 0x259   : > { %3127 = vmatprep.mubr.f32.mxu0 %v958_v47  ;;  %3187 = vmatprep.mubr.f32.mxu1 %v1174_v2  ;;  %v6748_v39 = vadd.f32 %v2599_v42, %v2415_v3  ;;  %v2601_v61 = vpop.f32.mrf.mxu1  ;;  %v1228_v47 = vmul.f32 %v6649_v33, %v700_v29  ;;  %v483_v2 = vld [vmem:[%s4490_s11 + $0x590] sm:$0xff]  ;;  %v1227_v42 = vmul.f32 %v6661_v62, %v699_v20 }
 0x25a   : > { %v1246_v37 = vmul.f32 %v6649_v33, %v718_v43  ;;  %v520_v61 = vld [vmem:[%s4490_s11 + $0x6b8] sm:$0xff] }
 0x25b   : > { %v2419_v27 = vpop.f32.mrf.mxu0  ;;  %v2604_v4 = vpop.f32.mrf.mxu1 }
 0x25c   : > { %3128 = vmatmul.mubr.f32.gmra.mxu0 %v957_v35  ;;  %3188 = vmatmul.mubr.f32.gmra.mxu1 %v1173_v59  ;;  %v2420_v32 = vadd.f32 %v2419_v27, %v6363_v57  ;;  %v993_v57 = vmul.f32 %v6661_v62, %v465_v28  ;;  %v1030_v59 = vmul.f32 %v6649_v33, %v502_v53 }
 0x25d   : > { %3132 = vmatprep.mubr.f32.mxu0 %v976_v11  ;;  %3192 = vmatprep.mubr.f32.mxu1 %v1192_v10  ;;  %v2421_v60 = vpop.f32.mrf.mxu0  ;;  %v2606_v52 = vpop.f32.mrf.mxu1  ;;  %v501_v11 = vld [vmem:[%s4490_s11 + $0x620] sm:$0xff] }
 0x25e   : > { %v6761_v54 = vadd.f32 %v2604_v4, %v2420_v32  ;;  %v717_v10 = vld [vmem:[%s4490_s11 + $0xce0] sm:$0xff]  ;;  %v1048_v32 = vmul.f32 %v6649_v33, %v520_v61 }
 0x25f   : > { %v2424_v6 = vpop.f32.mrf.mxu0 }
 0x260   : > { %3133 = vmatmul.mubr.f32.gmra.mxu0 %v975_v9  ;;  %3193 = vmatmul.mubr.f32.gmra.mxu1 %v1191_v30  ;;  %v2425_v56 = vadd.f32 %v2424_v6, %v6378_v26  ;;  %v2609_v36 = vpop.f32.mrf.mxu1  ;;  %v1011_v26 = vmul.f32 %v6661_v62, %v483_v2  ;;  %v1029_v9 = vmul.f32 %v6661_v62, %v501_v11 }
 0x261   : > { %3137 = vmatprep.mubr.f32.mxu0 %v994_v22  ;;  %3197 = vmatprep.mubr.f32.mxu1 %v1210_v49  ;;  %v2426_v13 = vpop.f32.mrf.mxu0  ;;  %v1245_v30 = vmul.f32 %v6661_v62, %v717_v10  ;;  %v519_v22 = vld [vmem:[%s4490_s11 + $0x6b0] sm:$0xff] }
 0x262   : > { %v6772_v58 = vadd.f32 %v2609_v36, %v2425_v56  ;;  %v2611_v3 = vpop.f32.mrf.mxu1  ;;  %v735_v49 = vld [vmem:[%s4490_s11 + $0xd70] sm:$0xff]  ;;  %v1047_v29 = vmul.f32 %v6661_v62, %v519_v22  ;;  %s287_s11 = smul.u32 24, %s4064_s22 }
 0x263   : > { %v1263_v6 = vmul.f32 %v6661_v62, %v735_v49 }
 0x264   : > { %3138 = vmatmul.mubr.f32.gmra.mxu0 %v993_v57  ;;  %3198 = vmatmul.mubr.f32.gmra.mxu1 %v1209_v18  ;;  %v2429_v35 = vpop.f32.mrf.mxu0  ;;  %p288_p13 = scmp.lt.s32.totalorder %s287_s11, 47 }
 0x265   : > { %3142 = vmatprep.mubr.f32.mxu0 %v1012_v8  ;;  %3202 = vmatprep.mubr.f32.mxu1 %v1228_v47  ;;  %v2430_v55 = vadd.f32 %v2429_v35, %v6396_v14  ;;  %v2614_v38 = vpop.f32.mrf.mxu1  ;;  %v1264_v14 = vmul.f32 %v6649_v33, %v736_v63 }
 0x266   : > { %v2431_v44 = vpop.f32.mrf.mxu0  ;;  %s7423_s11 = smov (!%p288_p13, %s287_s11), 47 }
 0x267   : > { %v6783_v27 = vadd.f32 %v2614_v38, %v2430_v55  ;;  %v2616_v4 = vpop.f32.mrf.mxu1  ;;  %s7130_s21 = sshll.u32 %s7423_s11, 3 }
 0x268   : > { %3143 = vmatmul.mubr.f32.gmra.mxu0 %v1011_v26  ;;  %3203 = vmatmul.mubr.f32.gmra.mxu1 %v1227_v42  ;;  %s7140_s10 = scalar_lea.vmem %s7402_s3, %s7130_s21  ;;  %s7164_s29 = scalar_lea.vmem %s7403_s4, %s7130_s21 }
 0x269   : > { %3147 = vmatprep.mubr.f32.mxu0 %v1030_v59  ;;  %3207 = vmatprep.mubr.f32.mxu1 %v1246_v37  ;;  %v2434_v28 = vpop.f32.mrf.mxu0  ;;  %v2619_v25 = vpop.f32.mrf.mxu1  ;;  %s7314_s12 = scalar_lea.vmem %s7404_s5, %s7130_s21 }
 0x26a   : > { %v2435_v60 = vadd.f32 %v2434_v28, %v6416_v15 }
 0x26b   : > { %v2436_v52 = vpop.f32.mrf.mxu0  ;;  %v2621_v12 = vpop.f32.mrf.mxu1 }
 0x26c   : > { %3148 = vmatmul.mubr.f32.gmra.mxu0 %v1029_v9  ;;  %3208 = vmatmul.mubr.f32.gmra.mxu1 %v1245_v30  ;;  %v6794_v57 = vadd.f32 %v2619_v25, %v2435_v60 }
 0x26d   : > { %3152 = vmatprep.mubr.f32.mxu0 %v1048_v32  ;;  %3212 = vmatprep.mubr.f32.mxu1 %v1264_v14  ;;  %v2439_v18 = vpop.f32.mrf.mxu0 }
 0x26e   : > { %v2440_v33 = vadd.f32 %v2439_v18, %v6431_v1  ;;  %v2624_v56 = vpop.f32.mrf.mxu1 }
 0x26f   : > { %v2441_v36 = vpop.f32.mrf.mxu0 }
 0x270   : > { %3153 = vmatmul.mubr.f32.gmra.mxu0 %v1047_v29  ;;  %3213 = vmatmul.mubr.f32.gmra.mxu1 %v1263_v6  ;;  %v6797_v15 = vadd.f32 %v2624_v56, %v2440_v33  ;;  %v2626_v8 = vpop.f32.mrf.mxu1 }
 0x272   : > { %v2444_v47 = vpop.f32.mrf.mxu0 }
 0x273   : > { %v2445_v2 = vadd.f32 %v2444_v47, %v6449_v48  ;;  %v2629_v20 = vpop.f32.mrf.mxu1 }
 0x274   : > { %v2446_v13 = vpop.f32.mrf.mxu0 }
 0x275   : > { %v6800_v62 = vadd.f32 %v2629_v20, %v2445_v2  ;;  %v2631_v53 = vpop.f32.mrf.mxu1 }
 0x277   : > { %v2449_v43 = vpop.f32.mrf.mxu0  ;;  %v2634_v3 = vpop.f32.mrf.mxu1 }
 0x278   : > { %v2450_v26 = vadd.f32 %v2449_v43, %v6469_v40 }
 0x279   : > { %v2451_v1 = vpop.f32.mrf.mxu0  ;;  %v2636_v42 = vpop.f32.mrf.mxu1 }
 0x27a   : > { %v6803_v35 = vadd.f32 %v2634_v3, %v2450_v26 }
 0x27b   : > { %v2454_v59 = vpop.f32.mrf.mxu0 }
 0x27c   : > { %v2455_v37 = vadd.f32 %v2454_v59, %v6484_v5  ;;  %v2639_v11 = vpop.f32.mrf.mxu1 }
 0x27d   : > { %v2456_v10 = vpop.f32.mrf.mxu0 }
 0x27e   : > { %v6806_v55 = vadd.f32 %v2639_v11, %v2455_v37  ;;  %v2641_v48 = vpop.f32.mrf.mxu1 }
 0x280   : > { %v2459_v38 = vpop.f32.mrf.mxu0 }
 0x281   : > { %v2460_v61 = vadd.f32 %v2459_v38, %v6502_v23  ;;  %v2644_v63 = vpop.f32.mrf.mxu1 }
 0x282   : > { %v2461_v44 = vpop.f32.mrf.mxu0 }
 0x283   : > { %v6809_v4 = vadd.f32 %v2644_v63, %v2460_v61  ;;  %v2646_v40 = vpop.f32.mrf.mxu1 }
 0x285   : > { %v2464_v9 = vpop.f32.mrf.mxu0  ;;  %v2649_v30 = vpop.f32.mrf.mxu1 }
 0x286   : > { %v2465_v32 = vadd.f32 %v2464_v9, %v6522_v7 }
 0x287   : > { %v2466_v14 = vpop.f32.mrf.mxu0  ;;  %v2651_v22 = vpop.f32.mrf.mxu1 }
 0x288   : > { %v6812_v5 = vadd.f32 %v2649_v30, %v2465_v32 }
 0x289   : > { %v2469_v49 = vpop.f32.mrf.mxu0 }
 0x28a   : > { %v2470_v28 = vadd.f32 %v2469_v49, %v6537_v24  ;;  %v2654_v25 = vpop.f32.mrf.mxu1 }
 0x28b   : > { %v2471_v60 = vpop.f32.mrf.mxu0 }
 0x28c   : > { %v6815_v52 = vadd.f32 %v2654_v25, %v2470_v28  ;;  %v2656_v23 = vpop.f32.mrf.mxu1 }
 0x28f   : > { %v2474_v12 = vpop.f32.mrf.mxu0  ;;  %v2659_v29 = vpop.f32.mrf.mxu1 }
 0x290   : > { %v2475_v6 = vadd.f32 %v2474_v12, %v6559_v46 }
 0x291   : > { %v2476_v18 = vpop.f32.mrf.mxu0  ;;  %v2661_v33 = vpop.f32.mrf.mxu1 }
 0x292   : > { %v6818_v56 = vadd.f32 %v2659_v29, %v2475_v6 }
 0x294   : > { %v2729_v7 = vpop.f32.mrf.mxu0  ;;  %v2914_v36 = vpop.f32.mrf.mxu1 }
 0x295   : > { %v2730_v8 = vadd.f32 %v2729_v7, %v6577_v21 }
 0x296   : > { %v2731_v47 = vpop.f32.mrf.mxu0  ;;  %v2916_v2 = vpop.f32.mrf.mxu1 }
 0x297   : > { %v6821_v24 = vadd.f32 %v2914_v36, %v2730_v8 }
 0x298   : > { %v2734_v20 = vpop.f32.mrf.mxu0  ;;  %v2919_v13 = vpop.f32.mrf.mxu1 }
 0x299   : > { %v2735_v53 = vadd.f32 %v2734_v20, %v6592_v45 }
 0x29a   : > { %v2736_v43 = vpop.f32.mrf.mxu0  ;;  %v2921_v3 = vpop.f32.mrf.mxu1 }
 0x29b   : > { %v6824_v26 = vadd.f32 %v2919_v13, %v2735_v53 }
 0x29c   : > { %v2924_v46 = vpop.f32.mrf.mxu1 }
 0x29d   : > { %v2739_v1 = vpop.f32.mrf.mxu0 }
 0x29e   : > { %v2740_v42 = vadd.f32 %v2739_v1, %v6608_v31  ;;  %v2926_v59 = vpop.f32.mrf.mxu1 }
 0x29f   : > { %v2741_v37 = vpop.f32.mrf.mxu0 }
 0x2a0   : > { %v6827_v11 = vadd.f32 %v2924_v46, %v2740_v42 }
 0x2a1   : > { %v2744_v21 = vpop.f32.mrf.mxu0  ;;  %v2929_v10 = vpop.f32.mrf.mxu1 }
 0x2a2   : > { %v2745_v48 = vadd.f32 %v2744_v21, %v6628_v16 }
 0x2a3   : > { %v2746_v38 = vpop.f32.mrf.mxu0  ;;  %v2931_v61 = vpop.f32.mrf.mxu1 }
 0x2a4   : > { %v6830_v63 = vadd.f32 %v2929_v10, %v2745_v48 }
 0x2a5   : > { %v2749_v45 = vpop.f32.mrf.mxu0 }
 0x2a6   : > { %v2750_v44 = vadd.f32 %v2749_v45, %v6642_v50  ;;  %v2934_v40 = vpop.f32.mrf.mxu1 }
 0x2a7   : > { %v2751_v9 = vpop.f32.mrf.mxu0 }
 0x2a8   : > { %v6833_v30 = vadd.f32 %v2934_v40, %v2750_v44  ;;  %v2936_v31 = vpop.f32.mrf.mxu1 }
 0x2aa   : > { %v2939_v32 = vpop.f32.mrf.mxu1 }
 0x2ab   : > { %v2754_v14 = vpop.f32.mrf.mxu0 }
 0x2ac   : > { %v2755_v22 = vadd.f32 %v2754_v14, %v6666_v51  ;;  %v2941_v49 = vpop.f32.mrf.mxu1 }
 0x2ad   : > { %v2756_v28 = vpop.f32.mrf.mxu0 }
 0x2ae   : > { %v6836_v25 = vadd.f32 %v2939_v32, %v2755_v22 }
 0x2af   : > { %v2759_v16 = vpop.f32.mrf.mxu0  ;;  %v2944_v60 = vpop.f32.mrf.mxu1 }
 0x2b0   : > { %v2760_v23 = vadd.f32 %v2759_v16, %v6687_v41 }
 0x2b1   : > { %v2761_v12 = vpop.f32.mrf.mxu0  ;;  %v2946_v29 = vpop.f32.mrf.mxu1 }
 0x2b2   : > { %v6839_v50 = vadd.f32 %v2944_v60, %v2760_v23 }
 0x2b3   : > { %v2764_v6 = vpop.f32.mrf.mxu0 }
 0x2b4   : > { %v2765_v18 = vadd.f32 %v2764_v6, %v6698_v17  ;;  %v2949_v33 = vpop.f32.mrf.mxu1 }
 0x2b5   : > { %v2766_v7 = vpop.f32.mrf.mxu0 }
 0x2b6   : > { %v6842_v36 = vadd.f32 %v2949_v33, %v2765_v18  ;;  %v2951_v51 = vpop.f32.mrf.mxu1 }
 0x2b8   : > { %v2954_v8 = vpop.f32.mrf.mxu1 }
 0x2b9   : > { %v2769_v47 = vpop.f32.mrf.mxu0 }
 0x2ba   : > { %v2770_v2 = vadd.f32 %v2769_v47, %v6709_v34  ;;  %v2956_v20 = vpop.f32.mrf.mxu1 }
 0x2bb   : > { %v2771_v13 = vpop.f32.mrf.mxu0 }
 0x2bc   : > { %v6845_v53 = vadd.f32 %v2954_v8, %v2770_v2 }
 0x2bd   : > { %v2774_v41 = vpop.f32.mrf.mxu0  ;;  %v2959_v43 = vpop.f32.mrf.mxu1 }
 0x2be   : > { %v2775_v3 = vadd.f32 %v2774_v41, %v6722_v0 }
 0x2bf   : > { %v2776_v46 = vpop.f32.mrf.mxu0  ;;  %v2961_v1 = vpop.f32.mrf.mxu1 }
 0x2c0   : > { %v6848_v17 = vadd.f32 %v2959_v43, %v2775_v3 }
 0x2c1   : > { %v2779_v42 = vpop.f32.mrf.mxu0 }
 0x2c2   : > { %v2780_v59 = vadd.f32 %v2779_v42, %v6733_v19  ;;  %v2964_v37 = vpop.f32.mrf.mxu1 }
 0x2c3   : > { %v2781_v21 = vpop.f32.mrf.mxu0 }
 0x2c4   : > { %v6851_v10 = vadd.f32 %v2964_v37, %v2780_v59  ;;  %v2966_v34 = vpop.f32.mrf.mxu1 }
 0x2c6   : > { %v2969_v48 = vpop.f32.mrf.mxu1 }
 0x2c7   : > { %v2784_v38 = vpop.f32.mrf.mxu0 }
 0x2c8   : > { %v2785_v61 = vadd.f32 %v2784_v38, %v6748_v39  ;;  %v2971_v45 = vpop.f32.mrf.mxu1 }
 0x2c9   : > { %v2786_v44 = vpop.f32.mrf.mxu0 }
 0x2ca   : > { %v6854_v40 = vadd.f32 %v2969_v48, %v2785_v61 }
 0x2cb   : > { %v6856_v0 = vpop.f32.mrf.mxu0  ;;  %v6858_v9 = vpop.f32.mrf.mxu1 }
 0x2cd   : > { %v2791_v31 = vpop.f32.mrf.mxu0  ;;  %v2976_v32 = vpop.f32.mrf.mxu1 }
 0x2cf   : > { %v6860_v19 = vpop.f32.mrf.mxu0 }
 0x2d0   : > { %v6862_v14 = vpop.f32.mrf.mxu1 }
 0x2d1   : > { %v2796_v22 = vpop.f32.mrf.mxu0 }
 0x2d2   : > { %v2981_v49 = vpop.f32.mrf.mxu1 }
 0x2d4   : > { %v2984_v28 = vpop.f32.mrf.mxu1 }
 0x2d5   : > { %v2799_v16 = vpop.f32.mrf.mxu0 }
 0x2d6   : > { %v2800_v39 = vadd.f32 %v2799_v16, %v6783_v27  ;;  %v2986_v60 = vpop.f32.mrf.mxu1 }
 0x2d7   : > { %v2801_v23 = vpop.f32.mrf.mxu0 }
 0x2d8   : > { %v6865_v12 = vadd.f32 %v2984_v28, %v2800_v39 }
 0x2d9   : > { %v2804_v29 = vpop.f32.mrf.mxu0  ;;  %v2989_v6 = vpop.f32.mrf.mxu1 }
 0x2da   : > { %v2805_v18 = vadd.f32 %v2804_v29, %v6794_v57 }
 0x2db   : > { %v2806_v33 = vpop.f32.mrf.mxu0  ;;  %v2991_v7 = vpop.f32.mrf.mxu1 }
 0x2dc   : > { %v6868_v51 = vadd.f32 %v2989_v6, %v2805_v18 }
 0x2dd   : > { %v2809_v8 = vpop.f32.mrf.mxu0 }
 0x2de   : > { %v2810_v47 = vadd.f32 %v2809_v8, %v6797_v15  ;;  %v2994_v2 = vpop.f32.mrf.mxu1 }
 0x2df   : > { %v2811_v20 = vpop.f32.mrf.mxu0 }
 0x2e0   : > { %v6871_v13 = vadd.f32 %v2994_v2, %v2810_v47  ;;  %v2996_v27 = vpop.f32.mrf.mxu1 }
 0x2e1   : > { %v2790_v27 = vadd.f32 %v6856_v0, %v6761_v54 }
 0x2e2   : > { %v2999_v41 = vpop.f32.mrf.mxu1 }
 0x2e3   : > { %v2814_v43 = vpop.f32.mrf.mxu0 }
 0x2e4   : > { %v2815_v3 = vadd.f32 %v2814_v43, %v6800_v62  ;;  %v3001_v46 = vpop.f32.mrf.mxu1 }
 0x2e5   : > { %v2816_v1 = vpop.f32.mrf.mxu0 }
 0x2e6   : > { %v6874_v42 = vadd.f32 %v2999_v41, %v2815_v3  ;;  %v2795_v3 = vadd.f32 %v6860_v19, %v6772_v58  ;;  %v2975_v1 = vadd.f32 %v6858_v9, %v2790_v27 }
 0x2e7   : > { %v2819_v57 = vpop.f32.mrf.mxu0  ;;  %v3004_v59 = vpop.f32.mrf.mxu1 }
 0x2e8   : > { %v2820_v37 = vadd.f32 %v2819_v57, %v6803_v35 }
 0x2e9   : > { %v2821_v21 = vpop.f32.mrf.mxu0  ;;  %v3006_v34 = vpop.f32.mrf.mxu1 }
 0x2ea   : > { %v6877_v15 = vadd.f32 %v3004_v59, %v2820_v37  ;;  %v2980_v37 = vadd.f32 %v6862_v14, %v2795_v3 }
 0x2eb   : > { %v2824_v48 = vpop.f32.mrf.mxu0 }
 0x2ec   : > { %v2825_v38 = vadd.f32 %v2824_v48, %v6806_v55  ;;  %v3009_v61 = vpop.f32.mrf.mxu1 }
 0x2ed   : > { %v2826_v45 = vpop.f32.mrf.mxu0 }
 0x2ee   : > { %v6880_v44 = vadd.f32 %v3009_v61, %v2825_v38  ;;  %v3011_v62 = vpop.f32.mrf.mxu1 }
 0x2f0   : > { %v3014_v31 = vpop.f32.mrf.mxu1 }
 0x2f1   : > { %v2829_v32 = vpop.f32.mrf.mxu0 }
 0x2f2   : > { %v2830_v22 = vadd.f32 %v2829_v32, %v6809_v4  ;;  %v3016_v49 = vpop.f32.mrf.mxu1 }
 0x2f3   : > { %v2831_v28 = vpop.f32.mrf.mxu0 }
 0x2f4   : > { %v6883_v16 = vadd.f32 %v3014_v31, %v2830_v22 }
 0x2f5   : > { %v2834_v35 = vpop.f32.mrf.mxu0  ;;  %v3019_v39 = vpop.f32.mrf.mxu1 }
 0x2f6   : > { %v2835_v60 = vadd.f32 %v2834_v35, %v6812_v5 }
 0x2f7   : > { %v2836_v23 = vpop.f32.mrf.mxu0  ;;  %v3021_v29 = vpop.f32.mrf.mxu1 }
 0x2f8   : > { %v6886_v55 = vadd.f32 %v3019_v39, %v2835_v60 }
 0x2f9   : > { %v2839_v6 = vpop.f32.mrf.mxu0 }
 0x2fa   : > { %v2840_v18 = vadd.f32 %v2839_v6, %v6815_v52  ;;  %v3024_v33 = vpop.f32.mrf.mxu1 }
 0x2fb   : > { %v2841_v7 = vpop.f32.mrf.mxu0 }
 0x2fc   : > { %v6889_v8 = vadd.f32 %v3024_v33, %v2840_v18  ;;  %v3026_v4 = vpop.f32.mrf.mxu1 }
 0x2ff   : > { %v2844_v47 = vpop.f32.mrf.mxu0  ;;  %v3029_v2 = vpop.f32.mrf.mxu1 }
 0x300   : > { %v2845_v20 = vadd.f32 %v2844_v47, %v6818_v56 }
 0x301   : > { %v2846_v5 = vpop.f32.mrf.mxu0  ;;  %v3031_v41 = vpop.f32.mrf.mxu1 }
 0x302   : > { %v6894_v43 = vadd.f32 %v3029_v2, %v2845_v20 }
 0x304   : > { %v3099_v52 = vpop.f32.mrf.mxu0  ;;  %v3159_v46 = vpop.f32.mrf.mxu1 }
 0x305   : > { %v6900_v57 = vadd.f32 %v3099_v52, %v6821_v24  ;;  %v6903_v54 = vadd.f32 %v3159_v46, %v2975_v1 }
 0x306   : > { %v3101_v59 = vpop.f32.mrf.mxu0  ;;  %v3161_v56 = vpop.f32.mrf.mxu1 }
 0x307   : > { %v3219_v0 = vsel %vm3218_vm0, %v6900_v57, 0.0  ;;  %v3255_v14 = vsel %vm3218_vm0, %v6903_v54, 0.0  ;;  %v3315_v61 = vmul.f32 %v6900_v57, %v6900_v57  ;;  %v3327_v28 = vmul.f32 %v6903_v54, %v6903_v54 }
 0x308   : > { %v3104_v21 = vpop.f32.mrf.mxu0  ;;  %v3164_v34 = vpop.f32.mrf.mxu1  ;;  %3220 = vadd.xlane.f32.xlu0 %v3219_v0 }
 0x309   : > { %v6908_v58 = vadd.f32 %v3104_v21, %v6824_v26  ;;  %v6910_v19 = vadd.f32 %v3164_v34, %v2980_v37  ;;  %v3339_v22 = vsel %vm3218_vm0, %v3315_v61, 0.0  ;;  %v3375_v18 = vsel %vm3218_vm0, %v3327_v28, 0.0 }
 0x30a   : > { %v3106_v9 = vpop.f32.mrf.mxu0  ;;  %v3166_v24 = vpop.f32.mrf.mxu1 }
 0x30b   : > { %v3258_v48 = vsel %vm3218_vm0, %v6910_v19, 0.0  ;;  %v3316_v38 = vmul.f32 %v6908_v58, %v6908_v58  ;;  %v3328_v49 = vmul.f32 %v6910_v19, %v6910_v19  ;;  %v3222_v27 = vsel %vm3218_vm0, %v6908_v58, 0.0 }
 0x30c   : > { %v3109_v45 = vpop.f32.mrf.mxu0  ;;  %v3169_v62 = vpop.f32.mrf.mxu1  ;;  %3259 = vadd.xlane.f32.xlu1 %v3258_v48  ;;  %3256 = vadd.xlane.f32.xlu0 %v3255_v14 }
 0x30d   : > { %v3342_v32 = vsel %vm3218_vm0, %v3316_v38, 0.0  ;;  %v6927_v29 = vadd.f32 %v3109_v45, %v6827_v11  ;;  %v3378_v6 = vsel %vm3218_vm0, %v3328_v49, 0.0  ;;  %v6932_v2 = vadd.f32 %v3169_v62, %v6865_v12 }
 0x30e   : > { %v3111_v26 = vpop.f32.mrf.mxu0  ;;  %v3171_v31 = vpop.f32.mrf.mxu1 }
 0x30f   : > { %v3225_v11 = vsel %vm3218_vm0, %v6927_v29, 0.0  ;;  %v3317_v1 = vmul.f32 %v6927_v29, %v6927_v29  ;;  %v3329_v9 = vmul.f32 %v6932_v2, %v6932_v2 }
 0x310   : > { %v3114_v35 = vpop.f32.mrf.mxu0  ;;  %v3174_v39 = vpop.f32.mrf.mxu1  ;;  %3343 = vadd.xlane.f32.xlu1 %v3342_v32  ;;  %3340 = vadd.xlane.f32.xlu0 %v3339_v22 }
 0x311   : > { %v6935_v20 = vadd.f32 %v3114_v35, %v6830_v63  ;;  %v6942_v46 = vadd.f32 %v3174_v39, %v6868_v51  ;;  %v3261_v63 = vsel %vm3218_vm0, %v6932_v2, 0.0  ;;  %v3345_v21 = vsel %vm3218_vm0, %v3317_v1, 0.0 }
 0x312   : > { %v3116_v60 = vpop.f32.mrf.mxu0  ;;  %v3176_v23 = vpop.f32.mrf.mxu1  ;;  %v3381_v62 = vsel %vm3218_vm0, %v3329_v9, 0.0 }
 0x313   : > { %v3228_v12 = vsel %vm3218_vm0, %v6935_v20, 0.0  ;;  %v3264_v51 = vsel %vm3218_vm0, %v6942_v46, 0.0  ;;  %v3318_v34 = vmul.f32 %v6935_v20, %v6935_v20  ;;  %v3330_v26 = vmul.f32 %v6942_v46, %v6942_v46 }
 0x314   : > { %v3119_v33 = vpop.f32.mrf.mxu0  ;;  %v3179_v7 = vpop.f32.mrf.mxu1  ;;  %3379 = vadd.xlane.f32.xlu1 %v3378_v6  ;;  %3376 = vadd.xlane.f32.xlu0 %v3375_v18 }
 0x315   : > { %v6960_v61 = vadd.f32 %v3119_v33, %v6833_v30  ;;  %v3348_v45 = vsel %vm3218_vm0, %v3318_v34, 0.0  ;;  %v6971_v28 = vadd.f32 %v3179_v7, %v6871_v13  ;;  %v3384_v35 = vsel %vm3218_vm0, %v3330_v26, 0.0 }
 0x316   : > { %v3121_v4 = vpop.f32.mrf.mxu0  ;;  %v3181_v47 = vpop.f32.mrf.mxu1 }
 0x317   : > { %v3231_v39 = vsel %vm3218_vm0, %v6960_v61, 0.0  ;;  %v3319_v7 = vmul.f32 %v6960_v61, %v6960_v61 }
 0x318   : > { %v3124_v5 = vpop.f32.mrf.mxu0  ;;  %v3184_v41 = vpop.f32.mrf.mxu1  ;;  %3226 = vadd.xlane.f32.xlu1 %v3225_v11  ;;  %3223 = vadd.xlane.f32.xlu0 %v3222_v27 }
 0x319   : > { %v6974_v30 = vadd.f32 %v3124_v5, %v6836_v25  ;;  %v6982_v33 = vadd.f32 %v3184_v41, %v6874_v42  ;;  %v3267_v25 = vsel %vm3218_vm0, %v6971_v28, 0.0  ;;  %v3351_v5 = vsel %vm3218_vm0, %v3319_v7, 0.0 }
 0x31a   : > { %v3126_v3 = vpop.f32.mrf.mxu0  ;;  %v3186_v52 = vpop.f32.mrf.mxu1 }
 0x31b   : > { %v3234_v13 = vsel %vm3218_vm0, %v6974_v30, 0.0  ;;  %v3270_v42 = vsel %vm3218_vm0, %v6982_v33, 0.0  ;;  %v3320_v41 = vmul.f32 %v6974_v30, %v6974_v30  ;;  %v3331_v3 = vmul.f32 %v6971_v28, %v6971_v28 }
 0x31c   : > { %v3129_v59 = vpop.f32.mrf.mxu0  ;;  %v6950_v56 = vpop.f32.mrf.mxu1  ;;  %3229 = vadd.xlane.f32.xlu1 %v3228_v12  ;;  %3262 = vadd.xlane.f32.xlu0 %v3261_v63  ;;  %v4350_v63 = vmov 0   ;;  %v3332_v34 = vmul.f32 %v6982_v33, %v6982_v33 }
 0x31d   : > { %4199 = vset.pattern.permute.xlu0 %v4350_v63  ;;  %4200 = vset.pattern.permute.xlu1 %v4350_v63  ;;  %v7014_v9 = vadd.f32 %v6950_v56, %v6877_v15 }
 0x31e   : > { %v3131_v37 = vpop.f32.mrf.mxu0  ;;  %v3191_v0 = vpop.f32.mrf.mxu1 }
 0x31f   : > { %v7006_v0 = vadd.f32 %v3129_v59, %v6839_v50  ;;  %v3273_v15 = vsel %vm3218_vm0, %v7014_v9, 0.0 }
 0x320   : > { %v3134_v24 = vpop.f32.mrf.mxu0  ;;  %v3194_v48 = vpop.f32.mrf.mxu1  ;;  %3265 = vadd.xlane.f32.xlu1 %v3264_v51  ;;  %3346 = vadd.xlane.f32.xlu0 %v3345_v21  ;;  %v3354_v51 = vsel %vm3218_vm0, %v3320_v41, 0.0  ;;  %v3387_v21 = vsel %vm3218_vm0, %v3331_v3, 0.0 }
 0x321   : > { %v3237_v50 = vsel %vm3218_vm0, %v7006_v0, 0.0  ;;  %v7023_v59 = vadd.f32 %v3194_v48, %v6880_v44  ;;  %v3333_v48 = vmul.f32 %v7014_v9, %v7014_v9 }
 0x322   : > { %v3136_v14 = vpop.f32.mrf.mxu0  ;;  %v3196_v38 = vpop.f32.mrf.mxu1 }
 0x323   : > { %v7017_v14 = vadd.f32 %v3134_v24, %v6842_v36  ;;  %v3390_v38 = vsel %vm3218_vm0, %v3332_v34, 0.0  ;;  %v3321_v36 = vmul.f32 %v7006_v0, %v7006_v0  ;;  %v3276_v56 = vsel %vm3218_vm0, %v7023_v59, 0.0 }
 0x324   : > { %v6966_v31 = vpop.f32.mrf.mxu0  ;;  %v6968_v32 = vpop.f32.mrf.mxu1  ;;  %3349 = vadd.xlane.f32.xlu1 %v3348_v45  ;;  %3382 = vadd.xlane.f32.xlu0 %v3381_v62 }
 0x325   : > { %v3240_v45 = vsel %vm3218_vm0, %v7017_v14, 0.0  ;;  %v3357_v24 = vsel %vm3218_vm0, %v3321_v36, 0.0  ;;  %v3322_v44 = vmul.f32 %v7017_v14, %v7017_v14  ;;  %v7040_v62 = vadd.f32 %v6966_v31, %v6845_v53 }
 0x326   : > { %v3141_v22 = vpop.f32.mrf.mxu0  ;;  %v3201_v49 = vpop.f32.mrf.mxu1 }
 0x327   : > { %v3360_v26 = vsel %vm3218_vm0, %v3322_v44, 0.0  ;;  %v3393_v22 = vsel %vm3218_vm0, %v3333_v48, 0.0  ;;  %v3334_v49 = vmul.f32 %v7023_v59, %v7023_v59  ;;  %v3243_v53 = vsel %vm3218_vm0, %v7040_v62, 0.0 }
 0x328   : > { %v3144_v60 = vpop.f32.mrf.mxu0  ;;  %v6979_v23 = vpop.f32.mrf.mxu1  ;;  %3385 = vadd.xlane.f32.xlu1 %v3384_v35  ;;  %3232 = vadd.xlane.f32.xlu0 %v3231_v39  ;;  %v7048_v35 = vadd.f32 %v6968_v32, %v6883_v16 }
 0x329   : > { %v7051_v39 = vadd.f32 %v3144_v60, %v6848_v17  ;;  %v7058_v31 = vadd.f32 %v6979_v23, %v6886_v55  ;;  %v3323_v17 = vmul.f32 %v7040_v62, %v7040_v62 }
 0x32a   : > { %v3146_v6 = vpop.f32.mrf.mxu0  ;;  %v3206_v18 = vpop.f32.mrf.mxu1  ;;  %v3279_v16 = vsel %vm3218_vm0, %v7048_v35, 0.0  ;;  %v3335_v23 = vmul.f32 %v7048_v35, %v7048_v35 }
 0x32b   : > { %v3396_v6 = vsel %vm3218_vm0, %v3334_v49, 0.0  ;;  %v3246_v18 = vsel %vm3218_vm0, %v7051_v39, 0.0  ;;  %v3282_v32 = vsel %vm3218_vm0, %v7058_v31, 0.0  ;;  %v3363_v60 = vsel %vm3218_vm0, %v3323_v17, 0.0 }
 0x32c   : > { %v6990_v4 = vpop.f32.mrf.mxu0  ;;  %v6992_v47 = vpop.f32.mrf.mxu1  ;;  %3235 = vadd.xlane.f32.xlu1 %v3234_v13  ;;  %3268 = vadd.xlane.f32.xlu0 %v3267_v25  ;;  %v3324_v55 = vmul.f32 %v7051_v39, %v7051_v39  ;;  %v3399_v7 = vsel %vm3218_vm0, %v3335_v23, 0.0 }
 0x32d   : > { %v7075_v13 = vadd.f32 %v6990_v4, %v6851_v10 }
 0x32e   : > { %v3151_v11 = vpop.f32.mrf.mxu0  ;;  %v3211_v27 = vpop.f32.mrf.mxu1  ;;  %v3366_v25 = vsel %vm3218_vm0, %v3324_v55, 0.0 }
 0x32f   : > { %v3336_v11 = vmul.f32 %v7058_v31, %v7058_v31  ;;  %v7083_v27 = vadd.f32 %v6992_v47, %v6889_v8  ;;  %v3249_v4 = vsel %vm3218_vm0, %v7075_v13, 0.0 }
 0x330   : > { %v7001_v52 = vpop.f32.mrf.mxu0  ;;  %v7003_v12 = vpop.f32.mrf.mxu1  ;;  %3271 = vadd.xlane.f32.xlu1 %v3270_v42  ;;  %3352 = vadd.xlane.f32.xlu0 %v3351_v5 }
 0x331   : > { %v7087_v42 = vadd.f32 %v7001_v52, %v6854_v40  ;;  %v3402_v10 = vsel %vm3218_vm0, %v3336_v11, 0.0  ;;  %v7094_v5 = vadd.f32 %v7003_v12, %v6894_v43  ;;  %v3285_v8 = vsel %vm3218_vm0, %v7083_v27, 0.0 }
 0x332   : > { %v3156_v1 = vpop.f32.mrf.mxu0  ;;  %v3216_v37 = vpop.f32.mrf.mxu1  ;;  %v3325_v40 = vmul.f32 %v7075_v13, %v7075_v13  ;;  %v3337_v52 = vmul.f32 %v7083_v27, %v7083_v27 }
 0x333   : > { %v3252_v41 = vsel %vm3218_vm0, %v7087_v42, 0.0  ;;  %v3288_v47 = vsel %vm3218_vm0, %v7094_v5, 0.0  ;;  %v3326_v43 = vmul.f32 %v7087_v42, %v7087_v42  ;;  %v3338_v1 = vmul.f32 %v7094_v5, %v7094_v5 }
 0x334   : > { %3355 = vadd.xlane.f32.xlu1 %v3354_v51  ;;  %3388 = vadd.xlane.f32.xlu0 %v3387_v21  ;;  %v3369_v3 = vsel %vm3218_vm0, %v3325_v40, 0.0  ;;  %v3405_v63 = vsel %vm3218_vm0, %v3337_v52, 0.0 }
 0x335   : > { %v3372_v12 = vsel %vm3218_vm0, %v3326_v43, 0.0  ;;  %v3408_v37 = vsel %vm3218_vm0, %v3338_v1, 0.0  ;;  %v3531_v1 = vld [vmem:[%s7140_s10] sm:$0xff] }
 0x338   : > { %3391 = vadd.xlane.f32.xlu1 %v3390_v38  ;;  %3238 = vadd.xlane.f32.xlu0 %v3237_v50 }
 0x33c   : > { %3241 = vadd.xlane.f32.xlu1 %v3240_v45  ;;  %3274 = vadd.xlane.f32.xlu0 %v3273_v15 }
 0x340   : > { %3277 = vadd.xlane.f32.xlu1 %v3276_v56  ;;  %3358 = vadd.xlane.f32.xlu0 %v3357_v24 }
 0x344   : > { %3361 = vadd.xlane.f32.xlu1 %v3360_v26  ;;  %3394 = vadd.xlane.f32.xlu0 %v3393_v22 }
 0x348   : > { %3397 = vadd.xlane.f32.xlu1 %v3396_v6  ;;  %3244 = vadd.xlane.f32.xlu0 %v3243_v53 }
 0x34c   : > { %3247 = vadd.xlane.f32.xlu1 %v3246_v18  ;;  %3280 = vadd.xlane.f32.xlu0 %v3279_v16 }
 0x350   : > { %3283 = vadd.xlane.f32.xlu1 %v3282_v32  ;;  %3364 = vadd.xlane.f32.xlu0 %v3363_v60 }
 0x354   : > { %3367 = vadd.xlane.f32.xlu1 %v3366_v25  ;;  %3400 = vadd.xlane.f32.xlu0 %v3399_v7 }
 0x358   : > { %3403 = vadd.xlane.f32.xlu1 %v3402_v10  ;;  %3250 = vadd.xlane.f32.xlu0 %v3249_v4 }
 0x35c   : > { %3253 = vadd.xlane.f32.xlu1 %v3252_v41  ;;  %3286 = vadd.xlane.f32.xlu0 %v3285_v8 }
 0x360   : > { %3289 = vadd.xlane.f32.xlu1 %v3288_v47  ;;  %3370 = vadd.xlane.f32.xlu0 %v3369_v3 }
 0x364   : > { %3373 = vadd.xlane.f32.xlu1 %v3372_v12  ;;  %3406 = vadd.xlane.f32.xlu0 %v3405_v63 }
 0x368   : > { %3409 = vadd.xlane.f32.xlu1 %v3408_v37 }
 0x391   : > { %v3221_v51 = vpop.xlane.xlu0 %3220 }
 0x392   : > { %v7114_v38 = vmul.f32 0.020408163, %v3221_v51 }
 0x394   : > { %v3435_v36 = vmul.f32 %v7114_v38, %v7114_v38 }
 0x395   : > { %v3260_v21 = vpop.xlane.xlu1 %3259  ;;  %v3257_v34 = vpop.xlane.xlu0 %3256 }
 0x396   : > { %v7116_v50 = vmul.f32 0.020408163, %v3260_v21  ;;  %v7122_v56 = vmul.f32 0.020408163, %v3257_v34 }
 0x398   : > { %v3448_v48 = vmul.f32 %v7116_v50, %v7116_v50  ;;  %v3447_v49 = vmul.f32 %v7122_v56, %v7122_v56 }
 0x399   : > { %v3344_v45 = vpop.xlane.xlu1 %3343  ;;  %v3341_v15 = vpop.xlane.xlu0 %3340 }
 0x39a   : > { %v3411_v24 = vmul.f32 0.020408163, %v3341_v15  ;;  %v3412_v7 = vmul.f32 0.020408163, %v3344_v45 }
 0x39c   : > { %v3459_v44 = vsub.f32 %v3411_v24, %v3435_v36 }
 0x39d   : > { %v3380_v26 = vpop.xlane.xlu1 %3379  ;;  %v3377_v22 = vpop.xlane.xlu0 %3376 }
 0x39e   : > { %v3483_v6 = vadd.f32 0.001, %v3459_v44  ;;  %v3424_v53 = vmul.f32 0.020408163, %v3380_v26  ;;  %v3423_v18 = vmul.f32 0.020408163, %v3377_v22 }
 0x39f   : > { %v3544_v26 = vld [vmem:[%s7140_s10 + $0x68] sm:$0xff] }
 0x3a0   : > { %4201 = vrsqrt.f32 %v3483_v6  ;;  %v3472_v16 = vsub.f32 %v3424_v53, %v3448_v48  ;;  %v3471_v17 = vsub.f32 %v3423_v18, %v3447_v49  ;;  %v3543_v49 = vld [vmem:[%s7140_s10 + $0x60] sm:$0xff] }
 0x3a1   : > { %v3227_v32 = vpop.xlane.xlu1 %3226  ;;  %v3224_v60 = vpop.xlane.xlu0 %3223 }
 0x3a2   : > { %v3496_v55 = vadd.f32 0.001, %v3472_v16  ;;  %v3495_v23 = vadd.f32 0.001, %v3471_v17  ;;  %v7128_v25 = vmul.f32 0.020408163, %v3224_v60 }
 0x3a3   : > { %v7134_v41 = vmul.f32 0.020408163, %v3227_v32 }
 0x3a4   : > { %4203 = vrsqrt.f32 %v3496_v55  ;;  %v3436_v11 = vmul.f32 %v7128_v25, %v7128_v25 }
 0x3a5   : > { %4205 = vrsqrt.f32 %v3495_v23  ;;  %v3230_v10 = vpop.xlane.xlu1 %3229  ;;  %v3263_v4 = vpop.xlane.xlu0 %3262  ;;  %v3437_v12 = vmul.f32 %v7134_v41, %v7134_v41 }
 0x3a6   : > { %v3460_v8 = vsub.f32 %v3412_v7, %v3436_v11  ;;  %v7142_v47 = vmul.f32 0.020408163, %v3230_v10  ;;  %v7146_v63 = vmul.f32 0.020408163, %v3263_v4 }
 0x3a8   : > { %v3484_v40 = vadd.f32 0.001, %v3460_v8  ;;  %v3438_v51 = vmul.f32 %v7142_v47, %v7142_v47  ;;  %v3449_v48 = vmul.f32 %v7146_v63, %v7146_v63 }
 0x3a9   : > { %v3266_v3 = vpop.xlane.xlu1 %3265  ;;  %v3347_v43 = vpop.xlane.xlu0 %3346 }
 0x3aa   : > { %v3413_v52 = vmul.f32 0.020408163, %v3347_v43  ;;  %4207 = vrsqrt.f32 %v3484_v40  ;;  %v7151_v15 = vmul.f32 0.020408163, %v3266_v3  ;;  %v3532_v3 = vld [vmem:[%s7140_s10 + $0x8] sm:$0xff] }
 0x3ac   : > { %v3461_v21 = vsub.f32 %v3413_v52, %v3437_v12  ;;  %v3450_v60 = vmul.f32 %v7151_v15, %v7151_v15 }
 0x3ad   : > { %v4202_v37 = vpop.eup %4201  ;;  %v3350_v34 = vpop.xlane.xlu1 %3349 }
 0x3ae   : > { %v3383_v45 = vpop.xlane.xlu0 %3382  ;;  %v3414_v36 = vmul.f32 0.020408163, %v3350_v34  ;;  %v3555_v44 = vmul.f32 %v4202_v37, %v3531_v1  ;;  %v3485_v53 = vadd.f32 0.001, %v3461_v21  ;;  %v3579_v21 = vld [vmem:[%s7164_s29] sm:$0xff] }
 0x3af   : > { %v3425_v24 = vmul.f32 0.020408163, %v3383_v45  ;;  %v3580_v45 = vld [vmem:[%s7164_s29 + $0x8] sm:$0xff] }
 0x3b0   : > { %v3462_v22 = vsub.f32 %v3414_v36, %v3438_v51  ;;  %3653 = vperm.xlu0 %4199, %v3555_v44   ;;  %v3603_v12 = vmul.f32 %v3555_v44, %v7114_v38 }
 0x3b1   : > { %v4204_v6 = vpop.eup %4203  ;;  %v3473_v18 = vsub.f32 %v3425_v24, %v3449_v48  ;;  %v3386_v16 = vpop.xlane.xlu1 %3385 }
 0x3b2   : > { %v3233_v17 = vpop.xlane.xlu0 %3232  ;;  %v4206_v32 = vpop.eup %4205  ;;  %v3486_v55 = vadd.f32 0.001, %v3462_v22  ;;  %v3426_v23 = vmul.f32 0.020408163, %v3386_v16  ;;  %v3568_v7 = vmul.f32 %v4204_v6, %v3544_v26  ;;  %v3627_v48 = vsub.f32 %v3579_v21, %v3603_v12  ;;  %v3533_v12 = vld [vmem:[%s7140_s10 + $0x10] sm:$0xff] }
 0x3b3   : > { %v3567_v11 = vmul.f32 %v4206_v32, %v3543_v49  ;;  %v3497_v4 = vadd.f32 0.001, %v3473_v18  ;;  %v7172_v24 = vmul.f32 0.020408163, %v3233_v17  ;;  %v3592_v17 = vld [vmem:[%s7164_s29 + $0x68] sm:$0xff] }
 0x3b4   : > { %4209 = vrsqrt.f32 %v3486_v55  ;;  %v3474_v10 = vsub.f32 %v3426_v23, %v3450_v60  ;;  %3718 = vperm.xlu0 %4199, %v3568_v7   ;;  %v3616_v6 = vmul.f32 %v3568_v7, %v7116_v50  ;;  %v3534_v55 = vld [vmem:[%s7140_s10 + $0x18] sm:$0xff] }
 0x3b5   : > { %4211 = vrsqrt.f32 %v3485_v53  ;;  %3713 = vperm.xlu1 %4200, %v3567_v11   ;;  %v3236_v8 = vpop.xlane.xlu1 %3235  ;;  %v3615_v49 = vmul.f32 %v3567_v11, %v7122_v56  ;;  %v3439_v32 = vmul.f32 %v7172_v24, %v7172_v24 }
 0x3b6   : > { %v3269_v40 = vpop.xlane.xlu0 %3268  ;;  %v3498_v43 = vadd.f32 0.001, %v3474_v10  ;;  %v7168_v34 = vmul.f32 0.020408163, %v3236_v8  ;;  %v3640_v8 = vsub.f32 %v3592_v17, %v3616_v6 }
 0x3b7   : > { %v4208_v52 = vpop.eup %4207  ;;  %v7184_v60 = vmul.f32 0.020408163, %v3269_v40 }
 0x3b8   : > { %4213 = vrsqrt.f32 %v3498_v43  ;;  %v3556_v1 = vmul.f32 %v4208_v52, %v3532_v3  ;;  %v3440_v53 = vmul.f32 %v7168_v34, %v7168_v34 }
 0x3b9   : > { %4215 = vrsqrt.f32 %v3497_v4  ;;  %v3272_v37 = vpop.xlane.xlu1 %3271 }
 0x3ba   : > { %v3353_v51 = vpop.xlane.xlu0 %3352  ;;  %v3604_v36 = vmul.f32 %v3556_v1, %v7128_v25  ;;  %3658 = vperm.xlu1 %4200, %v3556_v1   ;;  %v7178_v18 = vmul.f32 0.020408163, %v3272_v37  ;;  %v3591_v25 = vld [vmem:[%s7164_s29 + $0x60] sm:$0xff]  ;;  %v3451_v37 = vmul.f32 %v7184_v60, %v7184_v60 }
 0x3bb   : > { %v3415_v26 = vmul.f32 0.020408163, %v3353_v51  ;;  %v3639_v4 = vsub.f32 %v3591_v25, %v3615_v49  ;;  %v3546_v51 = vld [vmem:[%s7140_s10 + $0x78] sm:$0xff] }
 0x3bc   : > { %v3628_v44 = vsub.f32 %v3580_v45, %v3604_v36  ;;  %v3452_v43 = vmul.f32 %v7178_v18, %v7178_v18  ;;  %v3582_v25 = vld [vmem:[%s7164_s29 + $0x18] sm:$0xff] }
 0x3bd   : > { %v3356_v22 = vpop.xlane.xlu1 %3355  ;;  %v3463_v50 = vsub.f32 %v3415_v26, %v3439_v32 }
 0x3be   : > { %v3389_v38 = vpop.xlane.xlu0 %3388  ;;  %v3416_v16 = vmul.f32 0.020408163, %v3356_v22  ;;  %3797 = vperm.xlu1 %4200, %v3627_v48   ;;  %3802 = vperm.xlu0 %4199, %v3628_v44  }
 0x3bf   : > { %v3427_v7 = vmul.f32 0.020408163, %v3389_v38  ;;  %v3487_v36 = vadd.f32 0.001, %v3463_v50 }
 0x3c0   : > { %v3464_v56 = vsub.f32 %v3416_v16, %v3440_v53  ;;  %v3545_v53 = vld [vmem:[%s7140_s10 + $0x70] sm:$0xff] }
 0x3c1   : > { %v4210_v23 = vpop.eup %4209  ;;  %v3392_v11 = vpop.xlane.xlu1 %3391  ;;  %v3475_v48 = vsub.f32 %v3427_v7, %v3451_v37 }
 0x3c2   : > { %v3239_v10 = vpop.xlane.xlu0 %3238  ;;  %v4212_v3 = vpop.eup %4211  ;;  %v3488_v52 = vadd.f32 0.001, %v3464_v56  ;;  %v3428_v40 = vmul.f32 0.020408163, %v3392_v11  ;;  %v3558_v1 = vmul.f32 %v4210_v23, %v3534_v55  ;;  %3857 = vperm.xlu1 %4200, %v3639_v4   ;;  %3862 = vperm.xlu0 %4199, %v3640_v8   ;;  %v3594_v11 = vld [vmem:[%s7164_s29 + $0x78] sm:$0xff] }
 0x3c3   : > { %v3557_v38 = vmul.f32 %v4212_v3, %v3533_v12  ;;  %v3499_v17 = vadd.f32 0.001, %v3475_v48  ;;  %v3581_v12 = vld [vmem:[%s7164_s29 + $0x10] sm:$0xff]  ;;  %v7206_v37 = vmul.f32 0.020408163, %v3239_v10 }
 0x3c4   : > { %4217 = vrsqrt.f32 %v3488_v52  ;;  %v3476_v21 = vsub.f32 %v3428_v40, %v3452_v43  ;;  %v3606_v16 = vmul.f32 %v3558_v1, %v7142_v47  ;;  %v3593_v10 = vld [vmem:[%s7164_s29 + $0x70] sm:$0xff] }
 0x3c5   : > { %v4214_v45 = vpop.eup %4213  ;;  %v3242_v26 = vpop.xlane.xlu1 %3241  ;;  %v3605_v8 = vmul.f32 %v3557_v38, %v7134_v41 }
 0x3c6   : > { %v3275_v22 = vpop.xlane.xlu0 %3274  ;;  %v4216_v44 = vpop.eup %4215  ;;  %v3500_v49 = vadd.f32 0.001, %v3476_v21  ;;  %v3570_v6 = vmul.f32 %v4214_v45, %v3546_v51  ;;  %3663 = vperm.xlu1 %4200, %v3557_v38   ;;  %v7196_v23 = vmul.f32 0.020408163, %v3242_v26  ;;  %v3630_v50 = vsub.f32 %v3582_v25, %v3606_v16  ;;  %v3548_v16 = vld [vmem:[%s7140_s10 + $0x88] sm:$0xff] }
 0x3c7   : > { %v3569_v56 = vmul.f32 %v4216_v44, %v3545_v53  ;;  %v3629_v48 = vsub.f32 %v3581_v12, %v3605_v8  ;;  %v7217_v53 = vmul.f32 0.020408163, %v3275_v22  ;;  %v3535_v8 = vld [vmem:[%s7140_s10 + $0x20] sm:$0xff] }
 0x3c8   : > { %4219 = vrsqrt.f32 %v3500_v49  ;;  %3728 = vperm.xlu0 %4199, %v3570_v6   ;;  %v3618_v7 = vmul.f32 %v3570_v6, %v7151_v15  ;;  %v3442_v3 = vmul.f32 %v7196_v23, %v7196_v23  ;;  %v3536_v15 = vld [vmem:[%s7140_s10 + $0x28] sm:$0xff] }
 0x3c9   : > { %4221 = vrsqrt.f32 %v3487_v36  ;;  %v3278_v32 = vpop.xlane.xlu1 %3277  ;;  %v3617_v26 = vmul.f32 %v3569_v56, %v7146_v63 }
 0x3ca   : > { %v3359_v55 = vpop.xlane.xlu0 %3358  ;;  %3723 = vperm.xlu1 %4200, %v3569_v56   ;;  %4223 = vrsqrt.f32 %v3499_v17  ;;  %v7203_v43 = vmul.f32 0.020408163, %v3278_v32  ;;  %v3642_v40 = vsub.f32 %v3594_v11, %v3618_v7 }
 0x3cb   : > { %v3417_v45 = vmul.f32 0.020408163, %v3359_v55 }
 0x3cc   : > { %3812 = vperm.xlu0 %4199, %v3630_v50   ;;  %v3454_v38 = vmul.f32 %v7203_v43, %v7203_v43  ;;  %v3641_v50 = vsub.f32 %v3593_v10, %v3617_v26  ;;  %v3596_v26 = vld [vmem:[%s7164_s29 + $0x88] sm:$0xff] }
 0x3cd   : > { %v3362_v47 = vpop.xlane.xlu1 %3361 }
 0x3ce   : > { %v3395_v4 = vpop.xlane.xlu0 %3394  ;;  %v3418_v52 = vmul.f32 0.020408163, %v3362_v47  ;;  %3668 = vperm.xlu1 %4200, %v3558_v1   ;;  %v3441_v1 = vmul.f32 %v7206_v37, %v7206_v37 }
 0x3cf   : > { %v3429_v32 = vmul.f32 0.020408163, %v3395_v4 }
 0x3d0   : > { %v3466_v51 = vsub.f32 %v3418_v52, %v3442_v3  ;;  %3872 = vperm.xlu0 %4199, %v3642_v40   ;;  %v3465_v63 = vsub.f32 %v3417_v45, %v3441_v1  ;;  %v3453_v3 = vmul.f32 %v7217_v53, %v7217_v53  ;;  %v3584_v52 = vld [vmem:[%s7164_s29 + $0x28] sm:$0xff] }
 0x3d1   : > { %v4218_v21 = vpop.eup %4217  ;;  %v3398_v36 = vpop.xlane.xlu1 %3397 }
 0x3d2   : > { %v7209_v41 = vpop.xlane.xlu0 %3244  ;;  %v3490_v44 = vadd.f32 0.001, %v3466_v51  ;;  %v3430_v49 = vmul.f32 0.020408163, %v3398_v36  ;;  %v3560_v6 = vmul.f32 %v4218_v21, %v3536_v15  ;;  %3807 = vperm.xlu1 %4200, %v3629_v48   ;;  %v3489_v4 = vadd.f32 0.001, %v3465_v63 }
 0x3d3   : > { %v3477_v40 = vsub.f32 %v3429_v32, %v3453_v3  ;;  %v3547_v48 = vld [vmem:[%s7140_s10 + $0x80] sm:$0xff]  ;;  %v3538_v63 = vld [vmem:[%s7140_s10 + $0x38] sm:$0xff]  ;;  %v7244_v3 = vmul.f32 0.020408163, %v7209_v41 }
 0x3d4   : > { %4225 = vrsqrt.f32 %v3490_v44  ;;  %v3478_v25 = vsub.f32 %v3430_v49, %v3454_v38  ;;  %v3608_v22 = vmul.f32 %v3560_v6, %v7168_v34 }
 0x3d5   : > { %v4220_v17 = vpop.eup %4219  ;;  %v3248_v55 = vpop.xlane.xlu1 %3247  ;;  %v3501_v38 = vadd.f32 0.001, %v3477_v40 }
 0x3d6   : > { %v7220_v56 = vpop.xlane.xlu0 %3280  ;;  %v4222_v7 = vpop.eup %4221  ;;  %v3502_v11 = vadd.f32 0.001, %v3478_v25  ;;  %v3572_v47 = vmul.f32 %v4220_v17, %v3548_v16  ;;  %3867 = vperm.xlu1 %4200, %v3641_v50   ;;  %v7227_v45 = vmul.f32 0.020408163, %v3248_v55  ;;  %v3632_v36 = vsub.f32 %v3584_v52, %v3608_v22  ;;  %v3550_v52 = vld [vmem:[%s7140_s10 + $0x98] sm:$0xff] }
 0x3d7   : > { %v3559_v51 = vmul.f32 %v4222_v7, %v3535_v8  ;;  %v4224_v21 = vpop.eup %4223  ;;  %v3583_v8 = vld [vmem:[%s7164_s29 + $0x20] sm:$0xff] }
 0x3d8   : > { %4227 = vrsqrt.f32 %v3502_v11  ;;  %3738 = vperm.xlu0 %4199, %v3572_v47   ;;  %v3620_v34 = vmul.f32 %v3572_v47, %v7178_v18  ;;  %v3571_v49 = vmul.f32 %v4224_v21, %v3547_v48  ;;  %v3444_v10 = vmul.f32 %v7227_v45, %v7227_v45 }
 0x3d9   : > { %v3284_v12 = vpop.xlane.xlu1 %3283  ;;  %4229 = vrsqrt.f32 %v3489_v4  ;;  %v3607_v50 = vmul.f32 %v3559_v51, %v7172_v24 }
 0x3da   : > { %v3365_v15 = vpop.xlane.xlu0 %3364  ;;  %3673 = vperm.xlu1 %4200, %v3559_v51   ;;  %v7234_v1 = vmul.f32 0.020408163, %v3284_v12  ;;  %v3644_v17 = vsub.f32 %v3596_v26, %v3620_v34  ;;  %4231 = vrsqrt.f32 %v3501_v38  ;;  %v3595_v26 = vld [vmem:[%s7164_s29 + $0x80] sm:$0xff]  ;;  %v7254_v38 = vmul.f32 0.020408163, %v7220_v56 }
 0x3db   : > { %v3419_v24 = vmul.f32 0.020408163, %v3365_v15  ;;  %v3631_v21 = vsub.f32 %v3583_v8, %v3607_v50  ;;  %v3586_v15 = vld [vmem:[%s7164_s29 + $0x38] sm:$0xff] }
 0x3dc   : > { %3822 = vperm.xlu0 %4199, %v3632_v36   ;;  %v3456_v7 = vmul.f32 %v7234_v1, %v7234_v1  ;;  %v3619_v36 = vmul.f32 %v3571_v49, %v7184_v60  ;;  %v3455_v56 = vmul.f32 %v7254_v38, %v7254_v38 }
 0x3dd   : > { %v3368_v44 = vpop.xlane.xlu1 %3367 }
 0x3de   : > { %v3420_v16 = vmul.f32 0.020408163, %v3368_v44  ;;  %v3401_v25 = vpop.xlane.xlu0 %3400  ;;  %3733 = vperm.xlu1 %4200, %v3571_v49  }
 0x3df   : > { %v3431_v60 = vmul.f32 0.020408163, %v3401_v25 }
 0x3e0   : > { %v3468_v18 = vsub.f32 %v3420_v16, %v3444_v10  ;;  %3882 = vperm.xlu0 %4199, %v3644_v17   ;;  %v3643_v10 = vsub.f32 %v3595_v26, %v3619_v36 }
 0x3e1   : > { %v4226_v32 = vpop.eup %4225  ;;  %v3404_v55 = vpop.xlane.xlu1 %3403  ;;  %v3479_v25 = vsub.f32 %v3431_v60, %v3455_v56 }
 0x3e2   : > { %v3492_v11 = vadd.f32 0.001, %v3468_v18  ;;  %v3432_v47 = vmul.f32 0.020408163, %v3404_v55  ;;  %v7241_v22 = vmul.f32 %v4226_v32, %v3538_v63  ;;  %3678 = vperm.xlu1 %4200, %v3560_v6   ;;  %v3251_v40 = vpop.xlane.xlu0 %3250  ;;  %v3443_v6 = vmul.f32 %v7244_v3, %v7244_v3  ;;  %v3537_v18 = vld [vmem:[%s7140_s10 + $0x30] sm:$0xff]  ;;  %v3598_v55 = vld [vmem:[%s7164_s29 + $0x98] sm:$0xff] }
 0x3e3   : > { %v7272_v60 = vmul.f32 0.020408163, %v3251_v40 }
 0x3e4   : > { %4233 = vrsqrt.f32 %v3492_v11  ;;  %v3480_v4 = vsub.f32 %v3432_v47, %v3456_v7  ;;  %v3610_v41 = vmul.f32 %v7241_v22, %v7196_v23  ;;  %v3467_v44 = vsub.f32 %v3419_v24, %v3443_v6  ;;  %v3540_v24 = vld [vmem:[%s7140_s10 + $0x48] sm:$0xff] }
 0x3e5   : > { %v4228_v12 = vpop.eup %4227  ;;  %v3254_v51 = vpop.xlane.xlu1 %3253  ;;  %v3445_v40 = vmul.f32 %v7272_v60, %v7272_v60 }
 0x3e6   : > { %v3504_v48 = vadd.f32 0.001, %v3480_v4  ;;  %v3574_v34 = vmul.f32 %v4228_v12, %v3550_v52  ;;  %3817 = vperm.xlu1 %4200, %v3631_v21   ;;  %v4230_v16 = vpop.eup %4229  ;;  %v7257_v17 = vmul.f32 0.020408163, %v3254_v51  ;;  %v3287_v63 = vpop.xlane.xlu0 %3286  ;;  %v3634_v23 = vsub.f32 %v3586_v15, %v3610_v41 }
 0x3e7   : > { %v3491_v50 = vadd.f32 0.001, %v3467_v44  ;;  %v3561_v11 = vmul.f32 %v4230_v16, %v3537_v18  ;;  %v4232_v47 = vpop.eup %4231 }
 0x3e8   : > { %4235 = vrsqrt.f32 %v3504_v48  ;;  %3748 = vperm.xlu0 %4199, %v3574_v34   ;;  %v3622_v32 = vmul.f32 %v3574_v34, %v7203_v43  ;;  %v3446_v8 = vmul.f32 %v7257_v17, %v7257_v17  ;;  %v3549_v43 = vld [vmem:[%s7140_s10 + $0x90] sm:$0xff]  ;;  %v3503_v48 = vadd.f32 0.001, %v3479_v25 }
 0x3e9   : > { %v3290_v49 = vpop.xlane.xlu1 %3289  ;;  %4237 = vrsqrt.f32 %v3491_v50  ;;  %v3573_v26 = vmul.f32 %v4232_v47, %v3549_v43  ;;  %v3609_v18 = vmul.f32 %v3561_v11, %v7206_v37  ;;  %v3585_v50 = vld [vmem:[%s7164_s29 + $0x30] sm:$0xff]  ;;  %v3588_v47 = vld [vmem:[%s7164_s29 + $0x48] sm:$0xff] }
 0x3ea   : > { %3877 = vperm.xlu1 %4200, %v3643_v10   ;;  %v7266_v52 = vmul.f32 0.020408163, %v3290_v49  ;;  %v3646_v12 = vsub.f32 %v3598_v55, %v3622_v32  ;;  %v3371_v51 = vpop.xlane.xlu0 %3370  ;;  %v3552_v49 = vld [vmem:[%s7140_s10 + $0xa8] sm:$0xff] }
 0x3ec   : > { %3832 = vperm.xlu0 %4199, %v3634_v23   ;;  %v3458_v41 = vmul.f32 %v7266_v52, %v7266_v52  ;;  %v3421_v23 = vmul.f32 0.020408163, %v3371_v51 }
 0x3ed   : > { %v3374_v7 = vpop.xlane.xlu1 %3373 }
 0x3ee   : > { %v3422_v4 = vmul.f32 0.020408163, %v3374_v7  ;;  %3683 = vperm.xlu1 %4200, %v3561_v11   ;;  %v3407_v32 = vpop.xlane.xlu0 %3406  ;;  %v7280_v7 = vmul.f32 0.020408163, %v3287_v63  ;;  %v3633_v11 = vsub.f32 %v3585_v50, %v3609_v18 }
 0x3ef   : > { %v3433_v37 = vmul.f32 0.020408163, %v3407_v32  ;;  %v3587_v32 = vld [vmem:[%s7164_s29 + $0x40] sm:$0xff] }
 0x3f0   : > { %v3470_v21 = vsub.f32 %v3422_v4, %v3446_v8  ;;  %3892 = vperm.xlu0 %4199, %v3646_v12   ;;  %v3469_v8 = vsub.f32 %v3421_v23, %v3445_v40  ;;  %v3621_v4 = vmul.f32 %v3573_v26, %v7217_v53  ;;  %v3457_v63 = vmul.f32 %v7280_v7, %v7280_v7  ;;  %v3542_v53 = vld [vmem:[%s7140_s10 + $0x58] sm:$0xff] }
 0x3f1   : > { %v4234_v36 = vpop.eup %4233  ;;  %v3410_v34 = vpop.xlane.xlu1 %3409 }
 0x3f2   : > { %v3494_v6 = vadd.f32 0.001, %v3470_v21  ;;  %v3434_v15 = vmul.f32 0.020408163, %v3410_v34  ;;  %v3564_v44 = vmul.f32 %v4234_v36, %v3540_v24  ;;  %3743 = vperm.xlu1 %4200, %v3573_v26   ;;  %v3600_v24 = vld [vmem:[%s7164_s29 + $0xa8] sm:$0xff]  ;;  %v3481_v51 = vsub.f32 %v3433_v37, %v3457_v63  ;;  %v3539_v34 = vld [vmem:[%s7140_s10 + $0x40] sm:$0xff] }
 0x3f3   : > { %v3602_v37 = vld [vmem:[%s7164_s29 + $0xb8] sm:$0xff] }
 0x3f4   : > { %4239 = vrsqrt.f32 %v3494_v6  ;;  %v3482_v10 = vsub.f32 %v3434_v15, %v3458_v41  ;;  %3698 = vperm.xlu0 %4199, %v3564_v44   ;;  %v3612_v25 = vmul.f32 %v3564_v44, %v7227_v45  ;;  %v3597_v45 = vld [vmem:[%s7164_s29 + $0x90] sm:$0xff]  ;;  %v3551_v44 = vld [vmem:[%s7140_s10 + $0xa0] sm:$0xff] }
 0x3f5   : > { %v4236_v16 = vpop.eup %4235  ;;  %4241 = vrsqrt.f32 %v3503_v48  ;;  %v3645_v21 = vsub.f32 %v3597_v45, %v3621_v4 }
 0x3f6   : > { %v3506_v56 = vadd.f32 0.001, %v3482_v10  ;;  %v3576_v55 = vmul.f32 %v4236_v16, %v3552_v49  ;;  %3688 = vperm.xlu1 %4200, %v7241_v22   ;;  %v3636_v12 = vsub.f32 %v3588_v47, %v3612_v25  ;;  %v3493_v22 = vadd.f32 0.001, %v3469_v8  ;;  %v4238_v36 = vpop.eup %4237  ;;  %v3554_v49 = vld [vmem:[%s7140_s10 + $0xb8] sm:$0xff]  ;;  %v3599_v47 = vld [vmem:[%s7164_s29 + $0xa0] sm:$0xff] }
 0x3f7   : > { %v3563_v41 = vmul.f32 %v4238_v36, %v3539_v34 }
 0x3f8   : > { %4243 = vrsqrt.f32 %v3506_v56  ;;  %3758 = vperm.xlu0 %4199, %v3576_v55   ;;  %v3624_v43 = vmul.f32 %v3576_v55, %v7234_v1  ;;  %v3505_v1 = vadd.f32 0.001, %v3481_v51  ;;  %v3590_v55 = vld [vmem:[%s7164_s29 + $0x58] sm:$0xff]  ;;  %v3601_v51 = vld [vmem:[%s7164_s29 + $0xb0] sm:$0xff] }
 0x3f9   : > { %4245 = vrsqrt.f32 %v3493_v22  ;;  %v3611_v23 = vmul.f32 %v3563_v41, %v7244_v3 }
 0x3fa   : > { %3827 = vperm.xlu1 %4200, %v3633_v11   ;;  %v3648_v48 = vsub.f32 %v3600_v24, %v3624_v43  ;;  %4247 = vrsqrt.f32 %v3505_v1  ;;  %v3553_v43 = vld [vmem:[%s7140_s10 + $0xb0] sm:$0xff] }
 0x3fb   : > { %v3635_v50 = vsub.f32 %v3587_v32, %v3611_v23 }
 0x3fc   : > { %3842 = vperm.xlu0 %4199, %v3636_v12  }
 0x3fe   : > { %3887 = vperm.xlu1 %4200, %v3645_v21  }
 0x400   : > { %3902 = vperm.xlu0 %4199, %v3648_v48  }
 0x401   : > { %v4240_v26 = vpop.eup %4239 }
 0x402   : > { %v4242_v6 = vpop.eup %4241  ;;  %v3566_v15 = vmul.f32 %v4240_v26, %v3542_v53  ;;  %3693 = vperm.xlu1 %4200, %v3563_v41  }
 0x403   : > { %v3575_v16 = vmul.f32 %v4242_v6, %v3551_v44 }
 0x404   : > { %3708 = vperm.xlu0 %4199, %v3566_v15   ;;  %v3614_v56 = vmul.f32 %v3566_v15, %v7257_v17  ;;  %v3541_v17 = vld [vmem:[%s7140_s10 + $0x50] sm:$0xff] }
 0x405   : > { %v4244_v10 = vpop.eup %4243  ;;  %v3623_v25 = vmul.f32 %v3575_v16, %v7254_v38 }
 0x406   : > { %v3578_v18 = vmul.f32 %v4244_v10, %v3554_v49  ;;  %3753 = vperm.xlu1 %4200, %v3575_v16   ;;  %v3638_v40 = vsub.f32 %v3590_v55, %v3614_v56  ;;  %v4246_v11 = vpop.eup %4245 }
 0x407   : > { %v3647_v3 = vsub.f32 %v3599_v47, %v3623_v25  ;;  %v3565_v12 = vmul.f32 %v4246_v11, %v3541_v17  ;;  %v4248_v45 = vpop.eup %4247 }
 0x408   : > { %3768 = vperm.xlu0 %4199, %v3578_v18   ;;  %v3626_v8 = vmul.f32 %v3578_v18, %v7266_v52  ;;  %v3577_v63 = vmul.f32 %v4248_v45, %v3553_v43  ;;  %v3589_v52 = vld [vmem:[%s7164_s29 + $0x50] sm:$0xff] }
 0x409   : > { %v3613_v38 = vmul.f32 %v3565_v12, %v7272_v60 }
 0x40a   : > { %3837 = vperm.xlu1 %4200, %v3635_v50   ;;  %v3650_v4 = vsub.f32 %v3602_v37, %v3626_v8  ;;  %v3625_v24 = vmul.f32 %v3577_v63, %v7280_v7 }
 0x40b   : > { %v3637_v22 = vsub.f32 %v3589_v52, %v3613_v38 }
 0x40c   : > { %3852 = vperm.xlu0 %4199, %v3638_v40   ;;  %v3649_v21 = vsub.f32 %v3601_v51, %v3625_v24 }
 0x40e   : > { %3897 = vperm.xlu1 %4200, %v3647_v3  }
 0x410   : > { %3912 = vperm.xlu0 %4199, %v3650_v4  }
 0x412   : > { %3703 = vperm.xlu1 %4200, %v3565_v12  }
 0x416   : > { %3763 = vperm.xlu1 %4200, %v3577_v63  }
 0x41a   : > { %3847 = vperm.xlu1 %4200, %v3637_v22  }
 0x41e   : > { %3907 = vperm.xlu1 %4200, %v3649_v21  }
 0x42b   : > { %v3654_v36 = vpop.permute.xlu0 %3653 }
 0x42c   : > { %v3771_v26 = vmul.f32 %v3654_v36, %v6900_v57 }
 0x42f   : > { %v3719_v34 = vpop.permute.xlu0 %3718 }
 0x430   : > { %v3714_v48 = vpop.permute.xlu1 %3713  ;;  %v3784_v44 = vmul.f32 %v3719_v34, %v6910_v19 }
 0x431   : > { %v3783_v15 = vmul.f32 %v3714_v48, %v6903_v54 }
 0x435   : > { %v3659_v53 = vpop.permute.xlu1 %3658 }
 0x436   : > { %v3772_v1 = vmul.f32 %v3659_v53, %v6908_v58 }
 0x439   : > { %v3798_v60 = vpop.permute.xlu1 %3797  ;;  %v3803_v7 = vpop.permute.xlu0 %3802 }
 0x43a   : > { %v3915_v41 = vadd.f32 %v3798_v60, %v3771_v26  ;;  %v3916_v6 = vadd.f32 %v3803_v7, %v3772_v1 }
 0x43c   : > { %3939 = vst.msk [vmem:[%s7314_s12] sm:$0xff] %vm3218_vm0, %v3915_v41  ;;  %3940 = vst.msk [vmem:[%s7314_s12 + $0x8] sm:$0xff] %vm3218_vm0, %v3916_v6 }
 0x43d   : > { %v3858_v57 = vpop.permute.xlu1 %3857  ;;  %v3863_v58 = vpop.permute.xlu0 %3862 }
 0x43e   : > { %v3927_v49 = vadd.f32 %v3858_v57, %v3783_v15  ;;  %v3928_v10 = vadd.f32 %v3863_v58, %v3784_v44 }
 0x440   : > { %3951 = vst.msk [vmem:[%s7314_s12 + $0x60] sm:$0xff] %vm3218_vm0, %v3927_v49  ;;  %3952 = vst.msk [vmem:[%s7314_s12 + $0x68] sm:$0xff] %vm3218_vm0, %v3928_v10 }
 0x441   : > { %v3664_v16 = vpop.permute.xlu1 %3663 }
 0x442   : > { %v3773_v25 = vmul.f32 %v3664_v16, %v6927_v29 }
 0x443   : > { %v3729_v23 = vpop.permute.xlu0 %3728 }
 0x444   : > { %v3786_v19 = vmul.f32 %v3729_v23, %v6942_v46 }
 0x445   : > { %v3724_v54 = vpop.permute.xlu1 %3723 }
 0x446   : > { %v3785_v37 = vmul.f32 %v3724_v54, %v6932_v2 }
 0x447   : > { %v3813_v18 = vpop.permute.xlu0 %3812 }
 0x449   : > { %v3669_v32 = vpop.permute.xlu1 %3668 }
 0x44a   : > { %v3774_v56 = vmul.f32 %v3669_v32, %v6935_v20 }
 0x44b   : > { %v3873_v55 = vpop.permute.xlu0 %3872 }
 0x44c   : > { %v3930_v50 = vadd.f32 %v3873_v55, %v3786_v19  ;;  %v3918_v40 = vadd.f32 %v3813_v18, %v3774_v56 }
 0x44d   : > { %v3808_v47 = vpop.permute.xlu1 %3807 }
 0x44e   : > { %3954 = vst.msk [vmem:[%s7314_s12 + $0x78] sm:$0xff] %vm3218_vm0, %v3930_v50  ;;  %3942 = vst.msk [vmem:[%s7314_s12 + $0x18] sm:$0xff] %vm3218_vm0, %v3918_v40  ;;  %v3917_v8 = vadd.f32 %v3808_v47, %v3773_v25 }
 0x450   : > { %3941 = vst.msk [vmem:[%s7314_s12 + $0x10] sm:$0xff] %vm3218_vm0, %v3917_v8 }
 0x451   : > { %v3868_v46 = vpop.permute.xlu1 %3867 }
 0x452   : > { %v3929_v3 = vadd.f32 %v3868_v46, %v3785_v37 }
 0x453   : > { %v3739_v20 = vpop.permute.xlu0 %3738 }
 0x454   : > { %3953 = vst.msk [vmem:[%s7314_s12 + $0x70] sm:$0xff] %vm3218_vm0, %v3929_v3  ;;  %v3788_v4 = vmul.f32 %v3739_v20, %v6982_v33 }
 0x455   : > { %v3674_v11 = vpop.permute.xlu1 %3673 }
 0x456   : > { %v3775_v38 = vmul.f32 %v3674_v11, %v6960_v61 }
 0x457   : > { %v3823_v29 = vpop.permute.xlu0 %3822 }
 0x459   : > { %v3734_v17 = vpop.permute.xlu1 %3733 }
 0x45a   : > { %v3787_v33 = vmul.f32 %v3734_v17, %v6971_v28 }
 0x45b   : > { %v3883_v12 = vpop.permute.xlu0 %3882 }
 0x45c   : > { %v3932_v45 = vadd.f32 %v3883_v12, %v3788_v4 }
 0x45d   : > { %v3679_v2 = vpop.permute.xlu1 %3678 }
 0x45e   : > { %3956 = vst.msk [vmem:[%s7314_s12 + $0x88] sm:$0xff] %vm3218_vm0, %v3932_v45  ;;  %v3776_v43 = vmul.f32 %v3679_v2, %v6974_v30 }
 0x460   : > { %v3920_v63 = vadd.f32 %v3823_v29, %v3776_v43 }
 0x461   : > { %v3818_v52 = vpop.permute.xlu1 %3817 }
 0x462   : > { %3944 = vst.msk [vmem:[%s7314_s12 + $0x28] sm:$0xff] %vm3218_vm0, %v3920_v63  ;;  %v3919_v24 = vadd.f32 %v3818_v52, %v3775_v38 }
 0x463   : > { %v3749_v22 = vpop.permute.xlu0 %3748 }
 0x464   : > { %3943 = vst.msk [vmem:[%s7314_s12 + $0x20] sm:$0xff] %vm3218_vm0, %v3919_v24  ;;  %v3790_v30 = vmul.f32 %v3749_v22, %v7023_v59 }
 0x465   : > { %v3878_v51 = vpop.permute.xlu1 %3877 }
 0x466   : > { %v3931_v21 = vadd.f32 %v3878_v51, %v3787_v33 }
 0x467   : > { %v3833_v36 = vpop.permute.xlu0 %3832 }
 0x468   : > { %3955 = vst.msk [vmem:[%s7314_s12 + $0x80] sm:$0xff] %vm3218_vm0, %v3931_v21 }
 0x469   : > { %v3684_v61 = vpop.permute.xlu1 %3683 }
 0x46a   : > { %v3777_v7 = vmul.f32 %v3684_v61, %v7006_v0 }
 0x46b   : > { %v3893_v48 = vpop.permute.xlu0 %3892 }
 0x46c   : > { %v3934_v34 = vadd.f32 %v3893_v48, %v3790_v30 }
 0x46d   : > { %v3744_v53 = vpop.permute.xlu1 %3743 }
 0x46e   : > { %3958 = vst.msk [vmem:[%s7314_s12 + $0x98] sm:$0xff] %vm3218_vm0, %v3934_v34  ;;  %v3789_v58 = vmul.f32 %v3744_v53, %v7014_v9 }
 0x46f   : > { %v3699_v26 = vpop.permute.xlu0 %3698 }
 0x470   : > { %v3780_v59 = vmul.f32 %v3699_v26, %v7051_v39 }
 0x471   : > { %v3689_v28 = vpop.permute.xlu1 %3688 }
 0x472   : > { %v3778_v1 = vmul.f32 %v3689_v28, %v7017_v14 }
 0x473   : > { %v3759_v60 = vpop.permute.xlu0 %3758 }
 0x474   : > { %v3922_v41 = vadd.f32 %v3833_v36, %v3778_v1  ;;  %v3792_v14 = vmul.f32 %v3759_v60, %v7058_v31 }
 0x475   : > { %v3828_v6 = vpop.permute.xlu1 %3827 }
 0x476   : > { %3946 = vst.msk [vmem:[%s7314_s12 + $0x38] sm:$0xff] %vm3218_vm0, %v3922_v41  ;;  %v3921_v15 = vadd.f32 %v3828_v6, %v3777_v7 }
 0x477   : > { %v3843_v44 = vpop.permute.xlu0 %3842 }
 0x478   : > { %v3924_v57 = vadd.f32 %v3843_v44, %v3780_v59  ;;  %3945 = vst.msk [vmem:[%s7314_s12 + $0x30] sm:$0xff] %vm3218_vm0, %v3921_v15 }
 0x479   : > { %v3888_v0 = vpop.permute.xlu1 %3887 }
 0x47a   : > { %3948 = vst.msk [vmem:[%s7314_s12 + $0x48] sm:$0xff] %vm3218_vm0, %v3924_v57  ;;  %v3933_v49 = vadd.f32 %v3888_v0, %v3789_v58 }
 0x47b   : > { %v3903_v10 = vpop.permute.xlu0 %3902 }
 0x47c   : > { %v3936_v16 = vadd.f32 %v3903_v10, %v3792_v14  ;;  %3957 = vst.msk [vmem:[%s7314_s12 + $0x90] sm:$0xff] %vm3218_vm0, %v3933_v49 }
 0x47d   : > { %v3694_v39 = vpop.permute.xlu1 %3693 }
 0x47e   : > { %3960 = vst.msk [vmem:[%s7314_s12 + $0xa8] sm:$0xff] %vm3218_vm0, %v3936_v16  ;;  %v3779_v31 = vmul.f32 %v3694_v39, %v7040_v62 }
 0x47f   : > { %v3709_v23 = vpop.permute.xlu0 %3708 }
 0x480   : > { %v3782_v18 = vmul.f32 %v3709_v23, %v7087_v42 }
 0x481   : > { %v3754_v54 = vpop.permute.xlu1 %3753 }
 0x482   : > { %v3791_v50 = vmul.f32 %v3754_v54, %v7048_v35 }
 0x483   : > { %v3769_v9 = vpop.permute.xlu0 %3768 }
 0x484   : > { %v3794_v25 = vmul.f32 %v3769_v9, %v7094_v5 }
 0x485   : > { %v3838_v19 = vpop.permute.xlu1 %3837 }
 0x486   : > { %v3923_v32 = vadd.f32 %v3838_v19, %v3779_v31 }
 0x487   : > { %v3853_v56 = vpop.permute.xlu0 %3852 }
 0x488   : > { %v3926_v55 = vadd.f32 %v3853_v56, %v3782_v18  ;;  %3947 = vst.msk [vmem:[%s7314_s12 + $0x40] sm:$0xff] %vm3218_vm0, %v3923_v32 }
 0x489   : > { %v3898_v40 = vpop.permute.xlu1 %3897 }
 0x48a   : > { %3950 = vst.msk [vmem:[%s7314_s12 + $0x58] sm:$0xff] %vm3218_vm0, %v3926_v55  ;;  %v3935_v47 = vadd.f32 %v3898_v40, %v3791_v50 }
 0x48b   : > { %v3913_v8 = vpop.permute.xlu0 %3912 }
 0x48c   : > { %v3938_v62 = vadd.f32 %v3913_v8, %v3794_v25  ;;  %3959 = vst.msk [vmem:[%s7314_s12 + $0xa0] sm:$0xff] %vm3218_vm0, %v3935_v47 }
 0x48d   : > { %v3704_v42 = vpop.permute.xlu1 %3703 }
 0x48e   : > { %3962 = vst.msk [vmem:[%s7314_s12 + $0xb8] sm:$0xff] %vm3218_vm0, %v3938_v62  ;;  %v3781_v35 = vmul.f32 %v3704_v42, %v7075_v13 }
 0x491   : > { %v3764_v37 = vpop.permute.xlu1 %3763 }
 0x492   : > { %v3793_v20 = vmul.f32 %v3764_v37, %v7083_v27 }
 0x495   : > { %v3848_v46 = vpop.permute.xlu1 %3847 }
 0x496   : > { %v3925_v3 = vadd.f32 %v3848_v46, %v3781_v35 }
 0x498   : > { %3949 = vst.msk [vmem:[%s7314_s12 + $0x50] sm:$0xff] %vm3218_vm0, %v3925_v3 }
 0x499   : > { %v3908_v5 = vpop.permute.xlu1 %3907 }
 0x49a   : > { %v3937_v11 = vadd.f32 %v3908_v5, %v3793_v20 }
 0x49c   : > { %3961 = vst.msk [vmem:[%s7314_s12 + $0xb0] sm:$0xff] %vm3218_vm0, %v3937_v11 }
 0x49d PF: > { %p16_p12 = scmp.ge.s32.totalorder %s4401_s23, 4   ;;  %s7418_s18 = smov %s4335_s19 }
 0x49e   : > { %s7419_s19 = smov %s4339_s20  ;;  %s7420_s20 = smov %s4411_s26 }
 0x49f   : > { %s7421_s21 = smov %s4401_s23  ;;  %18 = sbr.rel (!%p16_p12) target bundleno = 4 (0x4), region = 90 }
 0x4a4   :  { %3985 = vsyncpa [#allocation3], 1 }
 0x4a5   :  { %3987 = vsyncpa [#allocation3 + $0x1], 1 }
 0x4a6   :  { %3988 = vsyncpa [#allocation5], 1 }

</bundles_post_ra>
